<compile_context>
chip_gen: v7x
topology: tpu7x:2x2x1
jax: 0.10.0
libtpu: 0.0.40
codegen_flags: <defaults>
</compile_context>

<pallas_src>
import math

import jax
import jax.numpy as jnp
from jax.experimental import pallas as pl
from jax.experimental.pallas import tpu as pltpu


# ------------------------------ Pallas kernel ------------------------------- #

def _down_fused_kernel(x_ref, w1_ref, b1_ref, w2_ref, b2_ref, o_ref):
    # x_ref:  (Bt, 2*Ho, Wo, 2*Cin)  NHWC slab, adjacent W-pairs folded on lanes
    # w1_ref: (9*Cin, Cmid) bf16     im2col weight layout, BN scale folded in
    # b1_ref: (1, Cmid) f32          fused BN shift
    # w2_ref: (9*Cmid, Cout) bf16
    # b2_ref: (1, Cout) f32
    # o_ref:  (Bt, Cout, Ho*Wo)      lane-dense, NCHW-flat output
    bt, h2, wo, cin2 = x_ref.shape
    cin = cin2 // 2
    ho = h2 // 2
    cout = o_ref.shape[1]

    # ---- 2x2 max-pool on the resident slab (f32, VPU) ----
    x = x_ref[...]
    xh = x.reshape(bt * ho, 2, wo, cin2).max(axis=1)           # max over row pairs
    xh = xh.reshape(bt, ho, wo, cin2)
    pooled = jnp.maximum(xh[..., :cin], xh[..., cin:])         # max over col pairs (lanes)

    def conv3x3(x4, w_flat, b_row):
        # x4: (Bt, Ho, Wo, C) f32 -> (Bt, Ho, Wo, Co) f32.
        # 3x3 SAME conv + folded-BN shift + ReLU as a single im2col matmul.
        c = x4.shape[-1]
        co = w_flat.shape[-1]
        wo2 = wo + 2
        mpad = ho * wo2

        # W halo, then flatten (H, W+2) -> rows: every conv tap becomes a
        # contiguous row-range view of this flattened slab.
        zc = jnp.zeros((bt * ho, 1, c), jnp.float32)
        rows = jnp.concatenate([zc, x4.reshape(bt * ho, wo, c), zc], axis=1)
        rows = rows.reshape(bt, mpad, c)
        ztop = jnp.zeros((bt, wo2, c), jnp.float32)             # top H halo
        zbot = jnp.zeros((bt, 2 * wo2, c), jnp.float32)         # bottom halo + overhang
        pf = jnp.concatenate([ztop, rows, zbot], axis=1)        # (Bt, (Ho+3)*(Wo+2), C)

        # im2col: 9 contiguous-row taps stacked on the lane axis -> one matmul.
        taps = [pf[:, kh * wo2 + kw: kh * wo2 + kw + mpad, :]
                for kh in range(3) for kw in range(3)]
        patches = jnp.concatenate(taps, axis=-1)                # (Bt, Mpad, 9*C)
        patches = patches.reshape(bt * mpad, 9 * c).astype(jnp.bfloat16)

        acc = jnp.dot(patches, w_flat,
                      preferred_element_type=jnp.float32)       # (Bt*Mpad, Co) f32
        y = jnp.maximum(acc + b_row, 0.0)
        # Drop the 2 junk columns per row introduced by the padded-width matmul.
        return y.reshape(bt, ho, wo2, co)[:, :, :wo, :]

    y1 = conv3x3(pooled, w1_ref[...], b1_ref[...])              # (Bt, Ho, Wo, Cmid)
    y2 = conv3x3(y1, w2_ref[...], b2_ref[...])                  # (Bt, Ho, Wo, Cout)

    # Lane-dense NCHW store: (Ho*Wo, Cout) -> (Cout, Ho*Wo) per image.
    y2 = y2.reshape(bt, ho * wo, cout)
    for b in range(bt):
        o_ref[b] = y2[b].T.astype(o_ref.dtype)


# -------------------------------- Wrapper ----------------------------------- #

def down_forward(x_nchw, params):
    """Down.forward: NCHW in -> NCHW out (matches the PyTorch convention)."""
    n, cin, h, w = x_nchw.shape
    assert h % 2 == 0 and w % 2 == 0, "MaxPool2d(2) expects even spatial dims here"
    ho, wo = h // 2, w // 2

    w1, b1 = params["w1"], params["shift1"]
    w2, b2 = params["w2"], params["shift2"]
    cmid, cout = w1.shape[-1], w2.shape[-1]

    # im2col weight layout + bf16 MXU operands (BN scale already folded in).
    w1k = w1.reshape(9 * cin, cmid).astype(jnp.bfloat16)
    w2k = w2.reshape(9 * cmid, cout).astype(jnp.bfloat16)

    # NCHW -> NHWC, then fold adjacent W-pairs onto the channel/lane axis
    # ((N,H,W,C) -> (N,H,W/2,2C) is a free, contiguity-preserving reshape).
    x = jnp.transpose(x_nchw, (0, 2, 3, 1)).reshape(n, h, wo, 2 * cin)

    # Batch several images per grid step so M = Bt*Ho*Wo feeds the MXU and
    # per-step overhead is amortized (Bt must divide N).
    bt = max(1, min(n, 512 // max(1, ho * wo)))
    while n % bt:
        bt -= 1

    out = pl.pallas_call(
        _down_fused_kernel,
        out_shape=jax.ShapeDtypeStruct((n, cout, ho * wo), x_nchw.dtype),
        grid=(n // bt,),
        in_specs=[
            pl.BlockSpec((bt, h, wo, 2 * cin), lambda b: (b, 0, 0, 0)),
            pl.BlockSpec((9 * cin, cmid), lambda b: (0, 0)),
            pl.BlockSpec((1, cmid), lambda b: (0, 0)),
            pl.BlockSpec((9 * cmid, cout), lambda b: (0, 0)),
            pl.BlockSpec((1, cout), lambda b: (0, 0)),
        ],
        out_specs=pl.BlockSpec((bt, cout, ho * wo), lambda b: (b, 0, 0)),
        compiler_params=pltpu.CompilerParams(
            dimension_semantics=("parallel",),
            vmem_limit_bytes=32 * 1024 * 1024),
    )(x, w1k, b1, w2k, b2)

    # Already NCHW-ordered; just split the flat spatial axis (free reshape).
    return out.reshape(n, cout, ho, wo)


# --------------------------- Parameter creation ------------------------------ #

def make_params(key, in_ch, out_ch, mid_ch=None):
    if mid_ch is None:
        mid_ch = out_ch
    eps = 1e-5
    ks = jax.random.split(key, 6)

    def conv_bn(kw, kg, kb, ci, co):
        w = jax.random.normal(kw, (3, 3, ci, co), jnp.float32)
        w = w * (1.0 / math.sqrt(9 * ci))
        gamma = jax.random.uniform(kg, (co,), jnp.float32, 0.5, 1.5)
        beta = 0.1 * jax.random.normal(kb, (co,), jnp.float32)
        # inference BN with fresh running stats: mean = 0, var = 1
        scale = gamma / jnp.sqrt(1.0 + eps)
        shift = beta - 0.0 * scale
        # fold the per-output-channel BN scale into the conv weight
        return w * scale, shift.reshape(1, co)

    w1, sh1 = conv_bn(ks[0], ks[1], ks[2], in_ch, mid_ch)
    w2, sh2 = conv_bn(ks[3], ks[4], ks[5], mid_ch, out_ch)
    return {"w1": w1, "shift1": sh1, "w2": w2, "shift2": sh2}


# -------------------------------- Reference ---------------------------------- #

def ref_forward(x_nchw, params, matmul_dtype=jnp.bfloat16):
    """XLA reference. matmul_dtype=bf16 mirrors the kernel's MXU precision."""
    x = jnp.transpose(x_nchw, (0, 2, 3, 1))
    n, h, w, c = x.shape
    x = x.reshape(n, h // 2, 2, w // 2, 2, c).max(axis=(2, 4))

    def conv(x, w_, b):
        y = jax.lax.conv_general_dilated(
            x.astype(matmul_dtype), w_.astype(matmul_dtype), (1, 1), "SAME",
            dimension_numbers=("NHWC", "HWIO", "NHWC"),
            preferred_element_type=jnp.float32)
        return jnp.maximum(y + b.reshape(1, 1, 1, -1), 0.0)

    x = conv(x, params["w1"], params["shift1"])
    x = conv(x, params["w2"], params["shift2"])
    return jnp.transpose(x, (0, 3, 1, 2)).astype(x_nchw.dtype)


# ---------------------------------- Main -------------------------------------- #

if __name__ == "__main__":
    key = jax.random.PRNGKey(0)
    k_x, k_p = jax.random.split(key)

    # Down(in_channels=4, out_channels=8, rotNum=4, scaleList=[1])
    in_ch, out_ch = 4, 8
    x = jax.random.normal(k_x, (2, in_ch, 16, 16), jnp.float32)   # NCHW

    params = make_params(k_p, in_ch, out_ch)

    out = jax.block_until_ready(down_forward(x, params))
    assert out.shape == (2, out_ch, 8, 8), out.shape

    # Primary check: reference with matching bf16 matmul precision.
    ref_bf16 = jax.block_until_ready(ref_forward(x, params, jnp.bfloat16))
    assert jnp.allclose(out, ref_bf16, atol=2e-3, rtol=2e-3), float(
        jnp.max(jnp.abs(out - ref_bf16)))

    # Sanity check: full-f32 reference (loose tolerance covers bf16 quantization).
    ref_f32 = jax.block_until_ready(ref_forward(x, params, jnp.float32))
    assert jnp.allclose(out, ref_f32, atol=0.25, rtol=0.1), float(
        jnp.max(jnp.abs(out - ref_f32)))

    print("KERNEL_OK")
</pallas_src>

<mosaic_0001>
module attributes {stable_mosaic.version = 11 : i64} {
  func.func @_down_fused_kernel(%arg0: i32, %arg1: memref<2x16x8x8xf32, #tpu.memory_space<vmem>>, %arg2: memref<36x8xbf16, #tpu.memory_space<vmem>>, %arg3: memref<1x8xf32, #tpu.memory_space<vmem>>, %arg4: memref<72x8xbf16, #tpu.memory_space<vmem>>, %arg5: memref<1x8xf32, #tpu.memory_space<vmem>>, %arg6: memref<2x8x64xf32, #tpu.memory_space<vmem>>) attributes {dimension_semantics = [#tpu.dimension_semantics<parallel>], iteration_bounds = array<i64: 1>, scalar_prefetch = 0 : i64, scratch_operands = 0 : i64, tpu.core_type = #tpu.core_type<tc>, window_params = [{transform_indices = @transform_0, window_bounds = array<i64: 2, 16, 8, 8>}, {pipeline_mode = #tpu.pipeline_mode<synchronous>, transform_indices = @transform_1, window_bounds = array<i64: 36, 8>}, {pipeline_mode = #tpu.pipeline_mode<synchronous>, transform_indices = @transform_2, window_bounds = array<i64: 1, 8>}, {pipeline_mode = #tpu.pipeline_mode<synchronous>, transform_indices = @transform_3, window_bounds = array<i64: 72, 8>}, {pipeline_mode = #tpu.pipeline_mode<synchronous>, transform_indices = @transform_4, window_bounds = array<i64: 1, 8>}, {transform_indices = @transform_5, window_bounds = array<i64: 2, 8, 64>}]} {
    %c0 = arith.constant 0 : index
    %c0_0 = arith.constant 0 : index
    %c0_1 = arith.constant 0 : index
    %c0_2 = arith.constant 0 : index
    %0 = vector.load %arg1[%c0, %c0_0, %c0_1, %c0_2] : memref<2x16x8x8xf32, #tpu.memory_space<vmem>>, vector<2x16x8x8xf32>
    %1 = vector.shape_cast %0 : vector<2x16x8x8xf32> to vector<16x2x8x8xf32>
    %cst = arith.constant dense<0xFF800000> : vector<16x8x8xf32>
    %2 = vector.multi_reduction <maximumf>, %1, %cst [1] : vector<16x2x8x8xf32> to vector<16x8x8xf32>
    %3 = vector.shape_cast %2 : vector<16x8x8xf32> to vector<2x8x8x8xf32>
    %4 = vector.extract_strided_slice %3 {offsets = [0, 0, 0, 0], sizes = [2, 8, 8, 4], strides = [1, 1, 1, 1]} : vector<2x8x8x8xf32> to vector<2x8x8x4xf32>
    %5 = vector.extract_strided_slice %3 {offsets = [0, 0, 0, 4], sizes = [2, 8, 8, 4], strides = [1, 1, 1, 1]} : vector<2x8x8x8xf32> to vector<2x8x8x4xf32>
    %6 = arith.maximumf %4, %5 : vector<2x8x8x4xf32>
    %c0_3 = arith.constant 0 : index
    %c0_4 = arith.constant 0 : index
    %7 = vector.load %arg2[%c0_3, %c0_4] : memref<36x8xbf16, #tpu.memory_space<vmem>>, vector<36x8xbf16>
    %c0_5 = arith.constant 0 : index
    %c0_6 = arith.constant 0 : index
    %8 = vector.load %arg3[%c0_5, %c0_6] : memref<1x8xf32, #tpu.memory_space<vmem>>, vector<1x8xf32>
    %cst_7 = arith.constant 0.000000e+00 : f32
    %9 = vector.broadcast %cst_7 : f32 to vector<16x1x4xf32>
    %10 = vector.shape_cast %6 : vector<2x8x8x4xf32> to vector<16x8x4xf32>
    %11 = tpu.concatenate %9, %10, %9 in 1 : vector<16x1x4xf32>, vector<16x8x4xf32>, vector<16x1x4xf32> -> vector<16x10x4xf32>
    %12 = vector.shape_cast %11 : vector<16x10x4xf32> to vector<2x80x4xf32>
    %cst_8 = arith.constant 0.000000e+00 : f32
    %13 = vector.broadcast %cst_8 : f32 to vector<2x10x4xf32>
    %cst_9 = arith.constant 0.000000e+00 : f32
    %14 = vector.broadcast %cst_9 : f32 to vector<2x20x4xf32>
    %15 = tpu.concatenate %13, %12, %14 in 1 : vector<2x10x4xf32>, vector<2x80x4xf32>, vector<2x20x4xf32> -> vector<2x110x4xf32>
    %16 = vector.extract_strided_slice %15 {offsets = [0, 0, 0], sizes = [2, 80, 4], strides = [1, 1, 1]} : vector<2x110x4xf32> to vector<2x80x4xf32>
    %17 = vector.extract_strided_slice %15 {offsets = [0, 1, 0], sizes = [2, 80, 4], strides = [1, 1, 1]} : vector<2x110x4xf32> to vector<2x80x4xf32>
    %18 = vector.extract_strided_slice %15 {offsets = [0, 2, 0], sizes = [2, 80, 4], strides = [1, 1, 1]} : vector<2x110x4xf32> to vector<2x80x4xf32>
    %19 = vector.extract_strided_slice %15 {offsets = [0, 10, 0], sizes = [2, 80, 4], strides = [1, 1, 1]} : vector<2x110x4xf32> to vector<2x80x4xf32>
    %20 = vector.extract_strided_slice %15 {offsets = [0, 11, 0], sizes = [2, 80, 4], strides = [1, 1, 1]} : vector<2x110x4xf32> to vector<2x80x4xf32>
    %21 = vector.extract_strided_slice %15 {offsets = [0, 12, 0], sizes = [2, 80, 4], strides = [1, 1, 1]} : vector<2x110x4xf32> to vector<2x80x4xf32>
    %22 = vector.extract_strided_slice %15 {offsets = [0, 20, 0], sizes = [2, 80, 4], strides = [1, 1, 1]} : vector<2x110x4xf32> to vector<2x80x4xf32>
    %23 = vector.extract_strided_slice %15 {offsets = [0, 21, 0], sizes = [2, 80, 4], strides = [1, 1, 1]} : vector<2x110x4xf32> to vector<2x80x4xf32>
    %24 = vector.extract_strided_slice %15 {offsets = [0, 22, 0], sizes = [2, 80, 4], strides = [1, 1, 1]} : vector<2x110x4xf32> to vector<2x80x4xf32>
    %25 = tpu.concatenate %16, %17, %18, %19, %20, %21, %22, %23, %24 in 2 : vector<2x80x4xf32>, vector<2x80x4xf32>, vector<2x80x4xf32>, vector<2x80x4xf32>, vector<2x80x4xf32>, vector<2x80x4xf32>, vector<2x80x4xf32>, vector<2x80x4xf32>, vector<2x80x4xf32> -> vector<2x80x36xf32>
    %26 = vector.shape_cast %25 : vector<2x80x36xf32> to vector<160x36xf32>
    %27 = arith.truncf %26 : vector<160x36xf32> to vector<160x36xbf16>
    %cst_10 = arith.constant dense<0.000000e+00> : vector<160x8xf32>
    %28 = tpu.matmul %27, %7, %cst_10 {dimension_numbers = #tpu.dot_dimension_numbers<[1], [0], [0], [1], [0, 0, 1, 1], [], []>} : vector<160x36xbf16>, vector<36x8xbf16>, vector<160x8xf32> -> vector<160x8xf32>
    %29 = vector.broadcast %8 : vector<1x8xf32> to vector<160x8xf32>
    %30 = arith.addf %28, %29 : vector<160x8xf32>
    %cst_11 = arith.constant 0.000000e+00 : f32
    %31 = vector.broadcast %cst_11 : f32 to vector<160x8xf32>
    %32 = arith.maximumf %30, %31 : vector<160x8xf32>
    %33 = vector.shape_cast %32 : vector<160x8xf32> to vector<2x8x10x8xf32>
    %34 = vector.extract_strided_slice %33 {offsets = [0, 0, 0, 0], sizes = [2, 8, 8, 8], strides = [1, 1, 1, 1]} : vector<2x8x10x8xf32> to vector<2x8x8x8xf32>
    %c0_12 = arith.constant 0 : index
    %c0_13 = arith.constant 0 : index
    %35 = vector.load %arg4[%c0_12, %c0_13] : memref<72x8xbf16, #tpu.memory_space<vmem>>, vector<72x8xbf16>
    %c0_14 = arith.constant 0 : index
    %c0_15 = arith.constant 0 : index
    %36 = vector.load %arg5[%c0_14, %c0_15] : memref<1x8xf32, #tpu.memory_space<vmem>>, vector<1x8xf32>
    %cst_16 = arith.constant 0.000000e+00 : f32
    %37 = vector.broadcast %cst_16 : f32 to vector<16x1x8xf32>
    %38 = vector.shape_cast %34 : vector<2x8x8x8xf32> to vector<16x8x8xf32>
    %39 = tpu.concatenate %37, %38, %37 in 1 : vector<16x1x8xf32>, vector<16x8x8xf32>, vector<16x1x8xf32> -> vector<16x10x8xf32>
    %40 = vector.shape_cast %39 : vector<16x10x8xf32> to vector<2x80x8xf32>
    %cst_17 = arith.constant 0.000000e+00 : f32
    %41 = vector.broadcast %cst_17 : f32 to vector<2x10x8xf32>
    %cst_18 = arith.constant 0.000000e+00 : f32
    %42 = vector.broadcast %cst_18 : f32 to vector<2x20x8xf32>
    %43 = tpu.concatenate %41, %40, %42 in 1 : vector<2x10x8xf32>, vector<2x80x8xf32>, vector<2x20x8xf32> -> vector<2x110x8xf32>
    %44 = vector.extract_strided_slice %43 {offsets = [0, 0, 0], sizes = [2, 80, 8], strides = [1, 1, 1]} : vector<2x110x8xf32> to vector<2x80x8xf32>
    %45 = vector.extract_strided_slice %43 {offsets = [0, 1, 0], sizes = [2, 80, 8], strides = [1, 1, 1]} : vector<2x110x8xf32> to vector<2x80x8xf32>
    %46 = vector.extract_strided_slice %43 {offsets = [0, 2, 0], sizes = [2, 80, 8], strides = [1, 1, 1]} : vector<2x110x8xf32> to vector<2x80x8xf32>
    %47 = vector.extract_strided_slice %43 {offsets = [0, 10, 0], sizes = [2, 80, 8], strides = [1, 1, 1]} : vector<2x110x8xf32> to vector<2x80x8xf32>
    %48 = vector.extract_strided_slice %43 {offsets = [0, 11, 0], sizes = [2, 80, 8], strides = [1, 1, 1]} : vector<2x110x8xf32> to vector<2x80x8xf32>
    %49 = vector.extract_strided_slice %43 {offsets = [0, 12, 0], sizes = [2, 80, 8], strides = [1, 1, 1]} : vector<2x110x8xf32> to vector<2x80x8xf32>
    %50 = vector.extract_strided_slice %43 {offsets = [0, 20, 0], sizes = [2, 80, 8], strides = [1, 1, 1]} : vector<2x110x8xf32> to vector<2x80x8xf32>
    %51 = vector.extract_strided_slice %43 {offsets = [0, 21, 0], sizes = [2, 80, 8], strides = [1, 1, 1]} : vector<2x110x8xf32> to vector<2x80x8xf32>
    %52 = vector.extract_strided_slice %43 {offsets = [0, 22, 0], sizes = [2, 80, 8], strides = [1, 1, 1]} : vector<2x110x8xf32> to vector<2x80x8xf32>
    %53 = tpu.concatenate %44, %45, %46, %47, %48, %49, %50, %51, %52 in 2 : vector<2x80x8xf32>, vector<2x80x8xf32>, vector<2x80x8xf32>, vector<2x80x8xf32>, vector<2x80x8xf32>, vector<2x80x8xf32>, vector<2x80x8xf32>, vector<2x80x8xf32>, vector<2x80x8xf32> -> vector<2x80x72xf32>
    %54 = vector.shape_cast %53 : vector<2x80x72xf32> to vector<160x72xf32>
    %55 = arith.truncf %54 : vector<160x72xf32> to vector<160x72xbf16>
    %cst_19 = arith.constant dense<0.000000e+00> : vector<160x8xf32>
    %56 = tpu.matmul %55, %35, %cst_19 {dimension_numbers = #tpu.dot_dimension_numbers<[1], [0], [0], [1], [0, 0, 1, 1], [], []>} : vector<160x72xbf16>, vector<72x8xbf16>, vector<160x8xf32> -> vector<160x8xf32>
    %57 = vector.broadcast %36 : vector<1x8xf32> to vector<160x8xf32>
    %58 = arith.addf %56, %57 : vector<160x8xf32>
    %cst_20 = arith.constant 0.000000e+00 : f32
    %59 = vector.broadcast %cst_20 : f32 to vector<160x8xf32>
    %60 = arith.maximumf %58, %59 : vector<160x8xf32>
    %61 = vector.shape_cast %60 : vector<160x8xf32> to vector<2x8x10x8xf32>
    %62 = vector.extract_strided_slice %61 {offsets = [0, 0, 0, 0], sizes = [2, 8, 8, 8], strides = [1, 1, 1, 1]} : vector<2x8x10x8xf32> to vector<2x8x8x8xf32>
    %63 = vector.shape_cast %62 : vector<2x8x8x8xf32> to vector<2x64x8xf32>
    %64 = vector.extract_strided_slice %63 {offsets = [0, 0, 0], sizes = [1, 64, 8], strides = [1, 1, 1]} : vector<2x64x8xf32> to vector<1x64x8xf32>
    %65 = vector.shape_cast %64 : vector<1x64x8xf32> to vector<64x8xf32>
    %66 = tpu.transpose %65, [1, 0] : vector<64x8xf32> -> vector<8x64xf32>
    %c0_21 = arith.constant 0 : index
    %c0_22 = arith.constant 0 : index
    %c0_23 = arith.constant 0 : index
    %67 = vector.load %arg6[%c0_21, %c0_22, %c0_23] : memref<2x8x64xf32, #tpu.memory_space<vmem>>, vector<1x8x64xf32>
    %68 = vector.shape_cast %67 : vector<1x8x64xf32> to vector<8x64xf32>
    %69 = vector.shape_cast %66 : vector<8x64xf32> to vector<1x8x64xf32>
    tpu.vector_store %arg6[%c0_21, %c0_22, %c0_23], %69 {strides = array<i32>} : memref<2x8x64xf32, #tpu.memory_space<vmem>>, vector<1x8x64xf32>,
    %70 = vector.extract_strided_slice %63 {offsets = [1, 0, 0], sizes = [1, 64, 8], strides = [1, 1, 1]} : vector<2x64x8xf32> to vector<1x64x8xf32>
    %71 = vector.shape_cast %70 : vector<1x64x8xf32> to vector<64x8xf32>
    %72 = tpu.transpose %71, [1, 0] : vector<64x8xf32> -> vector<8x64xf32>
    %c1 = arith.constant 1 : index
    %c0_24 = arith.constant 0 : index
    %c0_25 = arith.constant 0 : index
    %73 = vector.load %arg6[%c1, %c0_24, %c0_25] : memref<2x8x64xf32, #tpu.memory_space<vmem>>, vector<1x8x64xf32>
    %74 = vector.shape_cast %73 : vector<1x8x64xf32> to vector<8x64xf32>
    %75 = vector.shape_cast %72 : vector<8x64xf32> to vector<1x8x64xf32>
    tpu.vector_store %arg6[%c1, %c0_24, %c0_25], %75 {strides = array<i32>} : memref<2x8x64xf32, #tpu.memory_space<vmem>>, vector<1x8x64xf32>,
    return
  }
  func.func @transform_0(%arg0: i32) -> (i32, i32, i32, i32) {
    %c0_i32 = arith.constant 0 : i32
    %c0_i32_0 = arith.constant 0 : i32
    %c0_i32_1 = arith.constant 0 : i32
    %c0_i32_2 = arith.constant 0 : i32
    return %arg0, %c0_i32, %c0_i32_0, %c0_i32_1 : i32, i32, i32, i32
  }
  func.func @transform_1(%arg0: i32) -> (i32, i32) {
    %c0_i32 = arith.constant 0 : i32
    %c0_i32_0 = arith.constant 0 : i32
    %c0_i32_1 = arith.constant 0 : i32
    return %c0_i32, %c0_i32_0 : i32, i32
  }
  func.func @transform_2(%arg0: i32) -> (i32, i32) {
    %c0_i32 = arith.constant 0 : i32
    %c0_i32_0 = arith.constant 0 : i32
    %c0_i32_1 = arith.constant 0 : i32
    return %c0_i32, %c0_i32_0 : i32, i32
  }
  func.func @transform_3(%arg0: i32) -> (i32, i32) {
    %c0_i32 = arith.constant 0 : i32
    %c0_i32_0 = arith.constant 0 : i32
    %c0_i32_1 = arith.constant 0 : i32
    return %c0_i32, %c0_i32_0 : i32, i32
  }
  func.func @transform_4(%arg0: i32) -> (i32, i32) {
    %c0_i32 = arith.constant 0 : i32
    %c0_i32_0 = arith.constant 0 : i32
    %c0_i32_1 = arith.constant 0 : i32
    return %c0_i32, %c0_i32_0 : i32, i32
  }
  func.func @transform_5(%arg0: i32) -> (i32, i32, i32) {
    %c0_i32 = arith.constant 0 : i32
    %c0_i32_0 = arith.constant 0 : i32
    %c0_i32_1 = arith.constant 0 : i32
    return %arg0, %c0_i32, %c0_i32_0 : i32, i32, i32
  }
}

</mosaic_0001>

<bundles_post_ra>
// kernel: tpu_custom_call.1
= control target key start
LH: loop header
LB: loop body
LE: loop exit
PB: predicated region body
PF: predicated region fallthrough
CT: control target
= control target key end

     0   :  { %vm54_vm0 = vcmask 64512   ;;  %s6465_s17 = smov 124   ;;  %s9059_s0 = inlined_call_operand.vmem [shape: f32[2,16,8,8], index: 0, kind: input, shape index: {}]   ;;  %s9060_s1 = inlined_call_operand.vmem [shape: bf16[36,8], index: 1, kind: input, shape index: {}]   ;;  %s9061_s2 = inlined_call_operand.vmem [shape: f32[1,8], index: 2, kind: input, shape index: {}]   ;;  %s9062_s3 = inlined_call_operand.vmem [shape: bf16[72,8], index: 3, kind: input, shape index: {}]   ;;  %s9063_s4 = inlined_call_operand.vmem [shape: f32[1,8], index: 4, kind: input, shape index: {}]   ;;  %s9064_s5 = inlined_call_operand.hbm [shape: f32[2,8,64], index: 5, kind: output, shape index: {}]  }
   0x1   :  { %v26_v0 = vld [vmem:[%s9059_s0 + $0x20] sm:$0xff]  ;;  %v27_v1 = vld [vmem:[%s9059_s0 + $0x28] sm:$0xff]  ;;  %v28_v7 = vld [vmem:[%s9059_s0 + $0x30] sm:$0xff] }
   0x2   :  { %v22_v2 = vld [vmem:[%s9059_s0] sm:$0xff]  ;;  %v61_v3 = vsel %vm54_vm0, %v26_v0, -inf  ;;  %v62_v4 = vsel %vm54_vm0, %v27_v1, -inf  ;;  %v23_v5 = vld [vmem:[%s9059_s0 + $0x8] sm:$0xff]  ;;  %v29_v8 = vld [vmem:[%s9059_s0 + $0x38] sm:$0xff]  ;;  %v64_v11 = vsel %vm54_vm0, %v28_v7, -inf }
   0x3   :  { %v55_v6 = vsel %vm54_vm0, %v22_v2, -inf  ;;  %v6533_v9 = vmax.f32 %v61_v3, %v62_v4  ;;  %v56_v10 = vsel %vm54_vm0, %v23_v5, -inf  ;;  %v65_v12 = vsel %vm54_vm0, %v29_v8, -inf  ;;  %v24_v13 = vld [vmem:[%s9059_s0 + $0x10] sm:$0xff]  ;;  %v25_v14 = vld [vmem:[%s9059_s0 + $0x18] sm:$0xff]  ;;  %v30_v15 = vld [vmem:[%s9059_s0 + $0x40] sm:$0xff] }
   0x4   :  { %v6547_v16 = vmax.f32 %v55_v6, %v56_v10  ;;  %v58_v17 = vsel %vm54_vm0, %v24_v13, -inf  ;;  %v59_v18 = vsel %vm54_vm0, %v25_v14, -inf  ;;  %v31_v19 = vld [vmem:[%s9059_s0 + $0x48] sm:$0xff]  ;;  %v32_v20 = vld [vmem:[%s9059_s0 + $0x50] sm:$0xff]  ;;  %v33_v21 = vld [vmem:[%s9059_s0 + $0x58] sm:$0xff]  ;;  %v6562_v22 = vmax.f32 %v64_v11, %v65_v12 }
   0x5   :  { %123 = vrot.lane.b32.xlu1 %v6533_v9, %s6465_s17  ;;  %v6566_v23 = vmax.f32 %v58_v17, %v59_v18  ;;  %v70_v24 = vsel %vm54_vm0, %v32_v20, -inf  ;;  %v71_v25 = vsel %vm54_vm0, %v33_v21, -inf  ;;  %v67_v26 = vsel %vm54_vm0, %v30_v15, -inf  ;;  %v36_v28 = vld [vmem:[%s9059_s0 + $0x70] sm:$0xff]  ;;  %v37_v29 = vld [vmem:[%s9059_s0 + $0x78] sm:$0xff]  ;;  %v34_v30 = vld [vmem:[%s9059_s0 + $0x60] sm:$0xff] }
   0x6   :  { %119 = vrot.lane.b32.xlu0 %v6547_v16, %s6465_s17  ;;  %v68_v27 = vsel %vm54_vm0, %v31_v19, -inf  ;;  %v35_v31 = vld [vmem:[%s9059_s0 + $0x68] sm:$0xff]  ;;  %v6586_v32 = vmax.f32 %v70_v24, %v71_v25  ;;  %v76_v34 = vsel %vm54_vm0, %v36_v28, -inf  ;;  %v77_v35 = vsel %vm54_vm0, %v37_v29, -inf  ;;  %v38_v38 = vld [vmem:[%s9059_s0 + $0x80] sm:$0xff]  ;;  %v40_v39 = vld [vmem:[%s9059_s0 + $0x90] sm:$0xff] }
   0x7   :  { %v6590_v33 = vmax.f32 %v67_v26, %v68_v27  ;;  %v73_v36 = vsel %vm54_vm0, %v34_v30, -inf  ;;  %v74_v37 = vsel %vm54_vm0, %v35_v31, -inf  ;;  %v41_v40 = vld [vmem:[%s9059_s0 + $0x98] sm:$0xff]  ;;  %v39_v41 = vld [vmem:[%s9059_s0 + $0x88] sm:$0xff]  ;;  %v6610_v42 = vmax.f32 %v76_v34, %v77_v35  ;;  %v42_v43 = vld [vmem:[%s9059_s0 + $0xa0] sm:$0xff] }
   0x8   :  { %v6617_v44 = vmax.f32 %v73_v36, %v74_v37  ;;  %v79_v45 = vsel %vm54_vm0, %v38_v38, -inf  ;;  %v82_v46 = vsel %vm54_vm0, %v40_v39, -inf  ;;  %v83_v47 = vsel %vm54_vm0, %v41_v40, -inf  ;;  %v44_v48 = vld [vmem:[%s9059_s0 + $0xb0] sm:$0xff]  ;;  %v45_v50 = vld [vmem:[%s9059_s0 + $0xb8] sm:$0xff]  ;;  %v43_v51 = vld [vmem:[%s9059_s0 + $0xa8] sm:$0xff] }
   0x9   :  { %125 = vrot.lane.b32.xlu1 %v6562_v22, %s6465_s17  ;;  %v80_v49 = vsel %vm54_vm0, %v39_v41, -inf  ;;  %v85_v52 = vsel %vm54_vm0, %v42_v43, -inf  ;;  %v6635_v53 = vmax.f32 %v82_v46, %v83_v47  ;;  %v48_v54 = vld [vmem:[%s9059_s0 + $0xd0] sm:$0xff]  ;;  %v88_v56 = vsel %vm54_vm0, %v44_v48, -inf  ;;  %v49_v59 = vld [vmem:[%s9059_s0 + $0xd8] sm:$0xff] }
   0xa   :  { %121 = vrot.lane.b32.xlu0 %v6566_v23, %s6465_s17  ;;  %v6642_v55 = vmax.f32 %v79_v45, %v80_v49  ;;  %v89_v57 = vsel %vm54_vm0, %v45_v50, -inf  ;;  %v86_v58 = vsel %vm54_vm0, %v43_v51, -inf }
   0xd   :  { %129 = vrot.lane.b32.xlu1 %v6586_v32, %s6465_s17 }
   0xe   :  { %127 = vrot.lane.b32.xlu0 %v6590_v33, %s6465_s17 }
  0x11   :  { %133 = vrot.lane.b32.xlu1 %v6610_v42, %s6465_s17 }
  0x12   :  { %131 = vrot.lane.b32.xlu0 %v6617_v44, %s6465_s17 }
  0x13   :  { %10 = vsyncpa [#allocation3], 0  ;;  %v46_v60 = vld [vmem:[%s9059_s0 + $0xc0] sm:$0xff]  ;;  %v47_v61 = vld [vmem:[%s9059_s0 + $0xc8] sm:$0xff]  ;;  %v6658_v62 = vmax.f32 %v88_v56, %v89_v57  ;;  %v6662_v63 = vmax.f32 %v85_v52, %v86_v58  ;;  %v94_v0 = vsel %vm54_vm0, %v48_v54, -inf  ;;  %v95_v1 = vsel %vm54_vm0, %v49_v59, -inf }
  0x14   :  { %v91_v2 = vsel %vm54_vm0, %v46_v60, -inf  ;;  %v92_v3 = vsel %vm54_vm0, %v47_v61, -inf  ;;  %v52_v4 = vld [vmem:[%s9059_s0 + $0xf0] sm:$0xff]  ;;  %v53_v5 = vld [vmem:[%s9059_s0 + $0xf8] sm:$0xff]  ;;  %v50_v6 = vld [vmem:[%s9059_s0 + $0xe0] sm:$0xff]  ;;  %v6682_v8 = vmax.f32 %v94_v0, %v95_v1  ;;  %v306_v20 = vlaneseq  ;;  %s6470_s9 = smov 12  }
  0x15   :  { %137 = vrot.lane.b32.xlu1 %v6635_v53, %s6465_s17  ;;  %v51_v7 = vld [vmem:[%s9059_s0 + $0xe8] sm:$0xff]  ;;  %v6686_v10 = vmax.f32 %v91_v2, %v92_v3  ;;  %v100_v11 = vsel %vm54_vm0, %v52_v4, -inf  ;;  %v101_v12 = vsel %vm54_vm0, %v53_v5, -inf  ;;  %v97_v13 = vsel %vm54_vm0, %v50_v6, -inf  ;;  %s6468_s0 = smov 4   ;;  %s6471_s12 = smov 16  }
  0x16   :  { %135 = vrot.lane.b32.xlu0 %v6642_v55, %s6465_s17  ;;  %v98_v14 = vsel %vm54_vm0, %v51_v7, -inf  ;;  %v6694_v15 = vmax.f32 %v100_v11, %v101_v12  ;;  %v6466_v18 = vmov 1983009808   ;;  %v307_v24 = vshrl.u32 %v306_v20, 7  ;;  %s6472_s15 = smov 20   ;;  %s6473_s16 = smov 24  }
  0x17   :  { %v6698_v17 = vmax.f32 %v97_v13, %v98_v14  ;;  %v304_v19 = vunpack.c.l.s4 %v6466_v18  ;;  %vm237_vm1 = vcmask 1040384   ;;  %vm1060_vm2 = vcmask 1041408   ;;  %s6475_s20 = smov 32   ;;  %s6476_s23 = smov 40  }
  0x18   :  { %vm1068_vm3 = vcmask 1046528   ;;  %vm1170_vm4 = vcmask 1045504   ;;  %vm1338_vm5 = vcmask 1044480   ;;  %vm1441_vm6 = vcmask 1043456   ;;  %s6477_s24 = smov 48   ;;  %s6478_s25 = smov 56  }
  0x19   :  { %141 = vrot.lane.b32.xlu1 %v6658_v62, %s6465_s17  ;;  %v305_v21 = vunpack.c.0.s8 %v304_v19  ;;  %vm1607_vm7 = vcmask 1042432   ;;  %vm1810_vm8 = vcmask 31744   ;;  %vm1851_vm9 = vcmask 97280   ;;  %s6479_s26 = smov 64  }
  0x1a   :  { %139 = vrot.lane.b32.xlu0 %v6662_v63, %s6465_s17  ;;  %vm1872_vm10 = vcmask 130048   ;;  %vm1893_vm11 = vcmask 162816   ;;  %vm1914_vm12 = vcmask 195584   ;;  %vm1935_vm13 = vcmask 228352  }
  0x1b   :  { %v6706_v29 = vsub.s32 %v305_v21, %v307_v24  ;;  %vm1956_vm14 = vcmask 261120   ;;  %vm2008_vm15 = vcmask 293888  }
  0x1d   :  { %145 = vrot.lane.b32.xlu1 %v6682_v8, %s6465_s17 }
  0x1e   :  { %143 = vrot.lane.b32.xlu0 %v6686_v10, %s6465_s17 }
  0x21   :  { %149 = vrot.lane.b32.xlu1 %v6694_v15, %s6465_s17 }
  0x22   :  { %147 = vrot.lane.b32.xlu0 %v6698_v17, %s6465_s17  ;;  %s6469_s17 = smov 8  }
  0x77   :  { %v124_v25 = vpop.permute.xlu1 %123 }
  0x78   :  { %v169_v26 = vmax.f32 %v6533_v9, %v124_v25  ;;  %v120_v27 = vpop.permute.xlu0 %119 }
  0x79   :  { %v167_v28 = vmax.f32 %v6547_v16, %v120_v27 }
  0x7a   :  { %v207_v30 = vrot.slane %v169_v26, 7 }
  0x7b   :  { %v205_v31 = vrot.slane %v167_v28, 7  ;;  %v126_v34 = vpop.permute.xlu1 %125 }
  0x7c   :  { %v240_v35 = vsel %vm237_vm1, 0.0, %v207_v30  ;;  %v170_v36 = vmax.f32 %v6562_v22, %v126_v34  ;;  %v122_v37 = vpop.permute.xlu0 %121  ;;  %v256_v47 = vsel %vm237_vm1, %v207_v30, 0.0 }
  0x7d   :  { %v238_v38 = vsel %vm237_vm1, 0.0, %v205_v31  ;;  %v350_v39 = vcombine.high %v240_v35, %v240_v35  ;;  %v168_v46 = vmax.f32 %v6566_v23, %v122_v37  ;;  %v357_v50 = vrot.slane %v240_v35, %v6706_v29 }
  0x7e   :  { %v302_v40 = vcombine.high %v238_v38, %v238_v38  ;;  %v309_v9 = vrot.slane %v238_v38, %v6706_v29  ;;  %v208_v41 = vrot.slane %v170_v36, 7  ;;  %v373_v57 = vrot.slane %v256_v47, %v6706_v29 }
  0x7f   :  { %v364_v48 = vrot.slane %v350_v39, %v6706_v29  ;;  %v206_v54 = vrot.slane %v168_v46, 7  ;;  %v365_v56 = vcombine.high %v357_v50, %v357_v50  ;;  %v254_v58 = vsel %vm237_vm1, %v205_v31, 0.0  ;;  %v130_v20 = vpop.permute.xlu1 %129 }
  0x80   :  { %v316_v16 = vrot.slane %v302_v40, %v6706_v29  ;;  %v317_v43 = vcombine.high %v309_v9, %v309_v9  ;;  %v241_v45 = vsel %vm237_vm1, 0.0, %v208_v41  ;;  %v128_v49 = vpop.permute.xlu0 %127  ;;  %v686_v52 = vcombine.low %v309_v9, %v309_v9 }
  0x81   :  { %v374_v51 = vcombine.high %v241_v45, %v241_v45  ;;  %v171_v59 = vmax.f32 %v6590_v33, %v128_v49  ;;  %v366_v60 = vcombine.high %v364_v48, %v364_v48  ;;  %v239_v0 = vsel %vm237_vm1, 0.0, %v206_v54 }
  0x82   :  { %v687_v22 = vcombine.low %v317_v43, %v316_v16  ;;  %v318_v23 = vcombine.high %v316_v16, %v316_v16  ;;  %v381_v1 = vrot.slane %v241_v45, %v6706_v29  ;;  %v255_v3 = vsel %vm237_vm1, %v206_v54, 0.0 }
  0x83   :  { %v388_v2 = vrot.slane %v374_v51, %v6706_v29  ;;  %v326_v4 = vcombine.high %v239_v0, %v239_v0  ;;  %v325_v5 = vrot.slane %v254_v58, %v6706_v29  ;;  %v694_v6 = vrot.slane %v686_v52, %v6706_v29 }
  0x84   :  { %v701_v61 = vrot.slane %v687_v22, %v6706_v29  ;;  %v333_v7 = vrot.slane %v239_v0, %v6706_v29  ;;  %v349_v11 = vrot.slane %v255_v3, %v6706_v29  ;;  %v209_v12 = vrot.slane %v171_v59, 7  ;;  %v132_v58 = vpop.permute.xlu0 %131 }
  0x85   :  { %v340_v33 = vrot.slane %v326_v4, %v6706_v29  ;;  %v737_v13 = vcombine.low %v365_v56, %v364_v48  ;;  %v703_v18 = vcombine.low %v318_v23, %v325_v5  ;;  %v738_v21 = vcombine.low %v366_v60, %v373_v57 }
  0x86   :  { %v702_v14 = vcombine.low %v694_v6, %v701_v61  ;;  %v341_v19 = vcombine.high %v333_v7, %v333_v7  ;;  %v389_v24 = vcombine.high %v381_v1, %v381_v1  ;;  %v390_v25 = vcombine.high %v388_v2, %v388_v2 }
  0x87   :  { %v342_v26 = vcombine.high %v340_v33, %v340_v33  ;;  %v721_v30 = vcombine.low %v349_v11, %v357_v50  ;;  %v242_v31 = vsel %vm237_vm1, 0.0, %v209_v12  ;;  %v172_v34 = vmax.f32 %v6586_v32, %v130_v20 }
  0x88   :  { %v704_v27 = vcombine.low %v333_v7, %v341_v19  ;;  %v745_v35 = vrot.slane %v737_v13, %v6706_v29  ;;  %v711_v36 = vrot.slane %v703_v18, %v6706_v29  ;;  %v6736_v37 = vsel %vm1060_vm2, 0.0, %v702_v14 }
  0x89   :  { %v720_v28 = vcombine.low %v340_v33, %v342_v26  ;;  %v752_v39 = vrot.slane %v738_v21, %v6706_v29  ;;  %v754_v40 = vcombine.low %v381_v1, %v389_v24  ;;  %v755_v9 = vcombine.low %v388_v2, %v390_v25 }
  0x8a   :  { %v718_v38 = vrot.slane %v704_v27, %v6706_v29  ;;  %v398_v45 = vcombine.high %v242_v31, %v242_v31  ;;  %v405_v32 = vrot.slane %v242_v31, %v6706_v29  ;;  %v6467_v46 = vmov 0.0  }
  0x8b   :  { %v728_v16 = vrot.slane %v720_v28, %v6706_v29  ;;  %v6745_v47 = vrot.slane %v6467_v46, 1  ;;  %v257_v48 = vsel %vm237_vm1, %v208_v41, 0.0  ;;  %v735_v22 = vrot.slane %v721_v30, %v6706_v29 }
  0x8c   :  { %v6741_v43 = vcombine.low %v711_v36, %v718_v38  ;;  %v210_v49 = vrot.slane %v172_v34, 7  ;;  %v1070_v50 = vrot.slane %v6736_v37, 1  ;;  %v6751_v52 = vcombine.low %v745_v35, %v752_v39 }
  0x8d   :  { %v762_v54 = vrot.slane %v754_v40, %v6706_v29  ;;  %v769_v56 = vrot.slane %v755_v9, %v6706_v29  ;;  %v6755_v57 = vcombine.low %v728_v16, %v735_v22  ;;  %v397_v59 = vrot.slane %v257_v48, %v6706_v29 }
  0x8e   :  { %v1072_v51 = vrot.slane %v6741_v43, 1  ;;  %v6759_v41 = vrot.slane %v398_v45, %v6706_v29  ;;  %v413_v60 = vcombine.high %v405_v32, %v405_v32  ;;  %v243_v23 = vsel %vm237_vm1, 0.0, %v210_v49 }
  0x8f   :  { %v1071_v61 = vsel %vm1068_vm3, %v6745_v47, %v1070_v50  ;;  %v173_v1 = vmax.f32 %v6617_v44, %v132_v58  ;;  %v6767_v3 = vrot.slane %v6467_v46, 2  ;;  %v6769_v4 = vcombine.low %v762_v54, %v769_v56 }
  0x90   :  { %v1073_v0 = vsel %vm1068_vm3, %v1070_v50, %v1072_v51  ;;  %v6772_v5 = vsel %vm237_vm1, %v209_v12, 0.0  ;;  %v1074_v6 = vrot.slane %v6755_v57, 1  ;;  %v1076_v7 = vrot.slane %v6751_v52, 1 }
  0x91   :  { %v5631_v2 = vpack.i.bf16 %v1073_v0, %v1071_v61  ;;  %v771_v33 = vcombine.low %v397_v59, %v405_v32  ;;  %v772_v11 = vcombine.low %v413_v60, %v6759_v41  ;;  %v422_v13 = vcombine.high %v243_v23, %v243_v23  ;;  %v134_v32 = vpop.permute.xlu1 %133 }
  0x92   :  { %v1172_v44 = vrot.slane %v6736_v37, 2  ;;  %v1075_v14 = vsel %vm1068_vm3, %v1072_v51, %v1074_v6  ;;  %v1077_v12 = vsel %vm1068_vm3, %v1074_v6, %v1076_v7  ;;  %v1174_v18 = vrot.slane %v6741_v43, 2 }
  0x93   :  { %5632 = vrot.lane.b32.xlu0 %v5631_v2, %s6468_s0  ;;  %v1176_v19 = vrot.slane %v6755_v57, 2  ;;  %v259_v20 = vsel %vm237_vm1, %v210_v49, 0.0  ;;  %v429_v21 = vrot.slane %v243_v23, %v6706_v29  ;;  %v211_v24 = vrot.slane %v173_v1, 7 }
  0x94   :  { %v5636_v25 = vpack.i.bf16 %v1077_v12, %v1075_v14  ;;  %v1173_v26 = vsel %vm1170_vm4, %v6767_v3, %v1172_v44  ;;  %v1175_v27 = vsel %vm1170_vm4, %v1172_v44, %v1174_v18  ;;  %v1178_v30 = vrot.slane %v6751_v52, 2 }
  0x95   :  { %v1177_v28 = vsel %vm1170_vm4, %v1174_v18, %v1176_v19  ;;  %v421_v31 = vrot.slane %v6772_v5, %v6706_v29  ;;  %v436_v34 = vrot.slane %v422_v13, %v6706_v29  ;;  %v5641_v35 = vpack.i.bf16 %v1175_v27, %v1173_v26 }
  0x96   :  { %5637 = vrot.lane.b32.xlu1 %v5636_v25, %s6468_s0  ;;  %v1180_v36 = vrot.slane %v6769_v4, 2  ;;  %v779_v38 = vrot.slane %v771_v33, %v6706_v29  ;;  %v786_v39 = vrot.slane %v772_v11, %v6706_v29  ;;  %v445_v40 = vrot.slane %v259_v20, %v6706_v29 }
  0x97   :  { %v1179_v9 = vsel %vm1170_vm4, %v1176_v19, %v1178_v30  ;;  %v414_v16 = vcombine.high %v6759_v41, %v6759_v41  ;;  %5642 = vrot.lane.b32.xlu0 %v5641_v35, %s6469_s17  ;;  %v1340_v48 = vrot.slane %v6741_v43, 3  ;;  %v1342_v22 = vrot.slane %v6755_v57, 3 }
  0x98   :  { %v5646_v45 = vpack.i.bf16 %v1179_v9, %v1177_v28  ;;  %v437_v49 = vcombine.high %v429_v21, %v429_v21  ;;  %v244_v50 = vsel %vm237_vm1, 0.0, %v211_v24  ;;  %v6810_v51 = vsel %vm1170_vm4, %v1178_v30, %v1180_v36 }
  0x99   :  { %v1344_v54 = vrot.slane %v6751_v52, 3  ;;  %v438_v56 = vcombine.high %v436_v34, %v436_v34  ;;  %v5651_v58 = vpack.i.bf16 %v1177_v28, %v1175_v27  ;;  %v1339_v59 = vrot.slane %v6736_v37, 3  ;;  %v6431_v27 = vld [vmem:[%s9060_s1] sm:$0xff]  }
  0x9a   :  { %5647 = vrot.lane.b32.xlu1 %v5646_v45, %s6469_s17  ;;  %v1346_v41 = vrot.slane %v6769_v4, 3  ;;  %v6816_v60 = vcombine.low %v779_v38, %v786_v39  ;;  %v446_v23 = vcombine.high %v244_v50, %v244_v50  ;;  %v174_v61 = vmax.f32 %v6610_v42, %v134_v32  ;;  %5556 = vmatprep.subr.bf16.mxu0 %v6431_v27 }
  0x9b   :  { %v1343_v0 = vsel %vm1338_vm5, %v1340_v48, %v1342_v22  ;;  %v453_v1 = vrot.slane %v244_v50, %v6706_v29  ;;  %5652 = vrot.lane.b32.xlu0 %v5651_v58, %s6470_s9  ;;  %v5656_v2 = vpack.i.bf16 %v6810_v51, %v1179_v9  ;;  %v1341_v5 = vsel %vm1338_vm5, %v1339_v59, %v1340_v48 }
  0x9c   :  { %v1443_v6 = vrot.slane %v6741_v43, 4  ;;  %v1345_v33 = vsel %vm1338_vm5, %v1342_v22, %v1344_v54  ;;  %v1347_v42 = vsel %vm1338_vm5, %v1344_v54, %v1346_v41  ;;  %v1445_v11 = vrot.slane %v6755_v57, 4  ;;  %5557 = vmatpush3.bf16.msra.mxu0 %v6431_v27 }
  0x9d   :  { %v1447_v13 = vrot.slane %v6751_v52, 4  ;;  %v788_v44 = vcombine.low %v414_v16, %v421_v31  ;;  %v789_v14 = vcombine.low %v429_v21, %v437_v49  ;;  %v5661_v12 = vpack.i.bf16 %v1343_v0, %v1341_v5  ;;  %v6432_v49 = vld [vmem:[%s9060_s1 + $0x8] sm:$0xff]  }
  0x9e   :  { %5657 = vrot.lane.b32.xlu1 %v5656_v2, %s6470_s9  ;;  %v1449_v18 = vrot.slane %v6769_v4, 4  ;;  %v260_v19 = vsel %vm237_vm1, %v211_v24, 0.0  ;;  %v6834_v20 = vrot.slane %v174_v61, 7  ;;  %v1442_v25 = vrot.slane %v6736_v37, 4  ;;  %5558 = vmatprep.subr.bf16.mxu0 %v6432_v49 }
  0x9f   :  { %v1446_v26 = vsel %vm1441_vm6, %v1443_v6, %v1445_v11  ;;  %v805_v28 = vcombine.low %v436_v34, %v438_v56  ;;  %v460_v21 = vrot.slane %v446_v23, %v6706_v29  ;;  %v806_v30 = vcombine.low %v445_v40, %v453_v1  ;;  %5662 = vrot.lane.b32.xlu0 %v5661_v12, %s6471_s12 }
  0xa0   :  { %v5666_v31 = vpack.i.bf16 %v1347_v42, %v1345_v33  ;;  %v1444_v24 = vsel %vm1441_vm6, %v1442_v25, %v1443_v6  ;;  %v1448_v35 = vsel %vm1441_vm6, %v1445_v11, %v1447_v13  ;;  %v1450_v38 = vsel %vm1441_vm6, %v1447_v13, %v1449_v18  ;;  %5559 = vmatpush3.bf16.msra.mxu0 %v6432_v49 }
  0xa1   :  { %v1451_v39 = vrot.slane %v6816_v60, 4  ;;  %v796_v9 = vrot.slane %v788_v44, %v6706_v29  ;;  %v803_v34 = vrot.slane %v789_v14, %v6706_v29  ;;  %v461_v16 = vcombine.high %v453_v1, %v453_v1 }
  0xa2   :  { %5667 = vrot.lane.b32.xlu1 %v5666_v31, %s6471_s12  ;;  %v5671_v40 = vpack.i.bf16 %v1446_v26, %v1444_v24  ;;  %v469_v45 = vrot.slane %v260_v19, %v6706_v29  ;;  %v245_v32 = vsel %vm237_vm1, 0.0, %v6834_v20  ;;  %v1609_v48 = vrot.slane %v6755_v57, 5 }
  0xa3   :  { %v1611_v22 = vrot.slane %v6751_v52, 5  ;;  %v813_v50 = vrot.slane %v805_v28, %v6706_v29  ;;  %v462_v54 = vcombine.high %v460_v21, %v460_v21  ;;  %v820_v56 = vrot.slane %v806_v30, %v6706_v29  ;;  %v6890_v28 = vld [vmem:[%s9060_s1 + $0x10] ss:$0 sps:$4 sm:$0x33]   ;;  %s6474_s1 = smov 28  }
  0xa4   :  { %5672 = vrot.lane.b32.xlu0 %v5671_v40, %s6472_s15  ;;  %v5676_v58 = vpack.i.bf16 %v1450_v38, %v1448_v35  ;;  %v6864_v59 = vsel %vm1441_vm6, %v1449_v18, %v1451_v39  ;;  %v1608_v23 = vrot.slane %v6741_v43, 5  ;;  %v1613_v61 = vrot.slane %v6769_v4, 5  ;;  %5612 = vmatprep.subr.msk.bf16.mxu0 %vm1060_vm2, %v6890_v28 }
  0xa5   :  { %v1615_v0 = vrot.slane %v6816_v60, 5  ;;  %v6869_v1 = vcombine.low %v796_v9, %v803_v34  ;;  %v822_v2 = vcombine.low %v461_v16, %v460_v21  ;;  %v470_v5 = vcombine.high %v245_v32, %v245_v32  ;;  %v136_v16 = vpop.permute.xlu0 %135 }
  0xa6   :  { %5677 = vrot.lane.b32.xlu1 %v5676_v58, %s6472_s15  ;;  %v5681_v6 = vpack.i.bf16 %v1448_v35, %v1446_v26  ;;  %v1610_v33 = vsel %vm1607_vm7, %v1608_v23, %v1609_v48  ;;  %v1612_v42 = vsel %vm1607_vm7, %v1609_v48, %v1611_v22  ;;  %v1710_v11 = vrot.slane %v6755_v57, 6 }
  0xa7   :  { %v1712_v13 = vrot.slane %v6751_v52, 6  ;;  %v6876_v44 = vcombine.low %v813_v50, %v820_v56  ;;  %v823_v14 = vcombine.low %v462_v54, %v469_v45  ;;  %v5686_v12 = vpack.i.bf16 %v6864_v59, %v1450_v38 }
  0xa8   :  { %5682 = vrot.lane.b32.xlu0 %v5681_v6, %s6473_s16  ;;  %v1078_v18 = vrot.slane %v6769_v4, 1  ;;  %v1614_v19 = vsel %vm1607_vm7, %v1611_v22, %v1613_v61  ;;  %v1616_v25 = vsel %vm1607_vm7, %v1613_v61, %v1615_v0  ;;  %v1709_v26 = vrot.slane %v6741_v43, 6  ;;  %v138_v22 = vpop.permute.xlu1 %137 }
  0xa9   :  { %v1080_v27 = vrot.slane %v6816_v60, 1  ;;  %v830_v21 = vrot.slane %v822_v2, %v6706_v29  ;;  %v477_v30 = vrot.slane %v245_v32, %v6706_v29  ;;  %v484_v31 = vrot.slane %v470_v5, %v6706_v29 }
  0xaa   :  { %5687 = vrot.lane.b32.xlu1 %v5686_v12, %s6473_s16  ;;  %v5691_v24 = vpack.i.bf16 %v1612_v42, %v1610_v33  ;;  %v1711_v35 = vsel %vm1060_vm2, %v1709_v26, %v1710_v11  ;;  %v1713_v38 = vsel %vm1060_vm2, %v1710_v11, %v1712_v13  ;;  %v1714_v9 = vrot.slane %v6769_v4, 6 }
  0xab   :  { %v1716_v34 = vrot.slane %v6816_v60, 6  ;;  %v837_v40 = vrot.slane %v823_v14, %v6706_v29  ;;  %v5696_v45 = vpack.i.bf16 %v1616_v25, %v1614_v19  ;;  %v1079_v32 = vsel %vm1068_vm3, %v1076_v7, %v1078_v18 }
  0xac   :  { %5692 = vrot.lane.b32.xlu0 %v5691_v24, %s6474_s1  ;;  %v175_v48 = vmax.f32 %v6642_v55, %v136_v16  ;;  %v1081_v49 = vsel %vm1068_vm3, %v1078_v18, %v1080_v27  ;;  %v1082_v50 = vrot.slane %v6869_v1, 1  ;;  %v1084_v54 = vrot.slane %v6876_v44, 1 }
  0xad   :  { %v176_v56 = vmax.f32 %v6635_v53, %v138_v22  ;;  %v485_v58 = vcombine.high %v477_v30, %v477_v30  ;;  %v5701_v23 = vpack.i.bf16 %v1713_v38, %v1711_v35  ;;  %v486_v2 = vcombine.high %v484_v31, %v484_v31 }
  0xae   :  { %5697 = vrot.lane.b32.xlu1 %v5696_v45, %s6474_s1  ;;  %v213_v61 = vrot.slane %v175_v48, 7  ;;  %v1715_v5 = vsel %vm1060_vm2, %v1712_v13, %v1714_v9  ;;  %v1717_v55 = vsel %vm1060_vm2, %v1714_v9, %v1716_v34  ;;  %v1182_v7 = vrot.slane %v6816_v60, 2 }
  0xaf   :  { %v6918_v6 = vcombine.low %v830_v21, %v837_v40  ;;  %v5706_v53 = vpack.i.bf16 %v1081_v49, %v1079_v32  ;;  %v1184_v33 = vrot.slane %v6869_v1, 2  ;;  %v214_v42 = vrot.slane %v176_v56, 7  ;;  %v140_v40 = vpop.permute.xlu0 %139 }
  0xb0   :  { %5702 = vrot.lane.b32.xlu0 %v5701_v23, %s6475_s20  ;;  %v1083_v11 = vsel %vm1068_vm3, %v1080_v27, %v1082_v50  ;;  %v1085_v13 = vsel %vm1068_vm3, %v1082_v50, %v1084_v54  ;;  %v1186_v14 = vrot.slane %v6876_v44, 2  ;;  %v246_v12 = vsel %vm237_vm1, 0.0, %v213_v61 }
  0xb1   :  { %v5711_v18 = vpack.i.bf16 %v1717_v55, %v1715_v5  ;;  %v839_v19 = vcombine.low %v477_v30, %v485_v58  ;;  %v840_v25 = vcombine.low %v484_v31, %v486_v2  ;;  %v1183_v26 = vsel %vm1170_vm4, %v1180_v36, %v1182_v7  ;;  %v142_v58 = vpop.permute.xlu1 %141 }
  0xb2   :  { %5707 = vrot.lane.b32.xlu1 %v5706_v53, %s6468_s0  ;;  %v5716_v27 = vpack.i.bf16 %v1085_v13, %v1083_v11  ;;  %v494_v21 = vcombine.high %v246_v12, %v246_v12  ;;  %v501_v24 = vrot.slane %v246_v12, %v6706_v29  ;;  %v247_v35 = vsel %vm237_vm1, 0.0, %v214_v42 }
  0xb3   :  { %v1185_v38 = vsel %vm1170_vm4, %v1182_v7, %v1184_v33  ;;  %v1187_v9 = vsel %vm1170_vm4, %v1184_v33, %v1186_v14  ;;  %v1188_v16 = vrot.slane %v6918_v6, 2  ;;  %v5721_v30 = vpack.i.bf16 %v1183_v26, %v6810_v51 }
  0xb4   :  { %5712 = vrot.lane.b32.xlu0 %v5711_v18, %s6475_s20  ;;  %v1348_v36 = vrot.slane %v6816_v60, 3  ;;  %v1350_v31 = vrot.slane %v6869_v1, 3  ;;  %v261_v45 = vsel %vm237_vm1, %v6834_v20, 0.0  ;;  %v847_v32 = vrot.slane %v839_v19, %v6706_v29 }
  0xb5   :  { %v854_v48 = vrot.slane %v840_v25, %v6706_v29  ;;  %v525_v22 = vrot.slane %v247_v35, %v6706_v29  ;;  %v5726_v49 = vpack.i.bf16 %v1187_v9, %v1185_v38  ;;  %v5731_v50 = vpack.i.bf16 %v1185_v38, %v1183_v26 }
  0xb6   :  { %5717 = vrot.lane.b32.xlu1 %v5716_v27, %s6468_s0  ;;  %v508_v51 = vrot.slane %v494_v21, %v6706_v29  ;;  %v509_v56 = vcombine.high %v501_v24, %v501_v24  ;;  %v262_v23 = vsel %vm237_vm1, %v213_v61, 0.0  ;;  %v6953_v20 = vsel %vm1170_vm4, %v1186_v14, %v1188_v16 }
  0xb7   :  { %v177_v2 = vmax.f32 %v6662_v63, %v140_v40  ;;  %v1352_v5 = vrot.slane %v6876_v44, 3  ;;  %v863_v55 = vcombine.low %v501_v24, %v501_v24  ;;  %v518_v7 = vcombine.high %v247_v35, %v247_v35 }
  0xb8   :  { %5722 = vrot.lane.b32.xlu0 %v5721_v30, %s6469_s17  ;;  %v1349_v53 = vsel %vm1338_vm5, %v1346_v41, %v1348_v36  ;;  %v1351_v33 = vsel %vm1338_vm5, %v1348_v36, %v1350_v31  ;;  %v493_v61 = vrot.slane %v261_v45, %v6706_v29  ;;  %v6963_v11 = vcombine.low %v847_v32, %v854_v48 }
  0xb9   :  { %v533_v13 = vcombine.high %v525_v22, %v525_v22  ;;  %v178_v14 = vmax.f32 %v6658_v62, %v142_v58  ;;  %v510_v63 = vcombine.high %v508_v51, %v508_v51  ;;  %v517_v12 = vrot.slane %v262_v23, %v6706_v29 }
  0xba   :  { %5727 = vrot.lane.b32.xlu1 %v5726_v49, %s6469_s17  ;;  %v864_v18 = vcombine.low %v509_v56, %v508_v51  ;;  %v5736_v19 = vpack.i.bf16 %v6953_v20, %v1187_v9  ;;  %v263_v25 = vsel %vm237_vm1, %v214_v42, 0.0  ;;  %v5741_v41 = vpack.i.bf16 %v1351_v33, %v1349_v53 }
  0xbb   :  { %v1353_v26 = vsel %vm1338_vm5, %v1350_v31, %v1352_v5  ;;  %v1354_v27 = vrot.slane %v6918_v6, 3  ;;  %v871_v21 = vrot.slane %v863_v55, %v6706_v29  ;;  %v532_v24 = vrot.slane %v518_v7, %v6706_v29 }
  0xbc   :  { %5732 = vrot.lane.b32.xlu0 %v5731_v50, %s6470_s9  ;;  %v215_v62 = vrot.slane %v177_v2, 7  ;;  %v1453_v35 = vrot.slane %v6869_v1, 4  ;;  %v881_v38 = vcombine.low %v525_v22, %v533_v13  ;;  %v1455_v42 = vrot.slane %v6876_v44, 4 }
  0xbd   :  { %v1355_v9 = vsel %vm1338_vm5, %v1352_v5, %v1354_v27  ;;  %v1457_v30 = vrot.slane %v6918_v6, 4  ;;  %v878_v36 = vrot.slane %v864_v18, %v6706_v29  ;;  %v880_v31 = vcombine.low %v510_v63, %v517_v12 }
  0xbe   :  { %5737 = vrot.lane.b32.xlu1 %v5736_v19, %s6470_s9  ;;  %v5746_v40 = vpack.i.bf16 %v1355_v9, %v1353_v26  ;;  %v1454_v45 = vsel %vm1441_vm6, %v1451_v39, %v1453_v35  ;;  %v862_v32 = vrot.slane %v493_v61, %v6706_v29  ;;  %v541_v48 = vrot.slane %v263_v25, %v6706_v29 }
  0xbf   :  { %v1458_v22 = vsel %vm1441_vm6, %v1455_v42, %v1457_v30  ;;  %v534_v49 = vcombine.high %v532_v24, %v532_v24  ;;  %v248_v50 = vsel %vm237_vm1, 0.0, %v215_v62  ;;  %v6990_v51 = vrot.slane %v178_v14, 7 }
  0xc0   :  { %5742 = vrot.lane.b32.xlu0 %v5741_v41, %s6471_s12  ;;  %v5751_v56 = vpack.i.bf16 %v1454_v45, %v6864_v59  ;;  %v1456_v58 = vsel %vm1441_vm6, %v1453_v35, %v1455_v42  ;;  %v1459_v23 = vrot.slane %v6963_v11, 4  ;;  %v1617_v39 = vrot.slane %v6869_v1, 5  ;;  %v144_v41 = vpop.permute.xlu0 %143 }
  0xc1   :  { %v1619_v2 = vrot.slane %v6876_v44, 5  ;;  %v879_v5 = vcombine.low %v871_v21, %v878_v36  ;;  %v888_v55 = vrot.slane %v880_v31, %v6706_v29  ;;  %v895_v7 = vrot.slane %v881_v38, %v6706_v29 }
  0xc2   :  { %5747 = vrot.lane.b32.xlu1 %v5746_v40, %s6471_s12  ;;  %v5756_v53 = vpack.i.bf16 %v1458_v22, %v1456_v58  ;;  %v7002_v33 = vsel %vm237_vm1, %v215_v62, 0.0  ;;  %v7007_v59 = vsel %vm1441_vm6, %v1457_v30, %v1459_v23  ;;  %v1621_v61 = vrot.slane %v6918_v6, 5 }
  0xc3   :  { %v1623_v13 = vrot.slane %v6963_v11, 5  ;;  %v897_v14 = vcombine.low %v532_v24, %v534_v49  ;;  %v542_v63 = vcombine.high %v248_v50, %v248_v50  ;;  %v549_v12 = vrot.slane %v248_v50, %v6706_v29 }
  0xc4   :  { %5752 = vrot.lane.b32.xlu0 %v5751_v56, %s6472_s15  ;;  %v5761_v18 = vpack.i.bf16 %v1456_v58, %v1454_v45  ;;  %v1618_v19 = vsel %vm1607_vm7, %v1615_v0, %v1617_v39  ;;  %v1620_v25 = vsel %vm1607_vm7, %v1617_v39, %v1619_v2  ;;  %v1718_v26 = vrot.slane %v6869_v1, 6 }
  0xc5   :  { %v1720_v21 = vrot.slane %v6876_v44, 6  ;;  %v7020_v62 = vsel %vm1060_vm2, 0.0, %v879_v5  ;;  %v7022_v24 = vcombine.low %v888_v55, %v895_v7  ;;  %v898_v35 = vcombine.low %v541_v48, %v549_v12 }
  0xc6   :  { %5757 = vrot.lane.b32.xlu1 %v5756_v53, %s6472_s15  ;;  %v5766_v38 = vpack.i.bf16 %v7007_v59, %v1458_v22  ;;  %v1622_v9 = vsel %vm1607_vm7, %v1619_v2, %v1621_v61  ;;  %v1624_v0 = vsel %vm1607_vm7, %v1621_v61, %v1623_v13  ;;  %v1086_v42 = vrot.slane %v6918_v6, 1 }
  0xc7   :  { %v1088_v30 = vrot.slane %v6963_v11, 1  ;;  %v249_v36 = vsel %vm237_vm1, 0.0, %v6990_v51  ;;  %v5771_v31 = vpack.i.bf16 %v1620_v25, %v1618_v19  ;;  %v179_v40 = vmax.f32 %v6686_v10, %v144_v41 }
  0xc8   :  { %5762 = vrot.lane.b32.xlu0 %v5761_v18, %s6473_s16  ;;  %v1722_v45 = vrot.slane %v6918_v6, 6  ;;  %v556_v48 = vrot.slane %v542_v63, %v6706_v29  ;;  %v557_v22 = vcombine.high %v549_v12, %v549_v12  ;;  %v1719_v49 = vsel %vm1060_vm2, %v1716_v34, %v1718_v26 }
  0xc9   :  { %v1721_v50 = vsel %vm1060_vm2, %v1718_v26, %v1720_v21  ;;  %v5776_v56 = vpack.i.bf16 %v1624_v0, %v1622_v9  ;;  %v1724_v58 = vrot.slane %v6963_v11, 6  ;;  %v1090_v39 = vrot.slane %v7020_v62, 1 }
  0xca   :  { %5767 = vrot.lane.b32.xlu1 %v5766_v38, %s6473_s16  ;;  %v1092_v10 = vrot.slane %v7022_v24, 1  ;;  %v905_v2 = vrot.slane %v897_v14, %v6706_v29  ;;  %v912_v5 = vrot.slane %v898_v35, %v6706_v29  ;;  %v1087_v55 = vsel %vm1068_vm3, %v1084_v54, %v1086_v42 }
  0xcb   :  { %v1089_v34 = vsel %vm1068_vm3, %v1086_v42, %v1088_v30  ;;  %v7053_v7 = vsel %vm1060_vm2, %v862_v32, 0.0  ;;  %v217_v53 = vrot.slane %v179_v40, 7  ;;  %v5781_v61 = vpack.i.bf16 %v1721_v50, %v1719_v49 }
  0xcc   :  { %5772 = vrot.lane.b32.xlu0 %v5771_v31, %s6474_s1  ;;  %v1723_v63 = vsel %vm1060_vm2, %v1720_v21, %v1722_v45  ;;  %v1725_v14 = vsel %vm1060_vm2, %v1722_v45, %v1724_v58  ;;  %v1091_v12 = vsel %vm1068_vm3, %v6745_v47, %v1090_v39  ;;  %v1093_v54 = vsel %vm1068_vm3, %v1090_v39, %v1092_v10 }
  0xcd   :  { %v1190_v32 = vrot.slane %v6963_v11, 2  ;;  %v558_v18 = vcombine.high %v556_v48, %v556_v48  ;;  %v565_v19 = vrot.slane %v7002_v33, %v6706_v29  ;;  %v566_v25 = vcombine.high %v249_v36, %v249_v36 }
  0xce   :  { %5777 = vrot.lane.b32.xlu1 %v5776_v56, %s6474_s1  ;;  %v5786_v41 = vpack.i.bf16 %v1089_v34, %v1087_v55  ;;  %v7069_v26 = vcombine.low %v905_v2, %v912_v5  ;;  %v914_v21 = vcombine.low %v557_v22, %v556_v48  ;;  %v1192_v35 = vrot.slane %v7020_v62, 2 }
  0xcf   :  { %v1194_v38 = vrot.slane %v7022_v24, 2  ;;  %v573_v9 = vrot.slane %v249_v36, %v6706_v29  ;;  %v5791_v0 = vpack.i.bf16 %v1725_v14, %v1723_v63  ;;  %v5796_v42 = vpack.i.bf16 %v1093_v54, %v1091_v12  ;;  %v146_v36 = vpop.permute.xlu1 %145 }
  0xd0   :  { %5782 = vrot.lane.b32.xlu0 %v5781_v61, %s6475_s20  ;;  %v250_v30 = vsel %vm237_vm1, 0.0, %v217_v53  ;;  %v1191_v33 = vsel %vm1170_vm4, %v1188_v16, %v1190_v32  ;;  %v1274_v31 = vrot.slane %v7053_v7, 2  ;;  %v915_v40 = vcombine.low %v558_v18, %v565_v19 }
  0xd1   :  { %v265_v45 = vsel %vm237_vm1, %v6990_v51, 0.0  ;;  %v580_v48 = vrot.slane %v566_v25, %v6706_v29  ;;  %v7085_v22 = vrot.slane %v6467_v46, 4  ;;  %v922_v49 = vrot.slane %v914_v21, %v6706_v29 }
  0xd2   :  { %5787 = vrot.lane.b32.xlu1 %v5786_v41, %s6468_s0  ;;  %v1193_v50 = vsel %vm1170_vm4, %v6767_v3, %v1192_v35  ;;  %v1195_v16 = vsel %vm1170_vm4, %v1192_v35, %v1194_v38  ;;  %v1196_v56 = vrot.slane %v7069_v26, 2  ;;  %v581_v39 = vcombine.high %v573_v9, %v573_v9 }
  0xd3   :  { %v590_v2 = vcombine.high %v250_v30, %v250_v30  ;;  %v597_v51 = vrot.slane %v250_v30, %v6706_v29  ;;  %v5801_v5 = vpack.i.bf16 %v1191_v33, %v6953_v20  ;;  %v1275_v55 = vsel %vm1170_vm4, %v1190_v32, %v1274_v31 }
  0xd4   :  { %5792 = vrot.lane.b32.xlu0 %v5791_v0, %s6475_s20  ;;  %v180_v34 = vmax.f32 %v6682_v8, %v146_v36  ;;  %v1356_v61 = vrot.slane %v6963_v11, 3  ;;  %v1358_v63 = vrot.slane %v7053_v7, 3  ;;  %v929_v14 = vrot.slane %v915_v40, %v6706_v29 }
  0xd5   :  { %v5806_v12 = vpack.i.bf16 %v1195_v16, %v1193_v50  ;;  %v1360_v54 = vrot.slane %v7020_v62, 3  ;;  %v1361_v18 = vrot.slane %v7022_v24, 3  ;;  %v582_v19 = vcombine.high %v580_v48, %v580_v48 }
  0xd6   :  { %5797 = vrot.lane.b32.xlu1 %v5796_v42, %s6468_s0  ;;  %v589_v20 = vrot.slane %v265_v45, %v6706_v29  ;;  %v7107_v8 = vsel %vm1170_vm4, %v1194_v38, %v1196_v56  ;;  %v1363_v32 = vrot.slane %v7069_v26, 3  ;;  %v266_v25 = vsel %vm237_vm1, %v217_v53, 0.0 }
  0xd7   :  { %v604_v41 = vrot.slane %v590_v2, %v6706_v29  ;;  %v605_v21 = vcombine.high %v597_v51, %v597_v51  ;;  %v5811_v35 = vpack.i.bf16 %v1275_v55, %v1191_v33  ;;  %v7113_v0 = vrot.slane %v180_v34, 7 }
  0xd8   :  { %5802 = vrot.lane.b32.xlu0 %v5801_v5, %s6469_s17  ;;  %v1357_v42 = vsel %vm1338_vm5, %v1354_v27, %v1356_v61  ;;  %v1359_v30 = vsel %vm1338_vm5, %v1356_v61, %v1358_v63  ;;  %v1461_v38 = vrot.slane %v7053_v7, 4  ;;  %v7120_v31 = vcombine.low %v922_v49, %v929_v14  ;;  %v148_v63 = vpop.permute.xlu0 %147 }
  0xd9   :  { %v931_v40 = vcombine.low %v573_v9, %v581_v39  ;;  %v5816_v53 = vpack.i.bf16 %v7107_v8, %v1195_v16  ;;  %v1362_v45 = vsel %vm1338_vm5, %v1360_v54, %v1361_v18  ;;  %v1364_v33 = vsel %vm1338_vm5, %v1361_v18, %v1363_v32 }
  0xda   :  { %5807 = vrot.lane.b32.xlu1 %v5806_v12, %s6469_s17  ;;  %v1463_v36 = vrot.slane %v7020_v62, 4  ;;  %v1464_v27 = vrot.slane %v7022_v24, 4  ;;  %v1466_v50 = vrot.slane %v7069_v26, 4  ;;  %v932_v2 = vcombine.low %v580_v48, %v582_v19 }
  0xdb   :  { %v613_v49 = vrot.slane %v266_v25, %v6706_v29  ;;  %v948_v9 = vcombine.low %v589_v20, %v597_v51  ;;  %v5821_v39 = vpack.i.bf16 %v1359_v30, %v1357_v42  ;;  %v606_v16 = vcombine.high %v604_v41, %v604_v41 }
  0xdc   :  { %5812 = vrot.lane.b32.xlu0 %v5811_v35, %s6470_s9  ;;  %v949_v5 = vcombine.low %v605_v21, %v604_v41  ;;  %v251_v55 = vsel %vm237_vm1, 0.0, %v7113_v0  ;;  %v1462_v34 = vsel %vm1441_vm6, %v1459_v23, %v1461_v38  ;;  %v5826_v48 = vpack.i.bf16 %v1364_v33, %v1362_v45  ;;  %v150_v35 = vpop.permute.xlu1 %149 }
  0xdd   :  { %v621_v61 = vrot.slane %v251_v55, %v6706_v29  ;;  %v1465_v51 = vsel %vm1441_vm6, %v1463_v36, %v1464_v27  ;;  %v1467_v14 = vsel %vm1441_vm6, %v1464_v27, %v1466_v50  ;;  %v1468_v12 = vrot.slane %v7120_v31, 4 }
  0xde   :  { %5817 = vrot.lane.b32.xlu1 %v5816_v53, %s6470_s9  ;;  %v7144_v54 = vrot.slane %v6467_v46, 5  ;;  %v939_v18 = vrot.slane %v931_v40, %v6706_v29  ;;  %v946_v19 = vrot.slane %v932_v2, %v6706_v29  ;;  %v956_v23 = vrot.slane %v948_v9, %v6706_v29 }
  0xdf   :  { %v5831_v20 = vpack.i.bf16 %v1462_v34, %v7007_v59  ;;  %v963_v25 = vrot.slane %v949_v5, %v6706_v29  ;;  %v965_v41 = vcombine.low %v606_v16, %v613_v49  ;;  %v1545_v21 = vsel %vm1441_vm6, %v1461_v38, %v7085_v22 }
  0xe0   :  { %5822 = vrot.lane.b32.xlu0 %v5821_v39, %s6471_s12  ;;  %v1625_v42 = vrot.slane %v7053_v7, 5  ;;  %v629_v30 = vcombine.high %v621_v61, %v621_v61  ;;  %v181_v40 = vmax.f32 %v6698_v17, %v148_v63  ;;  %v5836_v53 = vpack.i.bf16 %v1467_v14, %v1465_v51 }
  0xe1   :  { %v7158_v45 = vrot.slane %v6467_v46, 6  ;;  %v7163_v59 = vsel %vm1441_vm6, %v1466_v50, %v1468_v12  ;;  %v1629_v33 = vrot.slane %v7022_v24, 5  ;;  %v1630_v38 = vrot.slane %v7069_v26, 5 }
  0xe2   :  { %5827 = vrot.lane.b32.xlu1 %v5826_v48, %s6471_s12  ;;  %v1632_v36 = vrot.slane %v7120_v31, 5  ;;  %v7168_v27 = vcombine.low %v939_v18, %v946_v19  ;;  %v5841_v17 = vpack.i.bf16 %v1545_v21, %v1462_v34  ;;  %v182_v2 = vmax.f32 %v6694_v15, %v150_v35 }
  0xe3   :  { %v1726_v46 = vrot.slane %v7053_v7, 6  ;;  %v7173_v49 = vcombine.low %v956_v23, %v963_v25  ;;  %v973_v50 = vrot.slane %v965_v41, %v6706_v29  ;;  %v1626_v9 = vsel %vm1607_vm7, %v1623_v13, %v1625_v42 }
  0xe4   :  { %5832 = vrot.lane.b32.xlu0 %v5831_v20, %s6472_s15  ;;  %v1628_v39 = vsel %vm1607_vm7, %v1625_v42, %v7144_v54  ;;  %v614_v16 = vcombine.high %v251_v55, %v251_v55  ;;  %v966_v5 = vcombine.low %v621_v61, %v629_v30  ;;  %v219_v48 = vrot.slane %v181_v40, 7 }
  0xe5   :  { %v5846_v15 = vpack.i.bf16 %v7163_v59, %v1467_v14  ;;  %v1631_v7 = vsel %vm1607_vm7, %v1629_v33, %v1630_v38  ;;  %v1633_v34 = vsel %vm1607_vm7, %v1630_v38, %v1632_v36  ;;  %v1094_v63 = vrot.slane %v7069_v26, 1 }
  0xe6   :  { %5837 = vrot.lane.b32.xlu1 %v5836_v53, %s6472_s15  ;;  %v1096_v13 = vrot.slane %v7120_v31, 1  ;;  %v267_v51 = vsel %vm237_vm1, %v7113_v0, 0.0  ;;  %v7191_v55 = vrot.slane %v182_v2, 7  ;;  %v5851_v61 = vpack.i.bf16 %v1628_v39, %v1626_v9 }
  0xe7   :  { %v1727_v14 = vsel %vm1060_vm2, %v1724_v58, %v1726_v46  ;;  %v1729_v18 = vsel %vm1060_vm2, %v1726_v46, %v7158_v45  ;;  %v1730_v19 = vrot.slane %v7022_v24, 6  ;;  %v1731_v23 = vrot.slane %v7069_v26, 6 }
  0xe8   :  { %5842 = vrot.lane.b32.xlu0 %v5841_v17, %s6473_s16  ;;  %v1733_v20 = vrot.slane %v7120_v31, 6  ;;  %v628_v0 = vrot.slane %v614_v16, %v6706_v29  ;;  %v980_v25 = vrot.slane %v966_v5, %v6706_v29  ;;  %v252_v41 = vsel %vm237_vm1, 0.0, %v219_v48 }
  0xe9   :  { %v5856_v11 = vpack.i.bf16 %v1633_v34, %v1631_v7  ;;  %v1095_v58 = vsel %vm1068_vm3, %v1092_v10, %v1094_v63  ;;  %v1097_v21 = vsel %vm1068_vm3, %v1094_v63, %v1096_v13  ;;  %v1098_v35 = vrot.slane %v7168_v27, 1 }
  0xea   :  { %5847 = vrot.lane.b32.xlu1 %v5846_v15, %s6473_s16  ;;  %v1100_v42 = vrot.slane %v7173_v49, 1  ;;  %v637_v30 = vrot.slane %v267_v51, %v6706_v29  ;;  %v5861_v40 = vpack.i.bf16 %v1729_v18, %v1727_v14  ;;  %v253_v53 = vsel %vm237_vm1, 0.0, %v7191_v55 }
  0xeb   :  { %v1732_v33 = vsel %vm1060_vm2, %v1730_v19, %v1731_v23  ;;  %v1734_v10 = vsel %vm1060_vm2, %v1731_v23, %v1733_v20  ;;  %v1198_v38 = vrot.slane %v7120_v31, 2  ;;  %v630_v17 = vcombine.high %v628_v0, %v628_v0 }
  0xec   :  { %5852 = vrot.lane.b32.xlu0 %v5851_v61, %s6474_s1  ;;  %v638_v2 = vcombine.high %v252_v41, %v252_v41  ;;  %v645_v46 = vrot.slane %v252_v41, %v6706_v29  ;;  %v5866_v9 = vpack.i.bf16 %v1097_v21, %v1095_v58  ;;  %v7223_v39 = vcombine.low %v973_v50, %v980_v25 }
  0xed   :  { %v1099_v16 = vsel %vm1068_vm3, %v1096_v13, %v1098_v35  ;;  %v1101_v5 = vsel %vm1068_vm3, %v1098_v35, %v1100_v42  ;;  %v1202_v15 = vrot.slane %v7173_v49, 2  ;;  %v662_v7 = vcombine.high %v253_v53, %v253_v53 }
  0xee   :  { %5857 = vrot.lane.b32.xlu1 %v5856_v11, %s6474_s1  ;;  %v5871_v34 = vpack.i.bf16 %v1734_v10, %v1732_v33  ;;  %v1199_v63 = vsel %vm1170_vm4, %v1196_v56, %v1198_v38  ;;  %v1200_v51 = vrot.slane %v7168_v27, 2  ;;  %v982_v50 = vcombine.low %v628_v0, %v630_v17 }
  0xef   :  { %v268_v61 = vsel %vm237_vm1, %v219_v48, 0.0  ;;  %v983_v13 = vcombine.low %v637_v30, %v645_v46  ;;  %v5876_v14 = vpack.i.bf16 %v1101_v5, %v1099_v16  ;;  %v652_v18 = vrot.slane %v638_v2, %v6706_v29 }
  0xf0   :  { %5862 = vrot.lane.b32.xlu0 %v5861_v40, %s6475_s20  ;;  %v1203_v19 = vsel %vm1170_vm4, %v1200_v51, %v1202_v15  ;;  %v1204_v23 = vrot.slane %v7223_v39, 2  ;;  %v669_v25 = vrot.slane %v253_v53, %v6706_v29  ;;  %v676_v41 = vrot.slane %v662_v7, %v6706_v29 }
  0xf1   :  { %v5881_v56 = vpack.i.bf16 %v1199_v63, %v7107_v8  ;;  %v661_v48 = vrot.slane %v268_v61, %v6706_v29  ;;  %v1201_v0 = vsel %vm1170_vm4, %v1198_v38, %v1200_v51  ;;  %v1365_v11 = vrot.slane %v7120_v31, 3 }
  0xf2   :  { %5867 = vrot.lane.b32.xlu1 %v5866_v9, %s6468_s0  ;;  %v1367_v58 = vrot.slane %v7168_v27, 3  ;;  %v990_v21 = vrot.slane %v982_v50, %v6706_v29  ;;  %v653_v35 = vcombine.high %v645_v46, %v645_v46  ;;  %v997_v30 = vrot.slane %v983_v13, %v6706_v29 }
  0xf3   :  { %v5886_v40 = vpack.i.bf16 %v1203_v19, %v1201_v0  ;;  %v654_v53 = vcombine.high %v652_v18, %v652_v18  ;;  %v7254_v8 = vsel %vm1170_vm4, %v1202_v15, %v1204_v23  ;;  %v1369_v33 = vrot.slane %v7173_v49, 3 }
  0xf4   :  { %5872 = vrot.lane.b32.xlu0 %v5871_v34, %s6475_s20  ;;  %v1371_v10 = vrot.slane %v7223_v39, 3  ;;  %v677_v38 = vcombine.high %v669_v25, %v669_v25  ;;  %v678_v17 = vcombine.high %v676_v41, %v676_v41  ;;  %v5891_v2 = vpack.i.bf16 %v1201_v0, %v1199_v63 }
  0xf5   :  { %v1366_v46 = vsel %vm1338_vm5, %v1363_v32, %v1365_v11  ;;  %v1368_v9 = vsel %vm1338_vm5, %v1365_v11, %v1367_v58  ;;  %v1470_v16 = vrot.slane %v7168_v27, 4  ;;  %v7264_v5 = vcombine.low %v990_v21, %v997_v30 }
  0xf6   :  { %5877 = vrot.lane.b32.xlu1 %v5876_v14, %s6468_s0  ;;  %v999_v15 = vcombine.low %v653_v35, %v652_v18  ;;  %v5896_v7 = vpack.i.bf16 %v7254_v8, %v1203_v19  ;;  %v1000_v34 = vcombine.low %v654_v53, %v661_v48  ;;  %v1370_v51 = vsel %vm1338_vm5, %v1367_v58, %v1369_v33 }
  0xf7   :  { %v1372_v63 = vsel %vm1338_vm5, %v1369_v33, %v1371_v10  ;;  %v1474_v32 = vrot.slane %v7223_v39, 4  ;;  %v269_v50 = vsel %vm237_vm1, %v7191_v55, 0.0  ;;  %v1016_v61 = vcombine.low %v669_v25, %v677_v38 }
  0xf8   :  { %5882 = vrot.lane.b32.xlu0 %v5881_v56, %s6469_s17  ;;  %v1017_v13 = vcombine.low %v676_v41, %v678_v17  ;;  %v5901_v14 = vpack.i.bf16 %v1368_v9, %v1366_v46  ;;  %v1471_v18 = vsel %vm1441_vm6, %v1468_v12, %v1470_v16  ;;  %v1472_v19 = vrot.slane %v7173_v49, 4 }
  0xf9   :  { %v5906_v56 = vpack.i.bf16 %v1372_v63, %v1370_v51  ;;  %v1476_v48 = vrot.slane %v7264_v5, 4  ;;  %v1007_v0 = vrot.slane %v999_v15, %v6706_v29  ;;  %v1014_v55 = vrot.slane %v1000_v34, %v6706_v29 }
  0xfa   :  { %5887 = vrot.lane.b32.xlu1 %v5886_v40, %s6469_s17  ;;  %v685_v25 = vrot.slane %v269_v50, %v6706_v29  ;;  %v1475_v41 = vsel %vm1441_vm6, %v1472_v19, %v1474_v32  ;;  %v1024_v11 = vrot.slane %v1016_v61, %v6706_v29  ;;  %v1031_v58 = vrot.slane %v1017_v13, %v6706_v29 }
  0xfb   :  { %v5911_v12 = vpack.i.bf16 %v1471_v18, %v7163_v59  ;;  %v1634_v21 = vrot.slane %v7168_v27, 5  ;;  %v1473_v35 = vsel %vm1441_vm6, %v1470_v16, %v1472_v19  ;;  %v1636_v30 = vrot.slane %v7173_v49, 5 }
  0xfc   :  { %5892 = vrot.lane.b32.xlu0 %v5891_v2, %s6470_s9  ;;  %v1638_v40 = vrot.slane %v7223_v39, 5  ;;  %v1640_v53 = vrot.slane %v7264_v5, 5  ;;  %v5916_v33 = vpack.i.bf16 %v1475_v41, %v1473_v35  ;;  %v7301_v17 = vsel %vm1441_vm6, %v1474_v32, %v1476_v48 }
  0xfd   :  { %v1039_v59 = vrot.slane %v685_v25, %v6706_v29  ;;  %v1735_v2 = vrot.slane %v7168_v27, 6  ;;  %v1737_v46 = vrot.slane %v7173_v49, 6  ;;  %v7306_v9 = vcombine.low %v1007_v0, %v1014_v55 }
  0xfe   :  { %5897 = vrot.lane.b32.xlu1 %v5896_v7, %s6470_s9  ;;  %v7308_v16 = vcombine.low %v1024_v11, %v1031_v58  ;;  %v5921_v15 = vpack.i.bf16 %v1473_v35, %v1471_v18  ;;  %v1635_v7 = vsel %vm1607_vm7, %v1632_v36, %v1634_v21  ;;  %v5926_v34 = vpack.i.bf16 %v7301_v17, %v1475_v41 }
  0xff   :  { %v1637_v51 = vsel %vm1607_vm7, %v1634_v21, %v1636_v30  ;;  %v1639_v63 = vsel %vm1607_vm7, %v1636_v30, %v1638_v40  ;;  %v1641_v32 = vsel %vm1607_vm7, %v1638_v40, %v1640_v53  ;;  %v1102_v61 = vrot.slane %v7223_v39, 1 }
 0x100   :  { %5902 = vrot.lane.b32.xlu0 %v5901_v14, %s6471_s12  ;;  %v1104_v13 = vrot.slane %v7264_v5, 1  ;;  %v1739_v36 = vrot.slane %v7223_v39, 6  ;;  %v2040_v14 = vsel %vm1060_vm2, %v6890_v28, 0  ;;  %v1736_v18 = vsel %vm1060_vm2, %v1733_v20, %v1735_v2 }
 0x101   :  { %v1738_v19 = vsel %vm1060_vm2, %v1735_v2, %v1737_v46  ;;  %v1106_v0 = vrot.slane %v7306_v9, 1  ;;  %5561 = vmatpush3.bf16.msra.mxu0 %v2040_v14  ;;  %v5931_v25 = vpack.i.bf16 %v1637_v51, %v1635_v7  ;;  %v1108_v41 = vrot.slane %v7308_v16, 1 }
 0x102   :  { %5907 = vrot.lane.b32.xlu1 %v5906_v56, %s6471_s12  ;;  %v9065_v56 = vrot.slane %v7264_v5, 6  ;;  %v7339_v28 = vsel %vm1060_vm2, %v1039_v59, 0.0  ;;  %v5936_v11 = vpack.i.bf16 %v1641_v32, %v1639_v63  ;;  %v5941_v20 = vpack.i.bf16 %v1738_v19, %v1736_v18 }
 0x103   :  { %v1105_v21 = vsel %vm1068_vm3, %v1102_v61, %v1104_v13  ;;  %v1740_v35 = vsel %vm1060_vm2, %v1737_v46, %v1739_v36  ;;  %v1107_v40 = vsel %vm1068_vm3, %v1104_v13, %v1106_v0  ;;  %v1208_v59 = vrot.slane %v7306_v9, 2 }
 0x104   :  { %5912 = vrot.lane.b32.xlu0 %v5911_v12, %s6472_s15  ;;  %v1103_v12 = vsel %vm1068_vm3, %v1100_v42, %v1102_v61  ;;  %v1742_v30 = vsel %vm1060_vm2, %v1739_v36, %v9065_v56  ;;  %v1109_v42 = vsel %vm1068_vm3, %v1106_v0, %v1108_v41  ;;  %v1276_v46 = vrot.slane %v7339_v28, 2 }
 0x105   :  { %v7296_v38 = vpop.permute.xlu0 %5632  ;;  %v1373_v7 = vrot.slane %v7264_v5, 3  ;;  %v1377_v51 = vrot.slane %v7308_v16, 3  ;;  %v1379_v63 = vrot.slane %v7339_v28, 3  ;;  %v5946_v61 = vpack.i.bf16 %v1105_v21, %v1103_v12 }
 0x106   :  { %5917 = vrot.lane.b32.xlu1 %v5916_v33, %s6472_s15  ;;  %v1206_v33 = vrot.slane %v7264_v5, 2  ;;  %v1478_v13 = vrot.slane %v7306_v9, 4  ;;  %v1480_v36 = vrot.slane %v7308_v16, 4  ;;  %v1482_v14 = vrot.slane %v7339_v28, 4 }
 0x107   :  { %v5951_v18 = vpack.i.bf16 %v1742_v30, %v1740_v35  ;;  %v5956_v19 = vpack.i.bf16 %v1109_v42, %v1107_v40  ;;  %v5635_v41 = vunpack.i.h.bf16 %v7296_v38  ;;  %v7390_v21 = vsel %vm1338_vm5, %v1371_v10, %v1373_v7 }
 0x108   :  { %v7320_v50 = vpop.permute.xlu1 %5637  ;;  %5922 = vrot.lane.b32.xlu0 %v5921_v15, %s6473_s16  ;;  %v1210_v15 = vrot.slane %v7308_v16, 2  ;;  %v7374_v0 = vsel %vm1170_vm4, %v1204_v23, %v1206_v33  ;;  %v5634_v23 = vunpack.i.l.bf16 %v7296_v38  ;;  %v7400_v40 = vsel %vm1338_vm5, %v1377_v51, %v1379_v63 }
 0x109   :  { %v7335_v55 = vpop.permute.xlu0 %5642  ;;  %v5961_v10 = vpack.i.bf16 %v7374_v0, %v7254_v8  ;;  %v7410_v38 = vsel %vm1441_vm6, %v1476_v48, %v1478_v13  ;;  %v7416_v42 = vsel %vm1441_vm6, %v1480_v36, %v1482_v14  ;;  %v9066_v8 = vrot.slane %v7306_v9, 5 }
 0x10a   :  { %5927 = vrot.lane.b32.xlu1 %v5926_v34, %s6473_s16  ;;  %v1375_v34 = vrot.slane %v7306_v9, 3  ;;  %v7385_v12 = vsel %vm1170_vm4, %v1210_v15, %v1276_v46  ;;  %v1812_v48 = vsel %vm1810_vm8, %v6736_v37, %v5635_v41  ;;  %v1644_v41 = vrot.slane %v7308_v16, 5 }
 0x10c   :  { %v7341_v58 = vpop.permute.xlu1 %5647  ;;  %5932 = vrot.lane.b32.xlu0 %v5931_v25, %s6474_s1  ;;  %v1209_v25 = vsel %vm1170_vm4, %v1206_v33, %v1208_v59  ;;  %v7394_v35 = vsel %vm1338_vm5, %v1373_v7, %v1375_v34  ;;  %v7397_v30 = vsel %vm1338_vm5, %v1375_v34, %v1377_v51  ;;  %v7422_v7 = vsel %vm1441_vm6, %v1482_v14, %v7085_v22 }
 0x10d   :  { %v7356_v2 = vpop.permute.xlu0 %5652  ;;  %v5971_v46 = vpack.i.bf16 %v1209_v25, %v7374_v0  ;;  %v5981_v63 = vpack.i.bf16 %v7394_v35, %v7390_v21  ;;  %v5649_v35 = vunpack.i.l.bf16 %v7341_v58 }
 0x10e   :  { %5937 = vrot.lane.b32.xlu1 %v5936_v11, %s6474_s1 }
 0x110   :  { %v7365_v32 = vpop.permute.xlu1 %5657  ;;  %5942 = vrot.lane.b32.xlu0 %v5941_v20, %s6475_s20  ;;  %v7382_v20 = vsel %vm1170_vm4, %v1208_v59, %v1210_v15  ;;  %v7413_v59 = vsel %vm1441_vm6, %v1478_v13, %v1480_v36  ;;  %v1811_v13 = vsel %vm1810_vm8, 0.0, %v5634_v23  ;;  %v5991_v36 = vpack.i.bf16 %v7410_v38, %v7301_v17 }
 0x111   :  { %v7379_v11 = vpop.permute.xlu0 %5662  ;;  %v5966_v15 = vpack.i.bf16 %v7382_v20, %v1209_v25  ;;  %v5976_v51 = vpack.i.bf16 %v7385_v12, %v7382_v20  ;;  %v5996_v37 = vpack.i.bf16 %v7416_v42, %v7413_v59  ;;  %v5645_v20 = vunpack.i.h.bf16 %v7335_v55 }
 0x112   :  { %5947 = vrot.lane.b32.xlu1 %v5946_v61, %s6468_s0  ;;  %v5986_v61 = vpack.i.bf16 %v7400_v40, %v7397_v30  ;;  %v5644_v12 = vunpack.i.l.bf16 %v7335_v55  ;;  %v5650_v23 = vunpack.i.h.bf16 %v7341_v58  ;;  %v5655_v30 = vunpack.i.h.bf16 %v7356_v2 }
 0x113   :  { %v5654_v40 = vunpack.i.l.bf16 %v7356_v2  ;;  %v5659_v56 = vunpack.i.l.bf16 %v7365_v32  ;;  %v5665_v2 = vunpack.i.h.bf16 %v7379_v11 }
 0x114   :  { %v7402_v33 = vpop.permute.xlu1 %5667  ;;  %5952 = vrot.lane.b32.xlu0 %v5951_v18, %s6475_s20  ;;  %v5640_v18 = vunpack.i.h.bf16 %v7320_v50 }
 0x116   :  { %5957 = vrot.lane.b32.xlu1 %v5956_v19, %s6468_s0  ;;  %v7428_v34 = vpop.permute.xlu0 %5672  ;;  %v5639_v19 = vunpack.i.l.bf16 %v7320_v50  ;;  %v7458_v50 = vsel %vm1607_vm7, %v1640_v53, %v9066_v8  ;;  %v1814_v21 = vsel %vm1810_vm8, %v6755_v57, %v5640_v18  ;;  %v1831_v8 = vsel %vm54_vm0, %v1811_v13, %v5644_v12 }
 0x117   :  { %v5675_v53 = vunpack.i.h.bf16 %v7428_v34  ;;  %v5674_v25 = vunpack.i.l.bf16 %v7428_v34  ;;  %v1852_v18 = vsel %vm1851_vm9, %v1831_v8, %v5654_v40  ;;  %v5670_v8 = vunpack.i.h.bf16 %v7402_v33 }
 0x118   :  { %v7445_v0 = vpop.permute.xlu1 %5677  ;;  %5962 = vrot.lane.b32.xlu0 %v5961_v10, %s6469_s17  ;;  %v5660_v10 = vunpack.i.h.bf16 %v7365_v32  ;;  %v1813_v58 = vsel %vm1810_vm8, %v6741_v43, %v5639_v19  ;;  %v1832_v32 = vsel %vm54_vm0, %v1812_v48, %v5645_v20  ;;  %v1834_v43 = vsel %vm54_vm0, %v1814_v21, %v5650_v23 }
 0x119   :  { %v1833_v57 = vsel %vm54_vm0, %v1813_v58, %v5649_v35  ;;  %v5679_v40 = vunpack.i.l.bf16 %v7445_v0 }
 0x11a   :  { %5967 = vrot.lane.b32.xlu1 %v5966_v15, %s6469_s17  ;;  %v5683_v55 = vpop.permute.xlu0 %5682  ;;  %v5664_v15 = vunpack.i.l.bf16 %v7379_v11  ;;  %v1853_v11 = vsel %vm1851_vm9, %v1832_v32, %v5655_v30  ;;  %v1854_v13 = vsel %vm1851_vm9, %v1833_v57, %v5659_v56  ;;  %v1855_v48 = vsel %vm1851_vm9, %v1834_v43, %v5660_v10 }
 0x11b   :  { %v5685_v19 = vunpack.i.h.bf16 %v5683_v55  ;;  %v5684_v20 = vunpack.i.l.bf16 %v5683_v55  ;;  %v1874_v12 = vsel %vm1872_vm10, %v1853_v11, %v5665_v2  ;;  %v5680_v30 = vunpack.i.h.bf16 %v7445_v0 }
 0x11c   :  { %v5688_v14 = vpop.permute.xlu1 %5687  ;;  %5972 = vrot.lane.b32.xlu0 %v5971_v46, %s6470_s9  ;;  %v1873_v34 = vsel %vm1872_vm10, %v1852_v18, %v5664_v15  ;;  %v1895_v56 = vsel %vm1893_vm11, %v1874_v12, %v5675_v53  ;;  %v1876_v53 = vsel %vm1872_vm10, %v1855_v48, %v5670_v8 }
 0x11d   :  { %v1894_v23 = vsel %vm1893_vm11, %v1873_v34, %v5674_v25  ;;  %v5690_v55 = vunpack.i.h.bf16 %v5688_v14  ;;  %v5689_v10 = vunpack.i.l.bf16 %v5688_v14  ;;  %v1916_v57 = vsel %vm1914_vm12, %v1895_v56, %v5685_v19 }
 0x11e   :  { %5977 = vrot.lane.b32.xlu1 %v5976_v51, %s6470_s9  ;;  %v5693_v46 = vpop.permute.xlu0 %5692  ;;  %v5669_v51 = vunpack.i.l.bf16 %v7402_v33  ;;  %v1897_v19 = vsel %vm1893_vm11, %v1876_v53, %v5680_v30 }
 0x11f   :  { %v5695_v35 = vunpack.i.h.bf16 %v5693_v46  ;;  %v5694_v58 = vunpack.i.l.bf16 %v5693_v46 }
 0x120   :  { %v5698_v21 = vpop.permute.xlu1 %5697  ;;  %5982 = vrot.lane.b32.xlu0 %v5981_v63, %s6471_s12  ;;  %v1915_v63 = vsel %vm1914_vm12, %v1894_v23, %v5684_v20  ;;  %v1918_v20 = vsel %vm1914_vm12, %v1897_v19, %v5690_v55 }
 0x121   :  { %v5700_v33 = vunpack.i.h.bf16 %v5698_v21  ;;  %v5699_v43 = vunpack.i.l.bf16 %v5698_v21  ;;  %v1936_v0 = vsel %vm1935_vm13, %v1915_v63, %v5694_v58  ;;  %v1937_v14 = vsel %vm1935_vm13, %v1916_v57, %v5695_v35 }
 0x122   :  { %5987 = vrot.lane.b32.xlu1 %v5986_v61, %s6471_s12  ;;  %v5703_v2 = vpop.permute.xlu0 %5702  ;;  %v1875_v61 = vsel %vm1872_vm10, %v1854_v13, %v5669_v51  ;;  %v9067_v13 = vrot.slane %v7306_v9, 5  ;;  %v9069_v51 = vrot.slane %v7339_v28, 5  ;;  %v9074_v57 = vrot.slane %v7308_v16, 6 }
 0x123   :  { %v5705_v15 = vunpack.i.h.bf16 %v5703_v2  ;;  %v5704_v32 = vunpack.i.l.bf16 %v5703_v2  ;;  %v1896_v46 = vsel %vm1893_vm11, %v1875_v61, %v5679_v40  ;;  %v1939_v21 = vsel %vm1935_vm13, %v1918_v20, %v5700_v33 }
 0x124   :  { %v5708_v25 = vpop.permute.xlu1 %5707  ;;  %5992 = vrot.lane.b32.xlu0 %v5991_v36, %s6472_s15  ;;  %v1645_v48 = vsel %vm1607_vm7, %v9067_v13, %v1644_v41  ;;  %v1917_v34 = vsel %vm1914_vm12, %v1896_v46, %v5689_v10  ;;  %v1647_v23 = vsel %vm1607_vm7, %v1644_v41, %v9069_v51  ;;  %v9070_v40 = vmov %v9069_v51 }
 0x125   :  { %v1957_v18 = vsel %vm1956_vm14, %v1936_v0, %v5704_v32  ;;  %v1958_v11 = vsel %vm1956_vm14, %v1937_v14, %v5705_v15  ;;  %v1938_v58 = vsel %vm1935_vm13, %v1917_v34, %v5699_v43  ;;  %v1648_v55 = vsel %vm1607_vm7, %v9070_v40, %v7144_v54 }
 0x126   :  { %5997 = vrot.lane.b32.xlu1 %v5996_v37, %s6472_s15  ;;  %v5713_v17 = vpop.permute.xlu0 %5712  ;;  %v1977_v36 = vpack.c.bf16 %v1958_v11, %v1957_v18  ;;  %v9068_v37 = vpack.i.bf16 %v7413_v59, %v7410_v38  ;;  %v1747_v38 = vrot.slane %v7339_v28, 6  ;;  %v9071_v59 = vpack.i.bf16 %v7422_v7, %v7416_v42 }
 0x127   :  { %v5715_v12 = vunpack.i.h.bf16 %v5713_v17  ;;  %v5714_v35 = vunpack.i.l.bf16 %v5713_v17  ;;  %v6011_v2 = vpack.i.bf16 %v1645_v48, %v7458_v50  ;;  %v9072_v15 = vrot.slane %v7306_v9, 6 }
 0x128   :  { %v5718_v8 = vpop.permute.xlu1 %5717  ;;  %6002 = vrot.lane.b32.xlu0 %v9068_v37, %s6473_s16  ;;  %5562 = vmatprep.mubr.msk.bf16.mxu0 %vm2008_vm15, %v1977_v36  ;;  %v9073_v32 = vrot.slane %v7264_v5, 6  ;;  %v6016_v42 = vpack.i.bf16 %v1648_v55, %v1647_v23  ;;  %v9076_v7 = vmov %v9074_v57  ;;  %v1749_v0 = vsel %vm1060_vm2, %v1747_v38, %v7158_v45 }
 0x129   :  { %v1960_v56 = vsel %vm1956_vm14, %v1939_v21, %v5715_v12  ;;  %v1959_v30 = vsel %vm1956_vm14, %v1938_v58, %v5714_v35  ;;  %v9075_v33 = vmov %v9072_v15  ;;  %v1748_v50 = vsel %vm1060_vm2, %v9076_v7, %v1747_v38 }
 0x12a   :  { %6007 = vrot.lane.b32.xlu1 %v9071_v59, %s6473_s16  ;;  %v5723_v10 = vpop.permute.xlu0 %5722  ;;  %v1978_v41 = vpack.c.bf16 %v1960_v56, %v1959_v30  ;;  %v1744_v63 = vsel %vm1060_vm2, %v9073_v32, %v9072_v15  ;;  %v1746_v28 = vsel %vm1060_vm2, %v9075_v33, %v9074_v57  ;;  %v6026_v18 = vpack.i.bf16 %v1749_v0, %v1748_v50 }
 0x12b   :  { %v6021_v61 = vpack.i.bf16 %v1746_v28, %v1744_v63  ;;  %v5710_v19 = vunpack.i.h.bf16 %v5708_v25  ;;  %v5709_v17 = vunpack.i.l.bf16 %v5708_v25  ;;  %v5720_v36 = vunpack.i.h.bf16 %v5718_v8 }
 0x12c   :  { %v5728_v43 = vpop.permute.xlu1 %5727  ;;  %6012 = vrot.lane.b32.xlu0 %v6011_v2, %s6474_s1  ;;  %5563 = vmatmul.mubr.msk.bf16.vlgmr.msra.gmra.mrb[0].mxu0 %vm2008_vm15, %v1978_v41  ;;  %v5719_v13 = vunpack.i.l.bf16 %v5718_v8  ;;  %v5725_v20 = vunpack.i.h.bf16 %v5723_v10  ;;  %v5724_v34 = vunpack.i.l.bf16 %v5723_v10 }
 0x12d   :  { %v1816_v12 = vsel %vm1810_vm8, %v6769_v4, %v5710_v19  ;;  %v1815_v35 = vsel %vm1810_vm8, %v6751_v52, %v5709_v17  ;;  %v5730_v58 = vunpack.i.h.bf16 %v5728_v43  ;;  %v5729_v21 = vunpack.i.l.bf16 %v5728_v43 }
 0x12e   :  { %6017 = vrot.lane.b32.xlu1 %v6016_v42, %s6474_s1  ;;  %v5733_v14 = vpop.permute.xlu0 %5732  ;;  %v1818_v25 = vsel %vm1810_vm8, %v6869_v1, %v5720_v36  ;;  %v1817_v8 = vsel %vm1810_vm8, %v6816_v60, %v5719_v13  ;;  %v1836_v4 = vsel %vm54_vm0, %v1816_v12, %v5725_v20  ;;  %v1835_v52 = vsel %vm54_vm0, %v1815_v35, %v5724_v34 }
 0x12f   :  { %v5735_v51 = vunpack.i.h.bf16 %v5733_v14  ;;  %v5734_v23 = vunpack.i.l.bf16 %v5733_v14  ;;  %v1837_v2 = vsel %vm54_vm0, %v1817_v8, %v5729_v21  ;;  %v1838_v41 = vsel %vm54_vm0, %v1818_v25, %v5730_v58 }
 0x130   :  { %v5738_v53 = vpop.permute.xlu1 %5737  ;;  %6022 = vrot.lane.b32.xlu0 %v6021_v61, %s6475_s20 }
 0x131   :  { %v5740_v56 = vunpack.i.h.bf16 %v5738_v53  ;;  %v5739_v30 = vunpack.i.l.bf16 %v5738_v53  ;;  %v1856_v1 = vsel %vm1851_vm9, %v1835_v52, %v5734_v23  ;;  %v1857_v60 = vsel %vm1851_vm9, %v1836_v4, %v5735_v51 }
 0x132   :  { %6027 = vrot.lane.b32.xlu1 %v6026_v18, %s6475_s20  ;;  %v5743_v11 = vpop.permute.xlu0 %5742 }
 0x133   :  { %v5745_v40 = vunpack.i.h.bf16 %v5743_v11  ;;  %v5744_v55 = vunpack.i.l.bf16 %v5743_v11  ;;  %v1859_v57 = vsel %vm1851_vm9, %v1838_v41, %v5740_v56  ;;  %v1858_v33 = vsel %vm1851_vm9, %v1837_v2, %v5739_v30 }
 0x134   :  { %v5748_v46 = vpop.permute.xlu1 %5747 }
 0x135   :  { %v1877_v28 = vsel %vm1872_vm10, %v1856_v1, %v5744_v55  ;;  %v1878_v43 = vsel %vm1872_vm10, %v1857_v60, %v5745_v40  ;;  %v5750_v0 = vunpack.i.h.bf16 %v5748_v46  ;;  %v5749_v14 = vunpack.i.l.bf16 %v5748_v46 }
 0x136   :  { %v5753_v16 = vpop.permute.xlu0 %5752 }
 0x137   :  { %v5755_v59 = vunpack.i.h.bf16 %v5753_v16  ;;  %v5754_v10 = vunpack.i.l.bf16 %v5753_v16 }
 0x138   :  { %v5758_v48 = vpop.permute.xlu1 %5757 }
 0x139   :  { %v1898_v61 = vsel %vm1893_vm11, %v1877_v28, %v5754_v10  ;;  %v1899_v53 = vsel %vm1893_vm11, %v1878_v43, %v5755_v59  ;;  %v5760_v18 = vunpack.i.h.bf16 %v5758_v48  ;;  %v5759_v11 = vunpack.i.l.bf16 %v5758_v48 }
 0x13a   :  { %v5763_v37 = vpop.permute.xlu0 %5762  ;;  %v1880_v48 = vsel %vm1872_vm10, %v1859_v57, %v5750_v0 }
 0x13b   :  { %v5765_v15 = vunpack.i.h.bf16 %v5763_v37  ;;  %v5764_v32 = vunpack.i.l.bf16 %v5763_v37  ;;  %v1879_v37 = vsel %vm1872_vm10, %v1858_v33, %v5749_v14  ;;  %v1901_v30 = vsel %vm1893_vm11, %v1880_v48, %v5760_v18 }
 0x13c   :  { %v5768_v38 = vpop.permute.xlu1 %5767  ;;  %v1900_v56 = vsel %vm1893_vm11, %v1879_v37, %v5759_v11 }
 0x13d   :  { %v1919_v19 = vsel %vm1914_vm12, %v1898_v61, %v5764_v32  ;;  %v1920_v17 = vsel %vm1914_vm12, %v1899_v53, %v5765_v15  ;;  %v5770_v36 = vunpack.i.h.bf16 %v5768_v38  ;;  %v5769_v13 = vunpack.i.l.bf16 %v5768_v38 }
 0x13e   :  { %v5773_v63 = vpop.permute.xlu0 %5772 }
 0x13f   :  { %v5775_v42 = vunpack.i.h.bf16 %v5773_v63  ;;  %v5774_v7 = vunpack.i.l.bf16 %v5773_v63  ;;  %v1921_v40 = vsel %vm1914_vm12, %v1900_v56, %v5769_v13  ;;  %v1922_v55 = vsel %vm1914_vm12, %v1901_v30, %v5770_v36 }
 0x140   :  { %v5778_v50 = vpop.permute.xlu1 %5777 }
 0x141   :  { %v1940_v12 = vsel %vm1935_vm13, %v1919_v19, %v5774_v7  ;;  %v1941_v35 = vsel %vm1935_vm13, %v1920_v17, %v5775_v42  ;;  %v5780_v46 = vunpack.i.h.bf16 %v5778_v50  ;;  %v5779_v58 = vunpack.i.l.bf16 %v5778_v50 }
 0x142   :  { %v5783_v16 = vpop.permute.xlu0 %5782 }
 0x143   :  { %v5785_v20 = vunpack.i.h.bf16 %v5783_v16  ;;  %v5784_v34 = vunpack.i.l.bf16 %v5783_v16  ;;  %v1942_v52 = vsel %vm1935_vm13, %v1921_v40, %v5779_v58  ;;  %v1943_v59 = vsel %vm1935_vm13, %v1922_v55, %v5780_v46 }
 0x144   :  { %v5788_v21 = vpop.permute.xlu1 %5787 }
 0x145   :  { %v1961_v51 = vsel %vm1956_vm14, %v1940_v12, %v5784_v34  ;;  %v1962_v23 = vsel %vm1956_vm14, %v1941_v35, %v5785_v20  ;;  %v5790_v28 = vunpack.i.h.bf16 %v5788_v21  ;;  %v5789_v43 = vunpack.i.l.bf16 %v5788_v21 }
 0x146   :  { %v5793_v25 = vpop.permute.xlu0 %5792  ;;  %v1979_v8 = vpack.c.bf16 %v1962_v23, %v1961_v51 }
 0x147   :  { %v5795_v38 = vunpack.i.h.bf16 %v5793_v25  ;;  %v5794_v4 = vunpack.i.l.bf16 %v5793_v25  ;;  %v1820_v53 = vsel %vm1810_vm8, %v6918_v6, %v5790_v28  ;;  %v1819_v18 = vsel %vm1810_vm8, %v6876_v44, %v5789_v43 }
 0x148   :  { %v5798_v10 = vpop.permute.xlu1 %5797  ;;  %5566 = vmatprep.mubr.msk.bf16.mxu0 %vm2008_vm15, %v1979_v8 }
 0x149   :  { %v1964_v2 = vsel %vm1956_vm14, %v1943_v59, %v5795_v38  ;;  %v1963_v41 = vsel %vm1956_vm14, %v1942_v52, %v5794_v4  ;;  %v5800_v7 = vunpack.i.h.bf16 %v5798_v10  ;;  %v5799_v50 = vunpack.i.l.bf16 %v5798_v10 }
 0x14a   :  { %v5803_v15 = vpop.permute.xlu0 %5802  ;;  %v1980_v32 = vpack.c.bf16 %v1964_v2, %v1963_v41 }
 0x14b   :  { %v5805_v14 = vunpack.i.h.bf16 %v5803_v15  ;;  %v5804_v61 = vunpack.i.l.bf16 %v5803_v15  ;;  %v1822_v34 = vsel %vm1810_vm8, %v7020_v62, %v5800_v7  ;;  %v1821_v12 = vsel %vm1810_vm8, 0.0, %v5799_v50 }
 0x14c   :  { %v5808_v63 = vpop.permute.xlu1 %5807  ;;  %5567 = vmatmul.mubr.msk.bf16.gmra.mrb[4].mxu0 %vm2008_vm15, %v1980_v32 }
 0x14d   :  { %v5810_v11 = vunpack.i.h.bf16 %v5808_v63  ;;  %v5809_v19 = vunpack.i.l.bf16 %v5808_v63  ;;  %v1840_v6 = vsel %vm54_vm0, %v1820_v53, %v5805_v14  ;;  %v1839_v21 = vsel %vm54_vm0, %v1819_v18, %v5804_v61 }
 0x14e   :  { %v5813_v1 = vpop.permute.xlu0 %5812 }
 0x14f   :  { %v5815_v16 = vunpack.i.h.bf16 %v5813_v1  ;;  %v5814_v36 = vunpack.i.l.bf16 %v5813_v1  ;;  %v1841_v48 = vsel %vm54_vm0, %v1821_v12, %v5809_v19  ;;  %v1842_v51 = vsel %vm54_vm0, %v1822_v34, %v5810_v11 }
 0x150   :  { %v5818_v60 = vpop.permute.xlu1 %5817 }
 0x151   :  { %v5820_v13 = vunpack.i.h.bf16 %v5818_v60  ;;  %v5819_v20 = vunpack.i.l.bf16 %v5818_v60  ;;  %v1860_v62 = vsel %vm1851_vm9, %v1839_v21, %v5814_v36  ;;  %v1861_v25 = vsel %vm1851_vm9, %v1840_v6, %v5815_v16 }
 0x152   :  { %v5823_v57 = vpop.permute.xlu0 %5822 }
 0x153   :  { %v5825_v35 = vunpack.i.h.bf16 %v5823_v57  ;;  %v5824_v46 = vunpack.i.l.bf16 %v5823_v57  ;;  %v1863_v8 = vsel %vm1851_vm9, %v1842_v51, %v5820_v13  ;;  %v1862_v40 = vsel %vm1851_vm9, %v1841_v48, %v5819_v20 }
 0x154   :  { %v5828_v33 = vpop.permute.xlu1 %5827 }
 0x155   :  { %v1881_v55 = vsel %vm1872_vm10, %v1860_v62, %v5824_v46  ;;  %v1882_v38 = vsel %vm1872_vm10, %v1861_v25, %v5825_v35  ;;  %v5830_v10 = vunpack.i.h.bf16 %v5828_v33  ;;  %v5829_v2 = vunpack.i.l.bf16 %v5828_v33 }
 0x156   :  { %v5833_v42 = vpop.permute.xlu0 %5832 }
 0x157   :  { %v5835_v44 = vunpack.i.h.bf16 %v5833_v42  ;;  %v5834_v37 = vunpack.i.l.bf16 %v5833_v42  ;;  %v1883_v18 = vsel %vm1872_vm10, %v1862_v40, %v5829_v2 }
 0x158   :  { %v5838_v0 = vpop.permute.xlu1 %5837 }
 0x159   :  { %v1902_v41 = vsel %vm1893_vm11, %v1881_v55, %v5834_v37  ;;  %v1903_v15 = vsel %vm1893_vm11, %v1882_v38, %v5835_v44  ;;  %v5840_v32 = vunpack.i.h.bf16 %v5838_v0  ;;  %v5839_v63 = vunpack.i.l.bf16 %v5838_v0 }
 0x15a   :  { %v5843_v17 = vpop.permute.xlu0 %5842  ;;  %v1884_v0 = vsel %vm1872_vm10, %v1863_v8, %v5830_v10 }
 0x15b   :  { %v5845_v23 = vunpack.i.h.bf16 %v5843_v17  ;;  %v5844_v56 = vunpack.i.l.bf16 %v5843_v17  ;;  %v1904_v17 = vsel %vm1893_vm11, %v1883_v18, %v5839_v63  ;;  %v1905_v16 = vsel %vm1893_vm11, %v1884_v0, %v5840_v32 }
 0x15c   :  { %v5848_v58 = vpop.permute.xlu1 %5847 }
 0x15d   :  { %v1923_v1 = vsel %vm1914_vm12, %v1902_v41, %v5844_v56  ;;  %v1924_v60 = vsel %vm1914_vm12, %v1903_v15, %v5845_v23  ;;  %v5850_v28 = vunpack.i.h.bf16 %v5848_v58  ;;  %v5849_v43 = vunpack.i.l.bf16 %v5848_v58 }
 0x15e   :  { %v5853_v30 = vpop.permute.xlu0 %5852 }
 0x15f   :  { %v5855_v4 = vunpack.i.h.bf16 %v5853_v30  ;;  %v5854_v52 = vunpack.i.l.bf16 %v5853_v30  ;;  %v1926_v20 = vsel %vm1914_vm12, %v1905_v16, %v5850_v28  ;;  %v1925_v34 = vsel %vm1914_vm12, %v1904_v17, %v5849_v43 }
 0x160   :  { %v5858_v59 = vpop.permute.xlu1 %5857 }
 0x161   :  { %v1944_v50 = vsel %vm1935_vm13, %v1923_v1, %v5854_v52  ;;  %v1945_v14 = vsel %vm1935_vm13, %v1924_v60, %v5855_v4  ;;  %v5860_v33 = vunpack.i.h.bf16 %v5858_v59  ;;  %v5859_v61 = vunpack.i.l.bf16 %v5858_v59 }
 0x162   :  { %v5863_v57 = vpop.permute.xlu0 %5862 }
 0x163   :  { %v5865_v42 = vunpack.i.h.bf16 %v5863_v57  ;;  %v5864_v7 = vunpack.i.l.bf16 %v5863_v57  ;;  %v1946_v46 = vsel %vm1935_vm13, %v1925_v34, %v5859_v61  ;;  %v1947_v58 = vsel %vm1935_vm13, %v1926_v20, %v5860_v33 }
 0x164   :  { %v5868_v53 = vpop.permute.xlu1 %5867 }
 0x165   :  { %v1965_v11 = vsel %vm1956_vm14, %v1944_v50, %v5864_v7  ;;  %v1966_v19 = vsel %vm1956_vm14, %v1945_v14, %v5865_v42  ;;  %v5870_v25 = vunpack.i.h.bf16 %v5868_v53  ;;  %v5869_v8 = vunpack.i.l.bf16 %v5868_v53 }
 0x166   :  { %v5873_v36 = vpop.permute.xlu0 %5872  ;;  %v1981_v13 = vpack.c.bf16 %v1966_v19, %v1965_v11 }
 0x167   :  { %v5875_v12 = vunpack.i.h.bf16 %v5873_v36  ;;  %v5874_v35 = vunpack.i.l.bf16 %v5873_v36  ;;  %v1824_v10 = vsel %vm1810_vm8, %v7069_v26, %v5870_v25  ;;  %v1823_v2 = vsel %vm1810_vm8, %v7022_v24, %v5869_v8 }
 0x168   :  { %v5878_v6 = vpop.permute.xlu1 %5877  ;;  %5570 = vmatprep.mubr.msk.bf16.mxu0 %vm2008_vm15, %v1981_v13 }
 0x169   :  { %v1968_v21 = vsel %vm1956_vm14, %v1947_v58, %v5875_v12  ;;  %v1967_v44 = vsel %vm1956_vm14, %v1946_v46, %v5874_v35  ;;  %v5880_v55 = vunpack.i.h.bf16 %v5878_v6  ;;  %v5879_v38 = vunpack.i.l.bf16 %v5878_v6 }
 0x16a   :  { %v5883_v37 = vpop.permute.xlu0 %5882  ;;  %v1982_v48 = vpack.c.bf16 %v1968_v21, %v1967_v44 }
 0x16b   :  { %v5885_v52 = vunpack.i.h.bf16 %v5883_v37  ;;  %v5884_v59 = vunpack.i.l.bf16 %v5883_v37  ;;  %v1826_v28 = vsel %vm1810_vm8, %v7168_v27, %v5880_v55  ;;  %v1825_v43 = vsel %vm1810_vm8, %v7120_v31, %v5879_v38 }
 0x16c   :  { %v5888_v51 = vpop.permute.xlu1 %5887  ;;  %5571 = vmatmul.mubr.msk.bf16.gmra.mrb[8].mxu0 %vm2008_vm15, %v1982_v48 }
 0x16d   :  { %v5890_v41 = vunpack.i.h.bf16 %v5888_v51  ;;  %v5889_v15 = vunpack.i.l.bf16 %v5888_v51  ;;  %v1844_v26 = vsel %vm54_vm0, %v1824_v10, %v5885_v52  ;;  %v1843_v24 = vsel %vm54_vm0, %v1823_v2, %v5884_v59 }
 0x16e   :  { %v5893_v23 = vpop.permute.xlu0 %5892 }
 0x16f   :  { %v5895_v63 = vunpack.i.h.bf16 %v5893_v23  ;;  %v5894_v1 = vunpack.i.l.bf16 %v5893_v23  ;;  %v1845_v61 = vsel %vm54_vm0, %v1825_v43, %v5889_v15  ;;  %v1846_v53 = vsel %vm54_vm0, %v1826_v28, %v5890_v41 }
 0x170   :  { %v5898_v56 = vpop.permute.xlu1 %5897 }
 0x171   :  { %v5900_v60 = vunpack.i.h.bf16 %v5898_v56  ;;  %v5899_v57 = vunpack.i.l.bf16 %v5898_v56  ;;  %v1864_v27 = vsel %vm1851_vm9, %v1843_v24, %v5894_v1  ;;  %v1865_v31 = vsel %vm1851_vm9, %v1844_v26, %v5895_v63 }
 0x172   :  { %v5903_v30 = vpop.permute.xlu0 %5902 }
 0x173   :  { %v5905_v42 = vunpack.i.h.bf16 %v5903_v30  ;;  %v5904_v7 = vunpack.i.l.bf16 %v5903_v30  ;;  %v1867_v19 = vsel %vm1851_vm9, %v1846_v53, %v5900_v60  ;;  %v1866_v17 = vsel %vm1851_vm9, %v1845_v61, %v5899_v57 }
 0x174   :  { %v5908_v62 = vpop.permute.xlu1 %5907 }
 0x175   :  { %v1885_v16 = vsel %vm1872_vm10, %v1864_v27, %v5904_v7  ;;  %v1886_v36 = vsel %vm1872_vm10, %v1865_v31, %v5905_v42  ;;  %v5910_v12 = vunpack.i.h.bf16 %v5908_v62  ;;  %v5909_v35 = vunpack.i.l.bf16 %v5908_v62 }
 0x176   :  { %v5913_v40 = vpop.permute.xlu0 %5912 }
 0x177   :  { %v5915_v14 = vunpack.i.h.bf16 %v5913_v40  ;;  %v5914_v33 = vunpack.i.l.bf16 %v5913_v40  ;;  %v1887_v38 = vsel %vm1872_vm10, %v1866_v17, %v5909_v35 }
 0x178   :  { %v5918_v4 = vpop.permute.xlu1 %5917 }
 0x179   :  { %v1906_v46 = vsel %vm1893_vm11, %v1885_v16, %v5914_v33  ;;  %v1907_v58 = vsel %vm1893_vm11, %v1886_v36, %v5915_v14  ;;  %v5920_v6 = vunpack.i.h.bf16 %v5918_v4  ;;  %v5919_v21 = vunpack.i.l.bf16 %v5918_v4 }
 0x17a   :  { %v5923_v32 = vpop.permute.xlu0 %5922  ;;  %v1888_v4 = vsel %vm1872_vm10, %v1867_v19, %v5910_v12 }
 0x17b   :  { %v5925_v18 = vunpack.i.h.bf16 %v5923_v32  ;;  %v5924_v0 = vunpack.i.l.bf16 %v5923_v32  ;;  %v1908_v10 = vsel %vm1893_vm11, %v1887_v38, %v5919_v21  ;;  %v1909_v2 = vsel %vm1893_vm11, %v1888_v4, %v5920_v6 }
 0x17c   :  { %v5928_v50 = vpop.permute.xlu1 %5927 }
 0x17d   :  { %v1927_v44 = vsel %vm1914_vm12, %v1906_v46, %v5924_v0  ;;  %v1928_v37 = vsel %vm1914_vm12, %v1907_v58, %v5925_v18  ;;  %v5930_v51 = vunpack.i.h.bf16 %v5928_v50  ;;  %v5929_v23 = vunpack.i.l.bf16 %v5928_v50 }
 0x17e   :  { %v5933_v11 = vpop.permute.xlu0 %5932 }
 0x17f   :  { %v5935_v13 = vunpack.i.h.bf16 %v5933_v11  ;;  %v5934_v20 = vunpack.i.l.bf16 %v5933_v11  ;;  %v1930_v32 = vsel %vm1914_vm12, %v1909_v2, %v5930_v51  ;;  %v1929_v63 = vsel %vm1914_vm12, %v1908_v10, %v5929_v23 }
 0x180   :  { %v5938_v34 = vpop.permute.xlu1 %5937 }
 0x181   :  { %v1948_v25 = vsel %vm1935_vm13, %v1927_v44, %v5934_v20  ;;  %v1949_v8 = vsel %vm1935_vm13, %v1928_v37, %v5935_v13  ;;  %v5940_v62 = vunpack.i.h.bf16 %v5938_v34  ;;  %v5939_v40 = vunpack.i.l.bf16 %v5938_v34 }
 0x182   :  { %v5943_v48 = vpop.permute.xlu0 %5942 }
 0x183   :  { %v5945_v56 = vunpack.i.h.bf16 %v5943_v48  ;;  %v5944_v30 = vunpack.i.l.bf16 %v5943_v48  ;;  %v1950_v57 = vsel %vm1935_vm13, %v1929_v63, %v5939_v40  ;;  %v1951_v28 = vsel %vm1935_vm13, %v1930_v32, %v5940_v62 }
 0x184   :  { %v5948_v55 = vpop.permute.xlu1 %5947 }
 0x185   :  { %v1969_v52 = vsel %vm1956_vm14, %v1948_v25, %v5944_v30  ;;  %v1970_v59 = vsel %vm1956_vm14, %v1949_v8, %v5945_v56  ;;  %v5950_v18 = vunpack.i.h.bf16 %v5948_v55  ;;  %v5949_v0 = vunpack.i.l.bf16 %v5948_v55 }
 0x186   :  { %v5953_v41 = vpop.permute.xlu0 %5952  ;;  %v1983_v15 = vpack.c.bf16 %v1970_v59, %v1969_v52 }
 0x187   :  { %v5955_v1 = vunpack.i.h.bf16 %v5953_v41  ;;  %v5954_v60 = vunpack.i.l.bf16 %v5953_v41  ;;  %v1828_v12 = vsel %vm1810_vm8, %v7223_v39, %v5950_v18  ;;  %v1827_v35 = vsel %vm1810_vm8, %v7173_v49, %v5949_v0 }
 0x188   :  { %v5958_v43 = vpop.permute.xlu1 %5957  ;;  %5574 = vmatprep.mubr.msk.bf16.mxu0 %vm2008_vm15, %v1983_v15 }
 0x189   :  { %v1972_v42 = vsel %vm1956_vm14, %v1951_v28, %v5955_v1  ;;  %v1971_v7 = vsel %vm1956_vm14, %v1950_v57, %v5954_v60  ;;  %v5960_v11 = vunpack.i.h.bf16 %v5958_v43  ;;  %v5959_v27 = vunpack.i.l.bf16 %v5958_v43 }
 0x18a   :  { %v1984_v50 = vpack.c.bf16 %v1972_v42, %v1971_v7  ;;  %v5963_v26 = vpop.permute.xlu0 %5962 }
 0x18b   :  { %v5965_v19 = vunpack.i.h.bf16 %v5963_v26  ;;  %v5964_v17 = vunpack.i.l.bf16 %v5963_v26  ;;  %v1830_v46 = vsel %vm1810_vm8, %v7306_v9, %v5960_v11  ;;  %v1829_v58 = vsel %vm1810_vm8, %v7264_v5, %v5959_v27 }
 0x18c   :  { %v5968_v24 = vpop.permute.xlu1 %5967  ;;  %5575 = vmatmul.mubr.msk.bf16.gmra.mrb[12].mxu0 %vm2008_vm15, %v1984_v50  ;;  %vm4502_vm8 = vcmask 392192  }
 0x18d   :  { %v5970_v16 = vunpack.i.h.bf16 %v5968_v24  ;;  %v5969_v36 = vunpack.i.l.bf16 %v5968_v24  ;;  %v1848_v37 = vsel %vm54_vm0, %v1828_v12, %v5965_v19  ;;  %v1847_v48 = vsel %vm54_vm0, %v1827_v35, %v5964_v17 }
 0x18e   :  { %v5973_v14 = vpop.permute.xlu0 %5972 }
 0x18f   :  { %v5975_v13 = vunpack.i.h.bf16 %v5973_v14  ;;  %v5974_v20 = vunpack.i.l.bf16 %v5973_v14  ;;  %v1849_v39 = vsel %vm54_vm0, %v1829_v58, %v5969_v36  ;;  %v1850_v56 = vsel %vm54_vm0, %v1830_v46, %v5970_v16 }
 0x190   :  { %v5978_v33 = vpop.permute.xlu1 %5977 }
 0x191   :  { %v5980_v6 = vunpack.i.h.bf16 %v5978_v33  ;;  %v5979_v21 = vunpack.i.l.bf16 %v5978_v33  ;;  %v1868_v49 = vsel %vm1851_vm9, %v1847_v48, %v5974_v20  ;;  %v1869_v9 = vsel %vm1851_vm9, %v1848_v37, %v5975_v13 }
 0x192   :  { %v5983_v61 = vpop.permute.xlu0 %5982 }
 0x193   :  { %v5985_v51 = vunpack.i.h.bf16 %v5983_v61  ;;  %v5984_v23 = vunpack.i.l.bf16 %v5983_v61  ;;  %v1870_v40 = vsel %vm1851_vm9, %v1849_v39, %v5979_v21  ;;  %v1871_v55 = vsel %vm1851_vm9, %v1850_v56, %v5980_v6  ;;  %v7721_v6 = vld [vmem:[%s9061_s2] ss:$0 sm:$0xff] }
 0x194   :  { %v5988_v53 = vpop.permute.xlu1 %5987  ;;  %vm4523_vm9 = vcmask 457728  }
 0x195   :  { %v5990_v25 = vunpack.i.h.bf16 %v5988_v53  ;;  %v5989_v5 = vunpack.i.l.bf16 %v5988_v53  ;;  %v1889_v59 = vsel %vm1872_vm10, %v1868_v49, %v5984_v23  ;;  %v1890_v10 = vsel %vm1872_vm10, %v1869_v9, %v5985_v51 }
 0x196   :  { %v5993_v31 = vpop.permute.xlu0 %5992 }
 0x197   :  { %v5995_v8 = vunpack.i.h.bf16 %v5993_v31  ;;  %v5994_v62 = vunpack.i.l.bf16 %v5993_v31  ;;  %v1891_v57 = vsel %vm1872_vm10, %v1870_v40, %v5989_v5  ;;  %v1892_v28 = vsel %vm1872_vm10, %v1871_v55, %v5990_v25 }
 0x198   :  { %v5998_v34 = vpop.permute.xlu1 %5997 }
 0x199   :  { %v6000_v38 = vunpack.i.h.bf16 %v5998_v34  ;;  %v5999_v4 = vunpack.i.l.bf16 %v5998_v34  ;;  %v1910_v43 = vsel %vm1893_vm11, %v1889_v59, %v5994_v62  ;;  %v1911_v42 = vsel %vm1893_vm11, %v1890_v10, %v5995_v8 }
 0x19a   :  { %v6003_v44 = vpop.permute.xlu0 %6002 }
 0x19b   :  { %v6005_v2 = vunpack.i.h.bf16 %v6003_v44  ;;  %v6004_v41 = vunpack.i.l.bf16 %v6003_v44  ;;  %v1912_v7 = vsel %vm1893_vm11, %v1891_v57, %v5999_v4  ;;  %v1913_v50 = vsel %vm1893_vm11, %v1892_v28, %v6000_v38 }
 0x19c   :  { %v6008_v30 = vpop.permute.xlu1 %6007  ;;  %vm4544_vm11 = vcmask 523264  }
 0x19d   :  { %v6010_v15 = vunpack.i.h.bf16 %v6008_v30  ;;  %v6009_v32 = vunpack.i.l.bf16 %v6008_v30  ;;  %v1931_v33 = vsel %vm1914_vm12, %v1910_v43, %v6004_v41  ;;  %v1932_v61 = vsel %vm1914_vm12, %v1911_v42, %v6005_v2 }
 0x19e   :  { %v6013_v52 = vpop.permute.xlu0 %6012 }
 0x19f   :  { %v6015_v63 = vunpack.i.h.bf16 %v6013_v52  ;;  %v6014_v1 = vunpack.i.l.bf16 %v6013_v52  ;;  %v1933_v0 = vsel %vm1914_vm12, %v1912_v7, %v6009_v32  ;;  %v1934_v11 = vsel %vm1914_vm12, %v1913_v50, %v6010_v15 }
 0x1a0   :  { %v6018_v60 = vpop.permute.xlu1 %6017 }
 0x1a1   :  { %v6020_v26 = vunpack.i.h.bf16 %v6018_v60  ;;  %v6019_v24 = vunpack.i.l.bf16 %v6018_v60  ;;  %v1952_v27 = vsel %vm1935_vm13, %v1931_v33, %v6014_v1  ;;  %v1953_v31 = vsel %vm1935_vm13, %v1932_v61, %v6015_v63 }
 0x1a2   :  { %v6023_v14 = vpop.permute.xlu0 %6022 }
 0x1a3   :  { %v6025_v53 = vunpack.i.h.bf16 %v6023_v14  ;;  %v6024_v18 = vunpack.i.l.bf16 %v6023_v14  ;;  %v1954_v20 = vsel %vm1935_vm13, %v1933_v0, %v6019_v24  ;;  %v1955_v34 = vsel %vm1935_vm13, %v1934_v11, %v6020_v26 }
 0x1a4   :  { %v6028_v19 = vpop.permute.xlu1 %6027  ;;  %vm4608_vm13 = vcmask 588800  }
 0x1a5   :  { %v1973_v17 = vsel %vm1956_vm14, %v1952_v27, %v6024_v18  ;;  %v1974_v16 = vsel %vm1956_vm14, %v1953_v31, %v6025_v53  ;;  %v6030_v36 = vunpack.i.h.bf16 %v6028_v19  ;;  %v6029_v13 = vunpack.i.l.bf16 %v6028_v19 }
 0x1a6   :  { %v1985_v12 = vpack.c.bf16 %v1974_v16, %v1973_v17 }
 0x1a7   :  { %v1975_v35 = vsel %vm1956_vm14, %v1954_v20, %v6029_v13  ;;  %v1976_v46 = vsel %vm1956_vm14, %v1955_v34, %v6030_v36 }
 0x1a8   :  { %v1986_v58 = vpack.c.bf16 %v1976_v46, %v1975_v35  ;;  %5578 = vmatprep.mubr.msk.bf16.mxu0 %vm2008_vm15, %v1985_v12 }
 0x1aa   :  { %5579 = vmatmul.mubr.msk.bf16.gmra.mrb[16].mxu0 %vm2008_vm15, %v1986_v58 }
 0x1ff   :  { %v5564_v21 = vpop.f32.mrb[0].mxu0 }
 0x200   :  { %v2085_v44 = vadd.f32 %v5564_v21, %v7721_v6  ;;  %v2076_v37 = vpop.f32.mrb[1].mxu0 }
 0x201   :  { %v2077_v48 = vadd.f32 %v7721_v6, %v2076_v37  ;;  %v5565_v51 = vpop.f32.mrb[2].mxu0 }
 0x202   :  { %v2157_v23 = vmax.f32 %v2085_v44, 0.0  ;;  %v2088_v39 = vadd.f32 %v5565_v51, %v7721_v6  ;;  %v2079_v56 = vpop.f32.mrb[3].mxu0 }
 0x203   :  { %v2155_v49 = vmax.f32 %v2077_v48, 0.0  ;;  %v2080_v9 = vadd.f32 %v7721_v6, %v2079_v56 }
 0x204   :  { %v2229_v30 = vcombine.high %v2157_v23, %v2157_v23  ;;  %v7727_v25 = vmax.f32 %v2088_v39, 0.0  ;;  %v2236_v57 = vrot.slane %v2157_v23, %v6706_v29 }
 0x205   :  { %v2195_v5 = vcombine.high %v2155_v49, %v2155_v49  ;;  %v2202_v8 = vrot.slane %v2155_v49, %v6706_v29  ;;  %v2156_v62 = vmax.f32 %v2080_v9, 0.0 }
 0x206   :  { %v2243_v40 = vrot.slane %v2229_v30, %v6706_v29  ;;  %v2252_v55 = vrot.slane %v7727_v25, %v6706_v29 }
 0x207   :  { %v2209_v38 = vrot.slane %v2195_v5, %v6706_v29  ;;  %v2210_v4 = vcombine.high %v2202_v8, %v2202_v8  ;;  %v2212_v52 = vcombine.high %v2156_v62, %v2156_v62  ;;  %v2219_v59 = vrot.slane %v2156_v62, %v6706_v29 }
 0x208   :  { %v2244_v10 = vcombine.high %v2243_v40, %v2243_v40  ;;  %v2260_v2 = vcombine.high %v2252_v55, %v2252_v55  ;;  %v2245_v5 = vcombine.high %v7727_v25, %v7727_v25 }
 0x209   :  { %v2211_v41 = vcombine.high %v2209_v38, %v2209_v38  ;;  %v2537_v15 = vcombine.low %v2202_v8, %v2210_v4  ;;  %v2226_v32 = vrot.slane %v2212_v52, %v6706_v29  ;;  %v2227_v63 = vcombine.high %v2219_v59, %v2219_v59 }
 0x20a   :  { %v2571_v1 = vcombine.low %v2243_v40, %v2244_v10  ;;  %v2572_v60 = vcombine.low %v2252_v55, %v2260_v2 }
 0x20b   :  { %v2538_v28 = vcombine.low %v2209_v38, %v2211_v41  ;;  %v2228_v43 = vcombine.high %v2226_v32, %v2226_v32  ;;  %v2554_v42 = vcombine.low %v2227_v63, %v2226_v32  ;;  %v2545_v26 = vrot.slane %v2537_v15, %v6706_v29 }
 0x20c   :  { %v2579_v7 = vrot.slane %v2571_v1, %v6706_v29  ;;  %v2586_v50 = vrot.slane %v2572_v60, %v6706_v29  ;;  %v2259_v63 = vrot.slane %v2245_v5, %v6706_v29 }
 0x20d   :  { %v2552_v24 = vrot.slane %v2538_v28, %v6706_v29  ;;  %v2555_v14 = vcombine.low %v2228_v43, %v2236_v57  ;;  %v2562_v53 = vrot.slane %v2554_v42, %v6706_v29 }
 0x20e   :  { %v2587_v33 = vcombine.low %v2579_v7, %v2586_v50 }
 0x20f   :  { %v2553_v61 = vcombine.low %v2545_v26, %v2552_v24  ;;  %v2569_v18 = vrot.slane %v2555_v14, %v6706_v29 }
 0x210   :  { %v2811_v0 = vrot.slane %v2587_v33, 7 }
 0x211   :  { %v2809_v11 = vrot.slane %v2553_v61, 7  ;;  %v2570_v27 = vcombine.low %v2562_v53, %v2569_v18  ;;  %v2261_v61 = vcombine.high %v2259_v63, %v2259_v63 }
 0x212   :  { %v2843_v31 = vsel %vm237_vm1, 0.0, %v2811_v0  ;;  %v2859_v17 = vsel %vm237_vm1, %v2811_v0, 0.0 }
 0x213   :  { %v2841_v19 = vsel %vm237_vm1, 0.0, %v2809_v11  ;;  %v2953_v16 = vcombine.high %v2843_v31, %v2843_v31  ;;  %v2960_v36 = vrot.slane %v2843_v31, %v6706_v29  ;;  %v2857_v34 = vsel %vm237_vm1, %v2809_v11, 0.0 }
 0x214   :  { %v2905_v13 = vcombine.high %v2841_v19, %v2841_v19  ;;  %v2912_v20 = vrot.slane %v2841_v19, %v6706_v29  ;;  %v2810_v46 = vrot.slane %v2570_v27, 7  ;;  %v2976_v37 = vrot.slane %v2859_v17, %v6706_v29 }
 0x215   :  { %v2967_v12 = vrot.slane %v2953_v16, %v6706_v29  ;;  %v2968_v35 = vcombine.high %v2960_v36, %v2960_v36  ;;  %v2928_v49 = vrot.slane %v2857_v34, %v6706_v29 }
 0x216   :  { %v2919_v58 = vrot.slane %v2905_v13, %v6706_v29  ;;  %v2920_v21 = vcombine.high %v2912_v20, %v2912_v20  ;;  %v3289_v44 = vcombine.low %v2912_v20, %v2912_v20  ;;  %v2842_v23 = vsel %vm237_vm1, 0.0, %v2810_v46 }
 0x217   :  { %v2969_v48 = vcombine.high %v2967_v12, %v2967_v12  ;;  %v3340_v51 = vcombine.low %v2968_v35, %v2967_v12  ;;  %v2858_v39 = vsel %vm237_vm1, %v2810_v46, 0.0  ;;  %v2929_v30 = vcombine.high %v2842_v23, %v2842_v23 }
 0x218   :  { %v2921_v56 = vcombine.high %v2919_v58, %v2919_v58  ;;  %v3290_v9 = vcombine.low %v2920_v21, %v2919_v58  ;;  %v2936_v62 = vrot.slane %v2842_v23, %v6706_v29  ;;  %v2952_v40 = vrot.slane %v2858_v39, %v6706_v29 }
 0x219   :  { %v3341_v8 = vcombine.low %v2969_v48, %v2976_v37  ;;  %v3297_v55 = vrot.slane %v3289_v44, %v6706_v29  ;;  %v2943_v52 = vrot.slane %v2929_v30, %v6706_v29  ;;  %v3348_v59 = vrot.slane %v3340_v51, %v6706_v29 }
 0x21a   :  { %v3304_v38 = vrot.slane %v3290_v9, %v6706_v29  ;;  %v3306_v4 = vcombine.low %v2921_v56, %v2928_v49  ;;  %v2944_v2 = vcombine.high %v2936_v62, %v2936_v62  ;;  %v3324_v41 = vcombine.low %v2952_v40, %v2960_v36 }
 0x21b   :  { %v3355_v10 = vrot.slane %v3341_v8, %v6706_v29  ;;  %v2945_v15 = vcombine.high %v2943_v52, %v2943_v52 }
 0x21c   :  { %v3305_v25 = vcombine.low %v3297_v55, %v3304_v38  ;;  %v3314_v32 = vrot.slane %v3306_v4, %v6706_v29  ;;  %v3307_v60 = vcombine.low %v2936_v62, %v2944_v2  ;;  %v3338_v26 = vrot.slane %v3324_v41, %v6706_v29 }
 0x21d   :  { %v7766_v1 = vcombine.low %v3348_v59, %v3355_v10  ;;  %v3323_v57 = vcombine.low %v2943_v52, %v2945_v15 }
 0x21e   :  { %v7769_v28 = vsel %vm1060_vm2, 0.0, %v3305_v25  ;;  %v3321_v43 = vrot.slane %v3307_v60, %v6706_v29 }
 0x21f   :  { %v5568_v42 = vpop.f32.mrb[4].mxu0  ;;  %v3669_v7 = vrot.slane %v7769_v28, 1  ;;  %v3331_v50 = vrot.slane %v3323_v57, %v6706_v29  ;;  %v3769_v33 = vrot.slane %v7769_v28, 2  ;;  %v3675_v11 = vrot.slane %v7766_v1, 1 }
 0x220   :  { %v2101_v24 = vadd.f32 %v5568_v42, %v7721_v6  ;;  %v2092_v14 = vpop.f32.mrb[5].mxu0  ;;  %v7777_v53 = vcombine.low %v3314_v32, %v3321_v43  ;;  %v3775_v16 = vrot.slane %v7766_v1, 2 }
 0x221   :  { %v2093_v18 = vadd.f32 %v7721_v6, %v2092_v14  ;;  %v5569_v0 = vpop.f32.mrb[6].mxu0  ;;  %v7781_v27 = vcombine.low %v3331_v50, %v3338_v26  ;;  %v3670_v20 = vsel %vm1068_vm3, %v6745_v47, %v3669_v7  ;;  %v3770_v58 = vsel %vm1170_vm4, %v6767_v3, %v3769_v33 }
 0x222   :  { %v2161_v31 = vmax.f32 %v2101_v24, 0.0  ;;  %v2104_v19 = vadd.f32 %v5569_v0, %v7721_v6  ;;  %v2095_v17 = vpop.f32.mrb[7].mxu0  ;;  %v3671_v34 = vrot.slane %v7777_v53, 1  ;;  %v3771_v59 = vrot.slane %v7777_v53, 2 }
 0x223   :  { %v2159_v36 = vmax.f32 %v2093_v18, 0.0  ;;  %v2096_v13 = vadd.f32 %v7721_v6, %v2095_v17  ;;  %v3673_v48 = vrot.slane %v7781_v27, 1  ;;  %v3773_v14 = vrot.slane %v7781_v27, 2 }
 0x224   :  { %v2295_v12 = vcombine.high %v2161_v31, %v2161_v31  ;;  %v2302_v35 = vrot.slane %v2161_v31, %v6706_v29  ;;  %v2162_v46 = vmax.f32 %v2104_v19, 0.0  ;;  %v3672_v56 = vsel %vm1068_vm3, %v3669_v7, %v3671_v34 }
 0x225   :  { %v2262_v21 = vcombine.high %v2159_v36, %v2159_v36  ;;  %v2269_v44 = vrot.slane %v2159_v36, %v6706_v29  ;;  %v2160_v37 = vmax.f32 %v2096_v13, 0.0  ;;  %v6031_v52 = vpack.i.bf16 %v3672_v56, %v3670_v20 }
 0x226   :  { %v2309_v51 = vrot.slane %v2295_v12, %v6706_v29  ;;  %v2310_v23 = vcombine.high %v2302_v35, %v2302_v35  ;;  %v2312_v39 = vcombine.high %v2162_v46, %v2162_v46  ;;  %v2319_v40 = vrot.slane %v2162_v46, %v6706_v29 }
 0x227   :  { %v2276_v49 = vrot.slane %v2262_v21, %v6706_v29  ;;  %v2277_v9 = vcombine.high %v2269_v44, %v2269_v44  ;;  %v2588_v30 = vcombine.low %v2261_v61, %v2269_v44  ;;  %v2278_v5 = vcombine.high %v2160_v37, %v2160_v37  ;;  %6032 = vrot.lane.b32.xlu0 %v6031_v52, %s6469_s17 }
 0x228   :  { %v2622_v8 = vcombine.low %v2310_v23, %v2309_v51  ;;  %v2311_v62 = vcombine.high %v2309_v51, %v2309_v51  ;;  %v2285_v55 = vrot.slane %v2160_v37, %v6706_v29  ;;  %v2326_v2 = vrot.slane %v2312_v39, %v6706_v29 }
 0x229   :  { %v2589_v38 = vcombine.low %v2277_v9, %v2276_v49  ;;  %v2292_v4 = vrot.slane %v2278_v5, %v6706_v29  ;;  %v2596_v10 = vrot.slane %v2588_v30, %v6706_v29  ;;  %v3674_v63 = vsel %vm1068_vm3, %v3671_v34, %v3673_v48 }
 0x22a   :  { %v2623_v41 = vcombine.low %v2311_v62, %v2319_v40  ;;  %v2293_v15 = vcombine.high %v2285_v55, %v2285_v55  ;;  %v3676_v60 = vsel %vm1068_vm3, %v3673_v48, %v3675_v11  ;;  %v2630_v57 = vrot.slane %v2622_v8, %v6706_v29 }
 0x22b   :  { %v2603_v25 = vrot.slane %v2589_v38, %v6706_v29  ;;  %v2294_v32 = vcombine.high %v2292_v4, %v2292_v4  ;;  %v6041_v7 = vpack.i.bf16 %v3676_v60, %v3674_v63  ;;  %v3772_v24 = vsel %vm1170_vm4, %v3769_v33, %v3771_v59 }
 0x22c   :  { %v2637_v43 = vrot.slane %v2623_v41, %v6706_v29  ;;  %v2605_v42 = vcombine.low %v2285_v55, %v2293_v15  ;;  %v6036_v0 = vpack.i.bf16 %v3772_v24, %v3770_v58  ;;  %v3774_v17 = vsel %vm1170_vm4, %v3771_v59, %v3773_v14 }
 0x22d   :  { %v2604_v50 = vcombine.low %v2596_v10, %v2603_v25  ;;  %v2606_v26 = vcombine.low %v2292_v4, %v2294_v32  ;;  %6042 = vrot.lane.b32.xlu1 %v6041_v7, %s6469_s17  ;;  %v7822_v36 = vsel %vm1170_vm4, %v3773_v14, %v3775_v16  ;;  %v2327_v34 = vcombine.high %v2326_v2, %v2326_v2 }
 0x22e   :  { %v7813_v61 = vcombine.low %v2630_v57, %v2637_v43  ;;  %v2613_v18 = vrot.slane %v2605_v42, %v6706_v29  ;;  %6037 = vrot.lane.b32.xlu0 %v6036_v0, %s6471_s12  ;;  %v6046_v13 = vpack.i.bf16 %v7822_v36, %v3774_v17  ;;  %v3935_v35 = vrot.slane %v7769_v28, 3 }
 0x22f   :  { %v2812_v31 = vrot.slane %v2604_v50, 7  ;;  %v2620_v19 = vrot.slane %v2606_v26, %v6706_v29  ;;  %v6051_v44 = vpack.i.bf16 %v3774_v17, %v3772_v24  ;;  %v3936_v51 = vrot.slane %v7777_v53, 3 }
 0x230   :  { %v2814_v33 = vrot.slane %v7813_v61, 7  ;;  %v3938_v23 = vrot.slane %v7781_v27, 3  ;;  %v4037_v9 = vrot.slane %v7769_v28, 4  ;;  %v7841_v30 = vcombine.low %v2326_v2, %v2327_v34 }
 0x231   :  { %v2844_v20 = vsel %vm237_vm1, 0.0, %v2812_v31  ;;  %v2621_v12 = vcombine.low %v2613_v18, %v2620_v19  ;;  %6047 = vrot.lane.b32.xlu1 %v6046_v13, %s6471_s12  ;;  %v2860_v39 = vsel %vm237_vm1, %v2812_v31, 0.0  ;;  %v3937_v10 = vsel %vm1338_vm5, %v3935_v35, %v3936_v51 }
 0x232   :  { %v2977_v46 = vcombine.high %v2844_v20, %v2844_v20  ;;  %v2984_v58 = vrot.slane %v2844_v20, %v6706_v29  ;;  %v2846_v21 = vsel %vm237_vm1, 0.0, %v2814_v33  ;;  %6052 = vrot.lane.b32.xlu0 %v6051_v44, %s6473_s16  ;;  %v3000_v52 = vrot.slane %v2860_v39, %v6706_v29 }
 0x233   :  { %v3032_v37 = vrot.slane %v2846_v21, %v6706_v29  ;;  %v2813_v48 = vrot.slane %v2621_v12, 7  ;;  %v3025_v59 = vcombine.high %v2846_v21, %v2846_v21  ;;  %v3939_v2 = vsel %vm1338_vm5, %v3936_v51, %v3938_v23 }
 0x234   :  { %v2991_v56 = vrot.slane %v2977_v46, %v6706_v29  ;;  %v2992_v49 = vcombine.high %v2984_v58, %v2984_v58  ;;  %v6056_v43 = vpack.i.bf16 %v3939_v2, %v3937_v10  ;;  %v4038_v26 = vrot.slane %v7777_v53, 4 }
 0x235   :  { %v3040_v5 = vcombine.high %v3032_v37, %v3032_v37  ;;  %v2845_v8 = vsel %vm237_vm1, 0.0, %v2813_v48  ;;  %v2861_v62 = vsel %vm237_vm1, %v2813_v48, 0.0  ;;  %v2647_v24 = vrot.slane %v7841_v30, %v6706_v29 }
 0x236   :  { %v2993_v40 = vcombine.high %v2991_v56, %v2991_v56  ;;  %v3357_v55 = vcombine.low %v2984_v58, %v2992_v49  ;;  %v3001_v38 = vcombine.high %v2845_v8, %v2845_v8  ;;  %v3008_v4 = vrot.slane %v2845_v8, %v6706_v29  ;;  %6057 = vrot.lane.b32.xlu0 %v6056_v43, %s6475_s20 }
 0x237   :  { %v3392_v15 = vcombine.low %v3032_v37, %v3040_v5  ;;  %v3024_v60 = vrot.slane %v2861_v62, %v6706_v29  ;;  %v7859_v14 = vrot.slane %v3025_v59, %v6706_v29  ;;  %v4040_v0 = vrot.slane %v7781_v27, 4 }
 0x238   :  { %v3358_v41 = vcombine.low %v2991_v56, %v2993_v40  ;;  %v3015_v25 = vrot.slane %v3001_v38, %v6706_v29  ;;  %v3016_v32 = vcombine.high %v3008_v4, %v3008_v4  ;;  %v3365_v63 = vrot.slane %v3357_v55, %v6706_v29 }
 0x239   :  { %v3374_v57 = vcombine.low %v3000_v52, %v3008_v4  ;;  %v4042_v13 = vrot.slane %v7766_v1, 4  ;;  %v3406_v20 = vrot.slane %v3392_v15, %v6706_v29  ;;  %v4039_v34 = vsel %vm1441_vm6, %v4037_v9, %v4038_v26 }
 0x23a   :  { %v3372_v42 = vrot.slane %v3358_v41, %v6706_v29  ;;  %v3017_v7 = vcombine.high %v3015_v25, %v3015_v25  ;;  %v3375_v50 = vcombine.low %v3016_v32, %v3015_v25  ;;  %v4041_v12 = vsel %vm1441_vm6, %v4038_v26, %v4040_v0 }
 0x23b   :  { %v3382_v18 = vrot.slane %v3374_v57, %v6706_v29  ;;  %v4202_v35 = vrot.slane %v7781_v27, 5  ;;  %v6061_v21 = vpack.i.bf16 %v4041_v12, %v4039_v34  ;;  %v7878_v44 = vsel %vm1441_vm6, %v4040_v0, %v4042_v13 }
 0x23c   :  { %v7864_v31 = vcombine.low %v3365_v63, %v3372_v42  ;;  %v3389_v19 = vrot.slane %v3375_v50, %v6706_v29  ;;  %v3391_v17 = vcombine.low %v3017_v7, %v3024_v60  ;;  %v7883_v37 = vsel %vm237_vm1, %v2814_v33, 0.0 }
 0x23d   :  { %v3041_v48 = vcombine.high %v7859_v14, %v7859_v14  ;;  %v4201_v51 = vrot.slane %v7777_v53, 5  ;;  %v4302_v56 = vrot.slane %v7781_v27, 6  ;;  %6062 = vrot.lane.b32.xlu0 %v6061_v21, %s6476_s23  ;;  %v4204_v9 = vrot.slane %v7766_v1, 5 }
 0x23e   :  { %v7872_v46 = vcombine.low %v3382_v18, %v3389_v19  ;;  %v3399_v58 = vrot.slane %v3391_v17, %v6706_v29  ;;  %v3777_v33 = vrot.slane %v7864_v31, 2  ;;  %v6066_v8 = vpack.i.bf16 %v7878_v44, %v4041_v12 }
 0x23f   :  { %v5572_v39 = vpop.f32.mrb[8].mxu0  ;;  %v4203_v62 = vsel %vm1607_vm7, %v4201_v51, %v4202_v35  ;;  %v4301_v38 = vrot.slane %v7777_v53, 6  ;;  %v4205_v4 = vsel %vm1607_vm7, %v4202_v35, %v4204_v9  ;;  %v4304_v10 = vrot.slane %v7766_v1, 6 }
 0x240   :  { %v7889_v49 = vcombine.low %v3399_v58, %v3406_v20  ;;  %v2117_v61 = vadd.f32 %v5572_v39, %v7721_v6  ;;  %v2108_v5 = vpop.f32.mrb[9].mxu0  ;;  %v7911_v32 = vsel %vm1170_vm4, %v3775_v16, %v3777_v33  ;;  %v4306_v43 = vrot.slane %v7864_v31, 6 }
 0x241   :  { %v2109_v40 = vadd.f32 %v7721_v6, %v2108_v5  ;;  %v5573_v55 = vpop.f32.mrb[10].mxu0  ;;  %v4303_v15 = vsel %vm1060_vm2, %v4301_v38, %v4302_v56  ;;  %6067 = vrot.lane.b32.xlu0 %v6066_v8, %s6477_s24  ;;  %v6081_v57 = vpack.i.bf16 %v7911_v32, %v7822_v36  ;;  %v4305_v50 = vsel %vm1060_vm2, %v4302_v56, %v4304_v10 }
 0x242   :  { %v2165_v52 = vmax.f32 %v2117_v61, 0.0  ;;  %v2120_v59 = vadd.f32 %v5573_v55, %v7721_v6  ;;  %v2111_v2 = vpop.f32.mrb[11].mxu0  ;;  %v6071_v18 = vpack.i.bf16 %v4205_v4, %v4203_v62  ;;  %v6076_v58 = vpack.i.bf16 %v4305_v50, %v4303_v15 }
 0x243   :  { %v2163_v41 = vmax.f32 %v2109_v40, 0.0  ;;  %v2112_v25 = vadd.f32 %v7721_v6, %v2111_v2  ;;  %6082 = vrot.lane.b32.xlu1 %v6081_v57, %s6473_s16  ;;  %v4307_v21 = vsel %vm1060_vm2, %v4304_v10, %v4306_v43  ;;  %v4308_v40 = vrot.slane %v7872_v46, 6 }
 0x244   :  { %v2361_v63 = vcombine.high %v2165_v52, %v2165_v52  ;;  %v2368_v60 = vrot.slane %v2165_v52, %v6706_v29  ;;  %v2166_v19 = vmax.f32 %v2120_v59, 0.0  ;;  %v3940_v2 = vrot.slane %v7766_v1, 3 }
 0x245   :  { %v2328_v42 = vcombine.high %v2163_v41, %v2163_v41  ;;  %v2335_v7 = vrot.slane %v2163_v41, %v6706_v29  ;;  %v2164_v26 = vmax.f32 %v2112_v25, 0.0  ;;  %6072 = vrot.lane.b32.xlu0 %v6071_v18, %s6478_s25  ;;  %v4309_v10 = vsel %vm1060_vm2, %v4306_v43, %v4308_v40 }
 0x246   :  { %v2375_v16 = vrot.slane %v2361_v63, %v6706_v29  ;;  %v2376_v0 = vcombine.high %v2368_v60, %v2368_v60  ;;  %v2378_v8 = vcombine.high %v2166_v19, %v2166_v19  ;;  %v2385_v62 = vrot.slane %v2166_v19, %v6706_v29 }
 0x247   :  { %v2342_v17 = vrot.slane %v2328_v42, %v6706_v29  ;;  %v2343_v20 = vcombine.high %v2335_v7, %v2335_v7  ;;  %v2345_v34 = vcombine.high %v2164_v26, %v2164_v26  ;;  %v2352_v36 = vrot.slane %v2164_v26, %v6706_v29 }
 0x248   :  { %v2377_v12 = vcombine.high %v2375_v16, %v2375_v16  ;;  %v2673_v35 = vcombine.low %v2368_v60, %v2376_v0  ;;  %v3942_v41 = vrot.slane %v7864_v31, 3  ;;  %v6111_v60 = vpack.i.bf16 %v4309_v10, %v4307_v21  ;;  %v6434_v10 = vld [vmem:[%s9062_s3] sm:$0xff]  }
 0x249   :  { %v2344_v51 = vcombine.high %v2342_v17, %v2342_v17  ;;  %v2640_v39 = vcombine.low %v2335_v7, %v2343_v20  ;;  %v2359_v56 = vrot.slane %v2345_v34, %v6706_v29  ;;  %v2360_v61 = vcombine.high %v2352_v36, %v2352_v36  ;;  %6077 = vrot.lane.b32.xlu0 %v6076_v58, %s6479_s26 }
 0x24a   :  { %v2674_v5 = vcombine.low %v2375_v16, %v2377_v12  ;;  %v2681_v55 = vrot.slane %v2673_v35, %v6706_v29  ;;  %v3941_v42 = vsel %vm1338_vm5, %v3938_v23, %v3940_v2  ;;  %v3943_v43 = vsel %vm1338_vm5, %v3940_v2, %v3942_v41  ;;  %5582 = vmatprep.subr.bf16.mxu1 %v6434_v10 }
 0x24b   :  { %v2654_v38 = vrot.slane %v2640_v39, %v6706_v29  ;;  %v2656_v4 = vcombine.low %v2344_v51, %v2352_v36  ;;  %v2657_v52 = vcombine.low %v2360_v61, %v2359_v56  ;;  %v3779_v7 = vrot.slane %v7872_v46, 2  ;;  %5583 = vmatpush3.bf16.msra.mxu1 %v6434_v10 }
 0x24c   :  { %v2688_v59 = vrot.slane %v2674_v5, %v6706_v29  ;;  %v6086_v30 = vpack.i.bf16 %v3943_v43, %v3941_v42  ;;  %v3408_v18 = vcombine.low %v7859_v14, %v3041_v48  ;;  %v7962_v19 = vrot.slane %v2378_v8, %v6706_v29 }
 0x24d   :  { %v2655_v15 = vcombine.low %v2647_v24, %v2654_v38  ;;  %v2664_v25 = vrot.slane %v2656_v4, %v6706_v29  ;;  %v2671_v63 = vrot.slane %v2657_v52, %v6706_v29  ;;  %v3048_v24 = vrot.slane %v7883_v37, %v6706_v29  ;;  %6112 = vrot.lane.b32.xlu0 %v6111_v60, %s6479_s26 }
 0x24e   :  { %v2689_v57 = vcombine.low %v2681_v55, %v2688_v59  ;;  %v3780_v23 = vsel %vm1170_vm4, %v3777_v33, %v3779_v7  ;;  %v2393_v17 = vcombine.high %v2385_v62, %v2385_v62  ;;  %6087 = vrot.lane.b32.xlu1 %v6086_v30, %s6475_s20  ;;  %v3416_v21 = vrot.slane %v3408_v18, %v6706_v29 }
 0x24f   :  { %v2815_v50 = vrot.slane %v2655_v15, 7  ;;  %v2672_v26 = vcombine.low %v2664_v25, %v2671_v63  ;;  %v6116_v48 = vpack.i.bf16 %v3780_v23, %v7911_v32  ;;  %v4044_v56 = vrot.slane %v7864_v31, 4 }
 0x250   :  { %v2817_v16 = vrot.slane %v2689_v57, 7  ;;  %v7974_v39 = vcombine.low %v2393_v17, %v7962_v19  ;;  %v3781_v8 = vrot.slane %v7889_v49, 2  ;;  %v4046_v63 = vrot.slane %v7872_v46, 4 }
 0x251   :  { %v2847_v0 = vsel %vm237_vm1, 0.0, %v2815_v50  ;;  %v2816_v20 = vrot.slane %v2672_v26, 7  ;;  %6117 = vrot.lane.b32.xlu0 %v6116_v48, %s6471_s12  ;;  %v2863_v32 = vsel %vm237_vm1, %v2815_v50, 0.0  ;;  %v4045_v42 = vsel %vm1441_vm6, %v4042_v13, %v4044_v56 }
 0x252   :  { %v2849_v37 = vsel %vm237_vm1, 0.0, %v2817_v16  ;;  %v3049_v34 = vcombine.high %v2847_v0, %v2847_v0  ;;  %v3056_v14 = vrot.slane %v2847_v0, %v6706_v29  ;;  %v2865_v38 = vsel %vm237_vm1, %v2817_v16, 0.0  ;;  %v6435_v0 = vld [vmem:[%s9062_s3 + $0x8] sm:$0xff]  }
 0x253   :  { %v3097_v36 = vcombine.high %v2849_v37, %v2849_v37  ;;  %v3104_v12 = vrot.slane %v2849_v37, %v6706_v29  ;;  %v2848_v5 = vsel %vm237_vm1, 0.0, %v2816_v20  ;;  %v3072_v15 = vrot.slane %v2863_v32, %v6706_v29  ;;  %5584 = vmatprep.subr.bf16.mxu1 %v6435_v0 }
 0x254   :  { %v3063_v33 = vrot.slane %v3049_v34, %v6706_v29  ;;  %v3064_v35 = vcombine.high %v3056_v14, %v3056_v14  ;;  %v3409_v58 = vcombine.low %v3048_v24, %v3056_v14  ;;  %v3073_v25 = vcombine.high %v2848_v5, %v2848_v5  ;;  %5585 = vmatpush3.bf16.msra.mxu1 %v6435_v0 }
 0x255   :  { %v3111_v51 = vrot.slane %v3097_v36, %v6706_v29  ;;  %v3112_v62 = vcombine.high %v3104_v12, %v3104_v12  ;;  %v3466_v4 = vcombine.low %v3104_v12, %v3104_v12  ;;  %v2698_v60 = vrot.slane %v7974_v39, %v6706_v29 }
 0x256   :  { %v3423_v61 = vrot.slane %v3409_v58, %v6706_v29  ;;  %v3065_v55 = vcombine.high %v3063_v33, %v3063_v33  ;;  %v7984_v59 = vcombine.low %v3064_v35, %v3063_v33  ;;  %v7994_v57 = vrot.slane %v2848_v5, %v6706_v29  ;;  %v6436_v5 = vld [vmem:[%s9062_s3 + $0x10] sm:$0xff]  }
 0x257   :  { %v3113_v2 = vcombine.high %v3111_v51, %v3111_v51  ;;  %v8002_v43 = vsel %vm1170_vm4, %v3779_v7, %v3781_v8  ;;  %v3120_v50 = vrot.slane %v2865_v38, %v6706_v29  ;;  %v8005_v26 = vcombine.low %v3112_v62, %v3111_v51  ;;  %5586 = vmatprep.subr.bf16.mxu1 %v6436_v5 }
 0x258   :  { %v7982_v52 = vcombine.low %v3416_v21, %v3423_v61  ;;  %v8007_v30 = vcombine.low %v3065_v55, %v3072_v15  ;;  %v8010_v24 = vsel %vm237_vm1, %v2816_v20, 0.0  ;;  %v8013_v18 = vrot.slane %v3466_v4, %v6706_v29  ;;  %5587 = vmatpush3.bf16.msra.mxu1 %v6436_v5 }
 0x259   :  { %v3433_v13 = vrot.slane %v7984_v59, %v6706_v29  ;;  %v6091_v7 = vpack.i.bf16 %v4045_v42, %v7878_v44  ;;  %v6131_v16 = vpack.i.bf16 %v8002_v43, %v3780_v23  ;;  %v8022_v17 = vcombine.low %v3113_v2, %v3120_v50 }
 0x25a   :  { %v8025_v20 = vrot.slane %v3073_v25, %v6706_v29  ;;  %v4047_v37 = vsel %vm1441_vm6, %v4044_v56, %v4046_v63  ;;  %v3944_v34 = vrot.slane %v7872_v46, 3  ;;  %v3088_v14 = vcombine.high %v7994_v57, %v7994_v57 }
 0x25b   :  { %v3096_v44 = vrot.slane %v8010_v24, %v6706_v29  ;;  %6092 = vrot.lane.b32.xlu1 %v6091_v7, %s6476_s23  ;;  %6132 = vrot.lane.b32.xlu0 %v6131_v16, %s6473_s16  ;;  %v3946_v23 = vrot.slane %v7889_v49, 3  ;;  %v4206_v48 = vrot.slane %v7864_v31, 5  ;;  %v3440_v36 = vrot.slane %v8007_v30, %v6706_v29 }
 0x25c   :  { %v4208_v12 = vrot.slane %v7872_v46, 5  ;;  %v4048_v33 = vrot.slane %v7889_v49, 4  ;;  %v3677_v35 = vrot.slane %v7864_v31, 1  ;;  %v6096_v21 = vpack.i.bf16 %v4047_v37, %v4045_v42 }
 0x25d   :  { %v3945_v51 = vsel %vm1338_vm5, %v3942_v41, %v3944_v34  ;;  %v3947_v56 = vsel %vm1338_vm5, %v3944_v34, %v3946_v23  ;;  %v3679_v32 = vrot.slane %v7872_v46, 1  ;;  %v4207_v55 = vsel %vm1607_vm7, %v4204_v9, %v4206_v48 }
 0x25e   :  { %v6136_v62 = vpack.i.bf16 %v3947_v56, %v3945_v51  ;;  %v4209_v41 = vsel %vm1607_vm7, %v4206_v48, %v4208_v12  ;;  %v4049_v38 = vsel %vm1441_vm6, %v4046_v63, %v4048_v33  ;;  %v3678_v2 = vsel %vm1068_vm3, %v3675_v11, %v3677_v35  ;;  %v6437_v48 = vld [vmem:[%s9062_s3 + $0x18] sm:$0xff]  }
 0x25f   :  { %v5576_v58 = vpop.f32.mrb[12].mxu0  ;;  %6097 = vrot.lane.b32.xlu1 %v6096_v21, %s6477_s24  ;;  %v6101_v10 = vpack.i.bf16 %v4209_v41, %v4207_v55  ;;  %v3680_v15 = vsel %vm1068_vm3, %v3677_v35, %v3679_v32  ;;  %v6141_v9 = vpack.i.bf16 %v4049_v38, %v4047_v37  ;;  %v3681_v50 = vrot.slane %v7889_v49, 1  ;;  %5588 = vmatprep.subr.bf16.mxu1 %v6437_v48 }
 0x260   :  { %v2124_v61 = vpop.f32.mrb[13].mxu0  ;;  %v2133_v25 = vadd.f32 %v5576_v58, %v7721_v6  ;;  %6137 = vrot.lane.b32.xlu0 %v6136_v62, %s6475_s20  ;;  %v3683_v63 = vrot.slane %v7982_v52, 1  ;;  %v4050_v7 = vrot.slane %v7982_v52, 4  ;;  %v6106_v16 = vpack.i.bf16 %v3680_v15, %v3678_v2  ;;  %5589 = vmatpush3.bf16.msra.mxu1 %v6437_v48 }
 0x261   :  { %v5577_v4 = vpop.f32.mrb[14].mxu0  ;;  %v2125_v34 = vadd.f32 %v7721_v6, %v2124_v61  ;;  %v2394_v58 = vcombine.high %v7962_v19, %v7962_v19  ;;  %v3682_v61 = vsel %vm1068_vm3, %v3679_v32, %v3681_v50  ;;  %v3783_v41 = vrot.slane %v7982_v52, 2  ;;  %v6438_v32 = vld [vmem:[%s9062_s3 + $0x20] ss:$0 sps:$4 sm:$0xff]  }
 0x262   :  { %v2127_v42 = vpop.f32.mrb[15].mxu0  ;;  %v2169_v0 = vmax.f32 %v2133_v25, 0.0  ;;  %v2136_v11 = vadd.f32 %v5577_v4, %v7721_v6  ;;  %v3684_v37 = vsel %vm1068_vm3, %v3681_v50, %v3683_v63  ;;  %v8080_v35 = vsel %vm1441_vm6, %v4048_v33, %v4050_v7  ;;  %5613 = vmatprep.subr.msk.bf16.mxu1 %vm1441_vm6, %v6438_v32 }
 0x263   :  { %v2128_v21 = vadd.f32 %v7721_v6, %v2127_v42  ;;  %6102 = vrot.lane.b32.xlu1 %v6101_v10, %s6478_s25  ;;  %v6146_v5 = vpack.i.bf16 %v8080_v35, %v4049_v38  ;;  %v2167_v62 = vmax.f32 %v2125_v34, 0.0  ;;  %v6121_v4 = vpack.i.bf16 %v3684_v37, %v3682_v61 }
 0x264   :  { %v2428_v51 = vcombine.high %v2169_v0, %v2169_v0  ;;  %v2435_v56 = vrot.slane %v2169_v0, %v6706_v29  ;;  %6142 = vrot.lane.b32.xlu0 %v6141_v9, %s6476_s23  ;;  %v2170_v55 = vmax.f32 %v2136_v11, 0.0  ;;  %v4210_v10 = vrot.slane %v7889_v49, 5 }
 0x265   :  { %v2168_v33 = vmax.f32 %v2128_v21, 0.0  ;;  %v2395_v38 = vcombine.high %v2167_v62, %v2167_v62  ;;  %v2402_v2 = vrot.slane %v2167_v62, %v6706_v29  ;;  %v3784_v50 = vsel %vm1170_vm4, %v3781_v8, %v3783_v41 }
 0x266   :  { %v2442_v19 = vrot.slane %v2428_v51, %v6706_v29  ;;  %v2443_v6 = vcombine.high %v2435_v56, %v2435_v56  ;;  %v2444_v15 = vcombine.high %v2170_v55, %v2170_v55  ;;  %v2451_v25 = vrot.slane %v2170_v55, %v6706_v29 }
 0x267   :  { %6107 = vrot.lane.b32.xlu1 %v6106_v16, %s6469_s17  ;;  %v2411_v42 = vcombine.high %v2168_v33, %v2168_v33  ;;  %v2418_v9 = vrot.slane %v2168_v33, %v6706_v29  ;;  %v4212_v0 = vrot.slane %v7982_v52, 5  ;;  %v2409_v34 = vrot.slane %v2395_v38, %v6706_v29 }
 0x268   :  { %6147 = vrot.lane.b32.xlu0 %v6146_v5, %s6477_s24  ;;  %v2691_v11 = vcombine.low %v2394_v58, %v2402_v2  ;;  %v2458_v48 = vrot.slane %v2444_v15, %v6706_v29  ;;  %v2459_v37 = vcombine.high %v2451_v25, %v2451_v25  ;;  %v8113_v16 = vcombine.low %v3433_v13, %v3440_v36 }
 0x269   :  { %v2725_v21 = vcombine.low %v2443_v6, %v2442_v19  ;;  %v2425_v8 = vrot.slane %v2411_v42, %v6706_v29  ;;  %v2426_v51 = vcombine.high %v2418_v9, %v2418_v9  ;;  %v2410_v61 = vcombine.high %v2409_v34, %v2409_v34 }
 0x26a   :  { %v2705_v58 = vrot.slane %v2691_v11, %v6706_v29  ;;  %v2460_v5 = vcombine.high %v2458_v48, %v2458_v48  ;;  %v2741_v62 = vcombine.low %v2451_v25, %v2459_v37  ;;  %v6126_v33 = vpack.i.bf16 %v3784_v50, %v8002_v43 }
 0x26b   :  { %6122 = vrot.lane.b32.xlu1 %v6121_v4, %s6469_s17  ;;  %v2427_v55 = vcombine.high %v2425_v8, %v2425_v8  ;;  %v2708_v30 = vcombine.low %v2418_v9, %v2426_v51  ;;  %v4213_v59 = vsel %vm1607_vm7, %v4210_v10, %v4212_v0  ;;  %v2707_v36 = vcombine.low %v2409_v34, %v2410_v61 }
 0x26c   :  { %v2706_v13 = vcombine.low %v2698_v60, %v2705_v58  ;;  %v2742_v19 = vcombine.low %v2458_v48, %v2460_v5  ;;  %v4211_v6 = vsel %vm1607_vm7, %v4208_v12, %v4210_v10  ;;  %v3785_v43 = vrot.slane %v8113_v16, 2 }
 0x26d   :  { %v2722_v4 = vrot.slane %v2708_v30, %v6706_v29  ;;  %v2724_v32 = vcombine.low %v2427_v55, %v2435_v56  ;;  %v6151_v38 = vpack.i.bf16 %v4213_v59, %v4211_v6  ;;  %v2715_v2 = vrot.slane %v2707_v36, %v6706_v29 }
 0x26e   :  { %v2818_v15 = vrot.slane %v2706_v13, 7  ;;  %v2749_v25 = vrot.slane %v2741_v62, %v6706_v29  ;;  %v2756_v39 = vrot.slane %v2742_v19, %v6706_v29  ;;  %v2739_v60 = vrot.slane %v2725_v21, %v6706_v29 }
 0x26f   :  { %v2732_v42 = vrot.slane %v2724_v32, %v6706_v29  ;;  %6127 = vrot.lane.b32.xlu1 %v6126_v33, %s6471_s12  ;;  %6152 = vrot.lane.b32.xlu0 %v6151_v38, %s6478_s25  ;;  %v8141_v12 = vsel %vm1170_vm4, %v3783_v41, %v3785_v43  ;;  %v3089_v56 = vcombine.high %v8025_v20, %v8025_v20  ;;  %v4312_v19 = vrot.slane %v7982_v52, 6 }
 0x270   :  { %v2850_v10 = vsel %vm237_vm1, 0.0, %v2818_v15  ;;  %v2757_v9 = vcombine.low %v2749_v25, %v2756_v39  ;;  %v2723_v34 = vcombine.low %v2715_v2, %v2722_v4  ;;  %v3481_v11 = vrot.slane %v8005_v26, %v6706_v29 }
 0x271   :  { %v3121_v48 = vcombine.high %v2850_v10, %v2850_v10  ;;  %v3128_v37 = vrot.slane %v2850_v10, %v6706_v29  ;;  %v2740_v21 = vcombine.low %v2732_v42, %v2739_v60  ;;  %v3442_v41 = vcombine.low %v7994_v57, %v3088_v14 }
 0x272   :  { %v2821_v8 = vrot.slane %v2757_v9, 7  ;;  %v2819_v51 = vrot.slane %v2723_v34, 7  ;;  %v6161_v61 = vpack.i.bf16 %v8141_v12, %v3784_v50  ;;  %v3491_v58 = vrot.slane %v8022_v17, %v6706_v29 }
 0x273   :  { %v3465_v5 = vrot.slane %v3096_v44, %v6706_v29  ;;  %v3135_v62 = vrot.slane %v3121_v48, %v6706_v29  ;;  %v3136_v55 = vcombine.high %v3128_v37, %v3128_v37  ;;  %v3443_v30 = vcombine.low %v8025_v20, %v3089_v56 }
 0x274   :  { %v2853_v33 = vsel %vm237_vm1, 0.0, %v2821_v8  ;;  %v2820_v57 = vrot.slane %v2740_v21, 7  ;;  %v2851_v14 = vsel %vm237_vm1, 0.0, %v2819_v51  ;;  %6162 = vrot.lane.b32.xlu1 %v6161_v61, %s6473_s16  ;;  %v3450_v24 = vrot.slane %v3442_v41, %v6706_v29 }
 0x275   :  { %v3137_v50 = vcombine.high %v3135_v62, %v3135_v62  ;;  %v3484_v59 = vcombine.low %v3128_v37, %v3136_v55  ;;  %v3193_v17 = vcombine.high %v2853_v33, %v2853_v33  ;;  %v3200_v13 = vrot.slane %v2853_v33, %v6706_v29 }
 0x276   :  { %v2866_v44 = vsel %vm237_vm1, %v2818_v15, 0.0  ;;  %v3145_v36 = vcombine.high %v2851_v14, %v2851_v14  ;;  %v3457_v38 = vrot.slane %v3443_v30, %v6706_v29  ;;  %v2868_v2 = vsel %vm237_vm1, %v2820_v57, 0.0 }
 0x277   :  { %v3498_v20 = vrot.slane %v3484_v59, %v6706_v29  ;;  %v3500_v6 = vcombine.low %v3135_v62, %v3137_v50  ;;  %v3207_v4 = vrot.slane %v3193_v17, %v6706_v29  ;;  %v3208_v32 = vcombine.high %v3200_v13, %v3200_v13 }
 0x278   :  { %v3152_v25 = vrot.slane %v2851_v14, %v6706_v29  ;;  %v4310_v39 = vrot.slane %v7889_v49, 6  ;;  %v3144_v60 = vrot.slane %v2866_v44, %v6706_v29  ;;  %v2852_v56 = vsel %vm237_vm1, 0.0, %v2820_v57 }
 0x279   :  { %v8176_v15 = vcombine.low %v3491_v58, %v3498_v20  ;;  %v3552_v42 = vcombine.low %v3208_v32, %v3207_v4  ;;  %v8180_v10 = vsel %vm1060_vm2, %v3465_v5, 0.0  ;;  %v2869_v9 = vsel %vm237_vm1, %v2821_v8, 0.0 }
 0x27a   :  { %v2867_v34 = vsel %vm237_vm1, %v2819_v51, 0.0  ;;  %v4313_v48 = vsel %vm1060_vm2, %v4310_v39, %v4312_v19  ;;  %v3508_v21 = vrot.slane %v3500_v6, %v6706_v29  ;;  %v3159_v41 = vrot.slane %v3145_v36, %v6706_v29 }
 0x27b   :  { %v3192_v61 = vrot.slane %v2868_v2, %v6706_v29  ;;  %v3501_v58 = vcombine.low %v3144_v60, %v3152_v25  ;;  %v8192_v55 = vcombine.low %v3450_v24, %v3457_v38  ;;  %v3169_v5 = vcombine.high %v2852_v56, %v2852_v56 }
 0x27c   :  { %v4311_v8 = vsel %vm1060_vm2, %v4308_v40, %v4310_v39  ;;  %v3948_v51 = vrot.slane %v7982_v52, 3  ;;  %v3566_v33 = vrot.slane %v3552_v42, %v6706_v29  ;;  %v3209_v17 = vcombine.high %v3207_v4, %v3207_v4 }
 0x27d   :  { %v8185_v37 = vpop.f32.mrb[16].mxu0  ;;  %v3515_v57 = vrot.slane %v3501_v58, %v6706_v29  ;;  %v3551_v14 = vcombine.low %v3192_v61, %v3200_v13  ;;  %v6156_v50 = vpack.i.bf16 %v4313_v48, %v4311_v8  ;;  %v3216_v24 = vrot.slane %v2869_v9, %v6706_v29 }
 0x27e   :  { %v8190_v62 = vpop.f32.mrb[17].mxu0  ;;  %v3160_v44 = vcombine.high %v3152_v25, %v3152_v25  ;;  %v3168_v36 = vrot.slane %v2867_v34, %v6706_v29  ;;  %v3161_v20 = vcombine.high %v3159_v41, %v3159_v41  ;;  %v3950_v32 = vrot.slane %v8113_v16, 3 }
 0x27f   :  { %v8198_v30 = vpop.f32.mrb[18].mxu0  ;;  %v8206_v40 = vcombine.low %v3508_v21, %v3515_v57  ;;  %v3559_v6 = vrot.slane %v3551_v14, %v6706_v29  ;;  %6157 = vrot.lane.b32.xlu0 %v6156_v50, %s6479_s26  ;;  %v8212_v13 = vrot.slane %v2852_v56, %v6706_v29  ;;  %v8215_v38 = vrot.slane %v3169_v5, %v6706_v29 }
 0x280   :  { %v8202_v59 = vpop.f32.mrb[19].mxu0  ;;  %v3949_v4 = vsel %vm1338_vm5, %v3946_v23, %v3948_v51  ;;  %v4314_v2 = vrot.slane %v8113_v16, 6  ;;  %v3951_v39 = vsel %vm1338_vm5, %v3948_v51, %v3950_v32  ;;  %v4316_v60 = vrot.slane %v8192_v55, 6 }
 0x281   :  { %v8221_v25 = vcombine.low %v3559_v6, %v3566_v33  ;;  %v4052_v42 = vrot.slane %v8113_v16, 4  ;;  %v8226_v9 = vcombine.low %v3209_v17, %v3216_v24  ;;  %v8228_v56 = vcombine.low %v3160_v44, %v3159_v41 }
 0x282   :  { %v6166_v34 = vpack.i.bf16 %v3951_v39, %v3949_v4  ;;  %v3787_v48 = vrot.slane %v8192_v55, 2  ;;  %v4315_v21 = vsel %vm1060_vm2, %v4312_v19, %v4314_v2  ;;  %v4317_v23 = vsel %vm1060_vm2, %v4314_v2, %v4316_v60 }
 0x283   :  { %v4053_v61 = vsel %vm1441_vm6, %v4050_v7, %v4052_v42  ;;  %v4054_v58 = vrot.slane %v8192_v55, 4  ;;  %v3482_v41 = vcombine.low %v8013_v18, %v3481_v11  ;;  %v8243_v5 = vcombine.low %v3161_v20, %v3168_v36  ;;  %v6439_v20 = vld [vmem:[%s9061_s2] ss:$0 sm:$0xff] }
 0x284   :  { %6167 = vrot.lane.b32.xlu1 %v6166_v34, %s6475_s20  ;;  %v6191_v19 = vpack.i.bf16 %v4317_v23, %v4315_v21  ;;  %v3871_v8 = vrot.slane %v8180_v10, 2  ;;  %v3184_v51 = vcombine.high %v8212_v13, %v8212_v13  ;;  %v3788_v7 = vsel %vm1170_vm4, %v3785_v43, %v3787_v48 }
 0x285   :  { %v4214_v33 = vrot.slane %v8113_v16, 5  ;;  %v4216_v26 = vrot.slane %v8192_v55, 5  ;;  %v3185_v18 = vcombine.high %v8215_v38, %v8215_v38  ;;  %v6171_v11 = vpack.i.bf16 %v4053_v61, %v8080_v35 }
 0x286   :  { %6192 = vrot.lane.b32.xlu0 %v6191_v19, %s6479_s26  ;;  %v8259_v57 = vsel %vm1441_vm6, %v4052_v42, %v4054_v58  ;;  %v3872_v14 = vsel %vm1170_vm4, %v3787_v48, %v3871_v8  ;;  %v3576_v50 = vrot.slane %v8226_v9, %v6706_v29  ;;  %v3525_v43 = vrot.slane %v8228_v56, %v6706_v29 }
 0x287   :  { %v4217_v17 = vsel %vm1607_vm7, %v4214_v33, %v4216_v26  ;;  %v3952_v24 = vrot.slane %v8192_v55, 3  ;;  %v3532_v35 = vrot.slane %v8243_v5, %v6706_v29  ;;  %v6196_v44 = vpack.i.bf16 %v3788_v7, %v8141_v12 }
 0x288   :  { %6172 = vrot.lane.b32.xlu1 %v6171_v11, %s6476_s23  ;;  %v3687_v36 = vrot.slane %v8192_v55, 1  ;;  %v2149_v6 = vadd.f32 %v6439_v20, %v8185_v37  ;;  %v6176_v4 = vpack.i.bf16 %v8259_v57, %v4053_v61  ;;  %v6201_v2 = vpack.i.bf16 %v3872_v14, %v3788_v7 }
 0x289   :  { %v4215_v39 = vsel %vm1607_vm7, %v4212_v0, %v4214_v33  ;;  %v2141_v42 = vadd.f32 %v6439_v20, %v8190_v62  ;;  %v3954_v34 = vrot.slane %v8180_v10, 3  ;;  %v3685_v48 = vrot.slane %v8113_v16, 1 }
 0x28a   :  { %6197 = vrot.lane.b32.xlu0 %v6196_v44, %s6471_s12  ;;  %v6181_v12 = vpack.i.bf16 %v4217_v17, %v4215_v39  ;;  %v2173_v21 = vmax.f32 %v2149_v6, 0.0  ;;  %v3953_v23 = vsel %vm1338_vm5, %v3950_v32, %v3952_v24  ;;  %v2152_v61 = vadd.f32 %v6439_v20, %v8198_v30 }
 0x28b   :  { %v2171_v37 = vmax.f32 %v2141_v42, 0.0  ;;  %v8290_v19 = vsel %vm1060_vm2, 0.0, %v3482_v41  ;;  %v3955_v0 = vsel %vm1338_vm5, %v3952_v24, %v3954_v34  ;;  %v3688_v62 = vsel %vm1068_vm3, %v3685_v48, %v3687_v36 }
 0x28c   :  { %6177 = vrot.lane.b32.xlu1 %v6176_v4, %s6477_s24  ;;  %v4056_v8 = vrot.slane %v8180_v10, 4  ;;  %v2494_v7 = vcombine.high %v2173_v21, %v2173_v21  ;;  %v2174_v14 = vmax.f32 %v2152_v61, 0.0  ;;  %v3691_v32 = vrot.slane %v8176_v15, 1 }
 0x28d   :  { %v2461_v33 = vcombine.high %v2171_v37, %v2171_v37  ;;  %v2468_v11 = vrot.slane %v2171_v37, %v6706_v29  ;;  %v3686_v30 = vsel %vm1068_vm3, %v3683_v63, %v3685_v48  ;;  %v2501_v41 = vrot.slane %v2173_v21, %v6706_v29 }
 0x28e   :  { %6202 = vrot.lane.b32.xlu0 %v6201_v2, %s6473_s16  ;;  %v2508_v17 = vrot.slane %v2494_v7, %v6706_v29  ;;  %v3689_v24 = vrot.slane %v8290_v19, 1  ;;  %v4057_v44 = vsel %vm1441_vm6, %v4054_v58, %v4056_v8  ;;  %v2511_v6 = vcombine.high %v2174_v14, %v2174_v14 }
 0x28f   :  { %v2475_v36 = vrot.slane %v2461_v33, %v6706_v29  ;;  %v2518_v4 = vrot.slane %v2174_v14, %v6706_v29  ;;  %v6206_v2 = vpack.i.bf16 %v3955_v0, %v3953_v23  ;;  %v6186_v39 = vpack.i.bf16 %v3688_v62, %v3686_v30 }
 0x290   :  { %6182 = vrot.lane.b32.xlu1 %v6181_v12, %s6478_s25  ;;  %v2510_v42 = vcombine.high %v2508_v17, %v2508_v17  ;;  %v2476_v34 = vcombine.high %v2468_v11, %v2468_v11  ;;  %v2525_v63 = vrot.slane %v2511_v6, %v6706_v29  ;;  %v3692_v21 = vsel %vm1068_vm3, %v3689_v24, %v3691_v32 }
 0x291   :  { %v2526_v48 = vcombine.high %v2518_v4, %v2518_v4  ;;  %v2144_v58 = vadd.f32 %v6439_v20, %v8202_v59  ;;  %v6211_v37 = vpack.i.bf16 %v4057_v44, %v8259_v57  ;;  %v2509_v61 = vcombine.high %v2501_v41, %v2501_v41 }
 0x292   :  { %6207 = vrot.lane.b32.xlu0 %v6206_v2, %s6475_s20  ;;  %v2792_v7 = vcombine.low %v2510_v42, %v2518_v4  ;;  %v3690_v12 = vsel %vm1068_vm3, %v6745_v47, %v3689_v24  ;;  %v2477_v62 = vcombine.high %v2475_v36, %v2475_v36  ;;  %v3791_v33 = vrot.slane %v8176_v15, 2 }
 0x293   :  { %v2793_v23 = vcombine.low %v2526_v48, %v2525_v63  ;;  %v2172_v0 = vmax.f32 %v2144_v58, 0.0  ;;  %v2758_v11 = vcombine.low %v2476_v34, %v2475_v36  ;;  %v6231_v59 = vpack.i.bf16 %v3692_v21, %v3690_v12 }
 0x294   :  { %6187 = vrot.lane.b32.xlu1 %v6186_v39, %s6469_s17  ;;  %v2800_v14 = vrot.slane %v2792_v7, %v6706_v29  ;;  %v3789_v20 = vrot.slane %v8290_v19, 2  ;;  %v3534_v57 = vcombine.low %v8212_v13, %v3184_v51  ;;  %v3535_v24 = vcombine.low %v8215_v38, %v3185_v18 }
 0x295   :  { %v2807_v47 = vrot.slane %v2793_v23, %v6706_v29  ;;  %v2478_v30 = vcombine.high %v2172_v0, %v2172_v0  ;;  %v2485_v17 = vrot.slane %v2172_v0, %v6706_v29  ;;  %v4139_v36 = vsel %vm1441_vm6, %v4056_v8, %v7085_v22 }
 0x296   :  { %6212 = vrot.lane.b32.xlu0 %v6211_v37, %s6476_s23  ;;  %v4218_v6 = vrot.slane %v8180_v10, 5  ;;  %v3793_v4 = vrot.slane %v8206_v40, 2  ;;  %v3792_v39 = vsel %vm1170_vm4, %v3789_v20, %v3791_v33  ;;  %v2776_v42 = vcombine.low %v2501_v41, %v2509_v61 }
 0x297   :  { %v8337_v13 = vcombine.low %v2800_v14, %v2807_v47  ;;  %v2492_v51 = vrot.slane %v2478_v30, %v6706_v29  ;;  %v2759_v2 = vcombine.low %v2477_v62, %v2485_v17  ;;  %v2766_v34 = vrot.slane %v2758_v11, %v6706_v29 }
 0x298   :  { %6232 = vrot.lane.b32.xlu1 %v6231_v59, %s6469_s17  ;;  %v6216_v38 = vpack.i.bf16 %v4139_v36, %v4057_v44  ;;  %v3790_v18 = vsel %vm1170_vm4, %v6767_v3, %v3789_v20  ;;  %v4219_v21 = vsel %vm1607_vm7, %v4216_v26, %v4218_v6  ;;  %v8356_v41 = vcombine.low %v3525_v43, %v3532_v35 }
 0x299   :  { %v2824_v8 = vrot.slane %v8337_v13, 7  ;;  %v2493_v63 = vcombine.high %v2492_v51, %v2492_v51  ;;  %v2773_v48 = vrot.slane %v2759_v2, %v6706_v29  ;;  %v6236_v3 = vpack.i.bf16 %v3792_v39, %v3790_v18  ;;  %v8362_v37 = vpop.permute.xlu0 %6032 }
 0x29a   :  { %6217 = vrot.lane.b32.xlu0 %v6216_v38, %s6477_s24  ;;  %v4220_v44 = vsel %vm1607_vm7, %v4218_v6, %v7144_v54  ;;  %v4318_v58 = vrot.slane %v8180_v10, 6  ;;  %v8367_v5 = vsel %vm1170_vm4, %v3791_v33, %v3793_v4  ;;  %v3959_v56 = vrot.slane %v8206_v40, 3 }
 0x29b   :  { %v2774_v61 = vcombine.low %v2766_v34, %v2773_v48  ;;  %v2775_v26 = vcombine.low %v2492_v51, %v2493_v63  ;;  %v3549_v43 = vrot.slane %v3535_v24, %v6706_v29  ;;  %v2790_v35 = vrot.slane %v2776_v42, %v6706_v29 }
 0x29c   :  { %v2856_v7 = vsel %vm237_vm1, 0.0, %v2824_v8  ;;  %6237 = vrot.lane.b32.xlu1 %v6236_v3, %s6471_s12  ;;  %v6221_v10 = vpack.i.bf16 %v4220_v44, %v4219_v21  ;;  %v4319_v0 = vsel %vm1060_vm2, %v4316_v60, %v4318_v58  ;;  %v3957_v62 = vrot.slane %v8176_v15, 3 }
 0x29d   :  { %v2783_v12 = vrot.slane %v2775_v26, %v6706_v29  ;;  %v2822_v23 = vrot.slane %v2774_v61, 7  ;;  %v3542_v33 = vrot.slane %v3534_v57, %v6706_v29  ;;  %v6241_v11 = vpack.i.bf16 %v8367_v5, %v3792_v39 }
 0x29e   :  { %6222 = vrot.lane.b32.xlu0 %v6221_v10, %s6478_s25  ;;  %v4320_v14 = vsel %vm1060_vm2, %v4318_v58, %v7158_v45  ;;  %v3956_v59 = vrot.slane %v8290_v19, 3  ;;  %v3265_v20 = vcombine.high %v2856_v7, %v2856_v7  ;;  %v3960_v55 = vsel %vm1338_vm5, %v3957_v62, %v3959_v56 }
 0x29f   :  { %v2791_v47 = vcombine.low %v2783_v12, %v2790_v35  ;;  %v2854_v30 = vsel %vm237_vm1, 0.0, %v2822_v23  ;;  %v8391_v57 = vcombine.low %v3542_v33, %v3549_v43  ;;  %v6226_v24 = vpack.i.bf16 %v4320_v14, %v4319_v0 }
 0x2a0   :  { %v8389_v60 = vpop.permute.xlu0 %6037  ;;  %v3217_v17 = vcombine.high %v2854_v30, %v2854_v30  ;;  %6242 = vrot.lane.b32.xlu1 %v6241_v11, %s6473_s16  ;;  %v4322_v36 = vrot.slane %v8206_v40, 6  ;;  %v3224_v13 = vrot.slane %v2854_v30, %v6706_v29  ;;  %v3958_v51 = vsel %vm1338_vm5, %v3956_v59, %v3957_v62 }
 0x2a1   :  { %v2823_v6 = vrot.slane %v2791_v47, 7  ;;  %v4324_v2 = vrot.slane %v8356_v41, 6  ;;  %v2870_v39 = vsel %vm237_vm1, %v2822_v23, 0.0  ;;  %v6246_v34 = vpack.i.bf16 %v3960_v55, %v3958_v51 }
 0x2a2   :  { %v3231_v42 = vrot.slane %v3217_v17, %v6706_v29  ;;  %6227 = vrot.lane.b32.xlu0 %v6226_v24, %s6479_s26  ;;  %v4321_v38 = vrot.slane %v8176_v15, 6  ;;  %v3279_v18 = vrot.slane %v3265_v20, %v6706_v29  ;;  %v3232_v48 = vcombine.high %v3224_v13, %v3224_v13 }
 0x2a3   :  { %v2855_v63 = vsel %vm237_vm1, 0.0, %v2823_v6  ;;  %v4325_v21 = vsel %vm1060_vm2, %v4322_v36, %v4324_v2  ;;  %v3240_v26 = vrot.slane %v2870_v39, %v6706_v29  ;;  %v4059_v10 = vrot.slane %v8176_v15, 4 }
 0x2a4   :  { %v3233_v3 = vcombine.high %v3231_v42, %v3231_v42  ;;  %v3241_v44 = vcombine.high %v2855_v63, %v2855_v63  ;;  %v8408_v58 = vrot.slane %v2855_v63, %v6706_v29  ;;  %6247 = vrot.lane.b32.xlu1 %v6246_v34, %s6475_s20  ;;  %v4323_v61 = vsel %vm1060_vm2, %v4321_v38, %v4322_v36  ;;  %v8414_v12 = vpop.permute.xlu0 %6052 }
 0x2a5   :  { %v3569_v43 = vcombine.low %v3224_v13, %v3232_v48  ;;  %v6271_v35 = vpack.i.bf16 %v4325_v21, %v4323_v61  ;;  %v2872_v23 = vsel %vm237_vm1, %v2824_v8, 0.0  ;;  %v3272_v0 = vrot.slane %v2856_v7, %v6706_v29 }
 0x2a6   :  { %v3585_v62 = vcombine.low %v3231_v42, %v3233_v3  ;;  %v4058_v33 = vrot.slane %v8290_v19, 4  ;;  %v3281_v11 = vcombine.high %v3279_v18, %v3279_v18  ;;  %v3586_v59 = vcombine.low %v3240_v26, %v8408_v58 }
 0x2a7   :  { %v3583_v14 = vrot.slane %v3569_v43, %v6706_v29  ;;  %6272 = vrot.lane.b32.xlu0 %v6271_v35, %s6479_s26  ;;  %v4061_v20 = vrot.slane %v8206_v40, 4  ;;  %v3255_v47 = vrot.slane %v3241_v44, %v6706_v29  ;;  %v3795_v7 = vrot.slane %v8356_v41, 2 }
 0x2a8   :  { %v3593_v30 = vrot.slane %v3585_v62, %v6706_v29  ;;  %v4060_v8 = vsel %vm1441_vm6, %v4058_v33, %v4059_v10  ;;  %v3600_v17 = vrot.slane %v3586_v59, %v6706_v29  ;;  %v4063_v36 = vrot.slane %v8356_v41, 4  ;;  %v8444_v63 = vpop.permute.xlu0 %6057 }
 0x2a9   :  { %v8430_v55 = vcombine.low %v3576_v50, %v3583_v14  ;;  %v4062_v24 = vsel %vm1441_vm6, %v4059_v10, %v4061_v20  ;;  %v3280_v13 = vcombine.high %v3272_v0, %v3272_v0  ;;  %v2871_v51 = vsel %vm237_vm1, %v2823_v6, 0.0 }
 0x2aa   :  { %v6251_v39 = vpack.i.bf16 %v4062_v24, %v4060_v8  ;;  %v3796_v42 = vsel %vm1170_vm4, %v3793_v4, %v3795_v7  ;;  %v8439_v34 = vcombine.low %v3593_v30, %v3600_v17  ;;  %v4064_v50 = vsel %vm1441_vm6, %v4061_v20, %v4063_v36 }
 0x2ab   :  { %v6276_v9 = vpack.i.bf16 %v3796_v42, %v8367_v5  ;;  %v3797_v38 = vrot.slane %v8391_v57, 2  ;;  %v3288_v48 = vrot.slane %v2872_v23, %v6706_v29  ;;  %v3620_v21 = vcombine.low %v3279_v18, %v3281_v11 }
 0x2ac   :  { %v3257_v3 = vcombine.high %v3255_v47, %v3255_v47  ;;  %6252 = vrot.lane.b32.xlu1 %v6251_v39, %s6476_s23  ;;  %v4222_v5 = vrot.slane %v8206_v40, 5  ;;  %v4224_v6 = vrot.slane %v8356_v41, 5  ;;  %v3963_v44 = vrot.slane %v8391_v57, 3 }
 0x2ad   :  { %6277 = vrot.lane.b32.xlu0 %v6276_v9, %s6471_s12  ;;  %v8452_v4 = vsel %vm1170_vm4, %v3795_v7, %v3797_v38  ;;  %v3619_v61 = vcombine.low %v3272_v0, %v3280_v13  ;;  %v3264_v26 = vrot.slane %v2871_v51, %v6706_v29  ;;  %v6256_v18 = vpack.i.bf16 %v4064_v50, %v4062_v24  ;;  %v6043_v9 = vpop.permute.xlu1 %6042 }
 0x2ae   :  { %v3961_v43 = vrot.slane %v8356_v41, 3  ;;  %v3256_v35 = vcombine.high %v8408_v58, %v8408_v58  ;;  %v6291_v10 = vpack.i.bf16 %v8452_v4, %v3796_v42  ;;  %v4221_v23 = vrot.slane %v8176_v15, 5 }
 0x2af   :  { %v4225_v62 = vsel %vm1607_vm7, %v4222_v5, %v4224_v6  ;;  %v3634_v33 = vrot.slane %v3620_v21, %v6706_v29  ;;  %v3642_v0 = vrot.slane %v3288_v48, %v6706_v29  ;;  %v3603_v14 = vcombine.low %v3257_v3, %v3264_v26  ;;  %v8476_v30 = vpop.permute.xlu0 %6062 }
 0x2b0   :  { %6257 = vrot.lane.b32.xlu1 %v6256_v18, %s6477_s24  ;;  %v3964_v11 = vsel %vm1338_vm5, %v3961_v43, %v3963_v44  ;;  %v4223_v58 = vsel %vm1607_vm7, %v4221_v23, %v4222_v5  ;;  %v3693_v59 = vrot.slane %v8206_v40, 1  ;;  %v3695_v20 = vrot.slane %v8356_v41, 1 }
 0x2b1   :  { %6292 = vrot.lane.b32.xlu0 %v6291_v10, %s6473_s16  ;;  %v6261_v8 = vpack.i.bf16 %v4225_v62, %v4223_v58  ;;  %v3962_v7 = vsel %vm1338_vm5, %v3959_v56, %v3961_v43  ;;  %v4065_v17 = vrot.slane %v8391_v57, 4  ;;  %v3627_v24 = vrot.slane %v3619_v61, %v6706_v29 }
 0x2b2   :  { %v3602_v13 = vcombine.low %v3256_v35, %v3255_v47  ;;  %v6296_v51 = vpack.i.bf16 %v3964_v11, %v3962_v7  ;;  %v3696_v39 = vsel %vm1068_vm3, %v3693_v59, %v3695_v20  ;;  %v8485_v42 = vsel %vm1060_vm2, %v3642_v0, 0.0 }
 0x2b3   :  { %v4066_v48 = vsel %vm1441_vm6, %v4063_v36, %v4065_v17  ;;  %v8489_v21 = vcombine.low %v3627_v24, %v3634_v33  ;;  %v3617_v56 = vrot.slane %v3603_v14, %v6706_v29  ;;  %v3694_v47 = vsel %vm1068_vm3, %v3691_v32, %v3693_v59  ;;  %v8503_v23 = vpop.permute.xlu0 %6067 }
 0x2b4   :  { %6262 = vrot.lane.b32.xlu1 %v6261_v8, %s6478_s25  ;;  %v3697_v3 = vrot.slane %v8391_v57, 1  ;;  %v6035_v5 = vunpack.i.h.bf16 %v8362_v37  ;;  %v6266_v61 = vpack.i.bf16 %v3696_v39, %v3694_v47  ;;  %v3699_v26 = vrot.slane %v8221_v25, 1 }
 0x2b5   :  { %6297 = vrot.lane.b32.xlu0 %v6296_v51, %s6475_s20  ;;  %v4067_v18 = vrot.slane %v8221_v25, 4  ;;  %v3610_v36 = vrot.slane %v3602_v13, %v6706_v29  ;;  %v6034_v43 = vunpack.i.l.bf16 %v8362_v37  ;;  %v6301_v35 = vpack.i.bf16 %v4066_v48, %v4064_v50 }
 0x2b6   :  { %v3698_v10 = vsel %vm1068_vm3, %v3695_v20, %v3697_v3  ;;  %v6045_v62 = vunpack.i.h.bf16 %v6043_v9  ;;  %v3700_v32 = vsel %vm1068_vm3, %v3697_v3, %v3699_v26  ;;  %v4226_v0 = vrot.slane %v8391_v57, 5  ;;  %v8523_v20 = vpop.permute.xlu1 %6047 }
 0x2b7   :  { %v8512_v33 = vsel %vm1441_vm6, %v4065_v17, %v4067_v18  ;;  %v8515_v37 = vcombine.low %v3610_v36, %v3617_v56  ;;  %v6044_v50 = vunpack.i.l.bf16 %v6043_v9  ;;  %v6039_v11 = vunpack.i.l.bf16 %v8389_v60  ;;  %v8552_v47 = vpop.permute.xlu0 %6072 }
 0x2b8   :  { %6267 = vrot.lane.b32.xlu1 %v6266_v61, %s6469_s17  ;;  %v3799_v14 = vrot.slane %v8221_v25, 2  ;;  %v4402_v58 = vsel %vm54_vm0, %v7769_v28, %v6035_v5  ;;  %v6040_v59 = vunpack.i.h.bf16 %v8389_v60  ;;  %v6281_v8 = vpack.i.bf16 %v3700_v32, %v3698_v10 }
 0x2b9   :  { %6302 = vrot.lane.b32.xlu0 %v6301_v35, %s6476_s23  ;;  %v4228_v7 = vrot.slane %v8221_v25, 5  ;;  %v4401_v17 = vsel %vm54_vm0, 0.0, %v6034_v43  ;;  %v6306_v24 = vpack.i.bf16 %v8512_v33, %v4066_v48  ;;  %v3801_v51 = vrot.slane %v8430_v55, 2 }
 0x2ba   :  { %v3800_v13 = vsel %vm1170_vm4, %v3797_v38, %v3799_v14  ;;  %v8534_v28 = vsel %vm54_vm0, %v7781_v27, %v6045_v62  ;;  %v4227_v60 = vsel %vm1607_vm7, %v4224_v6, %v4226_v0  ;;  %v4326_v9 = vrot.slane %v8391_v57, 6 }
 0x2bb   :  { %v4229_v39 = vsel %vm1607_vm7, %v4226_v0, %v4228_v7  ;;  %v8546_v38 = vsel %vm54_vm0, %v7777_v53, %v6044_v50  ;;  %v4421_v48 = vsel %vm1872_vm10, %v4401_v17, %v6039_v11  ;;  %v6050_v27 = vunpack.i.h.bf16 %v8523_v20 }
 0x2bc   :  { %6282 = vrot.lane.b32.xlu1 %v6281_v8, %s6469_s17  ;;  %v6054_v56 = vunpack.i.l.bf16 %v8414_v12  ;;  %v4422_v6 = vsel %vm1872_vm10, %v4402_v58, %v6040_v59  ;;  %v6055_v3 = vunpack.i.h.bf16 %v8414_v12  ;;  %v6286_v5 = vpack.i.bf16 %v3800_v13, %v8452_v4 }
 0x2bd   :  { %6307 = vrot.lane.b32.xlu0 %v6306_v24, %s6477_s24  ;;  %v4328_v61 = vrot.slane %v8221_v25, 6  ;;  %v6049_v53 = vunpack.i.l.bf16 %v8523_v20  ;;  %v6311_v36 = vpack.i.bf16 %v4229_v39, %v4227_v60  ;;  %v8560_v43 = vsel %vm1170_vm4, %v3799_v14, %v3801_v51  ;;  %v8575_v14 = vpop.permute.xlu1 %6082  ;;  %v6078_v60 = vpop.permute.xlu0 %6077 }
 0x2be   :  { %v3967_v35 = vrot.slane %v8430_v55, 3  ;;  %v6060_v10 = vunpack.i.h.bf16 %v8444_v63  ;;  %v4327_v12 = vsel %vm1060_vm2, %v4324_v2, %v4326_v9  ;;  %v4332_v62 = vrot.slane %v8439_v34, 6 }
 0x2bf   :  { %v4329_v4 = vsel %vm1060_vm2, %v4326_v9, %v4328_v61  ;;  %v4441_v32 = vsel %vm1914_vm12, %v4421_v48, %v6054_v56  ;;  %v6059_v0 = vunpack.i.l.bf16 %v8444_v63  ;;  %v6065_v50 = vunpack.i.h.bf16 %v8476_v30 }
 0x2c0   :  { %6287 = vrot.lane.b32.xlu1 %v6286_v5, %s6471_s12  ;;  %v3965_v11 = vrot.slane %v8221_v25, 3  ;;  %v4442_v58 = vsel %vm1914_vm12, %v4422_v6, %v6055_v3  ;;  %v6321_v2 = vpack.i.bf16 %v8560_v43, %v3800_v13  ;;  %vm4481_vm1 = vcmask 326656  }
 0x2c1   :  { %6312 = vrot.lane.b32.xlu0 %v6311_v36, %s6478_s25  ;;  %v4330_v59 = vrot.slane %v8430_v55, 6  ;;  %v6316_v8 = vpack.i.bf16 %v4329_v4, %v4327_v12  ;;  %v6064_v17 = vunpack.i.l.bf16 %v8476_v30  ;;  %v4069_v24 = vrot.slane %v8430_v55, 4 }
 0x2c2   :  { %v3968_v63 = vsel %vm1338_vm5, %v3965_v11, %v3967_v35  ;;  %v4462_v39 = vsel %vm1956_vm14, %v4442_v58, %v6060_v10  ;;  %v3803_v9 = vrot.slane %v8439_v34, 2  ;;  %v4075_v48 = vrot.slane %v8489_v21, 4 }
 0x2c3   :  { %v4333_v13 = vsel %vm1060_vm2, %v4330_v59, %v4332_v62  ;;  %v4461_v30 = vsel %vm1956_vm14, %v4441_v32, %v6059_v0  ;;  %v4483_v56 = vsel %vm4481_vm1, %v4462_v39, %v6065_v50  ;;  %v3966_v6 = vsel %vm1338_vm5, %v3963_v44, %v3965_v11  ;;  %v8610_v44 = vpop.permute.xlu1 %6087 }
 0x2c4   :  { %6322 = vrot.lane.b32.xlu1 %v6321_v2, %s6473_s16  ;;  %v6069_v3 = vunpack.i.l.bf16 %v8503_v23  ;;  %v6326_v5 = vpack.i.bf16 %v3968_v63, %v3966_v6  ;;  %v4331_v36 = vsel %vm1060_vm2, %v4328_v61, %v4330_v59  ;;  %v4077_v10 = vrot.slane %v8485_v42, 4 }
 0x2c5   :  { %6317 = vrot.lane.b32.xlu0 %v6316_v8, %s6479_s26  ;;  %v4482_v12 = vsel %vm4481_vm1, %v4461_v30, %v6064_v17  ;;  %v6361_v4 = vpack.i.bf16 %v4333_v13, %v4331_v36  ;;  %v6070_v32 = vunpack.i.h.bf16 %v8503_v23  ;;  %v8608_v0 = vsel %vm1441_vm6, %v4067_v18, %v4069_v24  ;;  %v8625_v8 = vpop.permute.xlu0 %6112 }
 0x2c6   :  { %v3804_v61 = vsel %vm1170_vm4, %v3801_v51, %v3803_v9  ;;  %v8617_v50 = vsel %vm1441_vm6, %v4075_v48, %v4077_v10  ;;  %v3805_v23 = vrot.slane %v8515_v37, 2  ;;  %v4236_v11 = vrot.slane %v8489_v21, 5 }
 0x2c7   :  { %v4503_v18 = vsel %vm4502_vm8, %v4482_v12, %v6069_v3  ;;  %v6075_v58 = vunpack.i.h.bf16 %v8552_v47  ;;  %v6074_v2 = vunpack.i.l.bf16 %v8552_v47  ;;  %v6080_v59 = vunpack.i.h.bf16 %v6078_v60 }
 0x2c8   :  { %6327 = vrot.lane.b32.xlu1 %v6326_v5, %s6475_s20  ;;  %v6331_v51 = vpack.i.bf16 %v8608_v0, %v8512_v33  ;;  %v4140_v17 = vsel %vm1441_vm6, %v4077_v10, %v7085_v22  ;;  %v6079_v63 = vunpack.i.l.bf16 %v6078_v60  ;;  %v4238_v39 = vrot.slane %v8485_v42, 5 }
 0x2c9   :  { %6362 = vrot.lane.b32.xlu0 %v6361_v4, %s6479_s26  ;;  %v4504_v13 = vsel %vm4502_vm8, %v4483_v56, %v6070_v32  ;;  %v6366_v30 = vpack.i.bf16 %v3804_v61, %v8560_v43  ;;  %v6336_v6 = vpack.i.bf16 %v4140_v17, %v8617_v50  ;;  %v8639_v47 = vsel %vm1170_vm4, %v3803_v9, %v3805_v23 }
 0x2ca   :  { %v4239_v22 = vsel %vm1607_vm7, %v4236_v11, %v4238_v39  ;;  %v3969_v33 = vrot.slane %v8439_v34, 3  ;;  %v3971_v60 = vrot.slane %v8515_v37, 3  ;;  %v4524_v43 = vsel %vm4523_vm9, %v4503_v18, %v6074_v2 }
 0x2cb   :  { %v4525_v56 = vsel %vm4523_vm9, %v4504_v13, %v6075_v58  ;;  %v4071_v3 = vrot.slane %v8439_v34, 4  ;;  %v4545_v9 = vsel %vm4544_vm11, %v4524_v43, %v6079_v63  ;;  %v4073_v10 = vrot.slane %v8515_v37, 4  ;;  %v8659_v58 = vpop.permute.xlu0 %6117 }
 0x2cc   :  { %6332 = vrot.lane.b32.xlu1 %v6331_v51, %s6476_s23  ;;  %v4546_v36 = vsel %vm4544_vm11, %v4525_v56, %v6080_v59  ;;  %v4424_v12 = vsel %vm1872_vm10, %v8534_v28, %v6050_v27  ;;  %v6381_v4 = vpack.i.bf16 %v8639_v47, %v3804_v61  ;;  %v6085_v32 = vunpack.i.h.bf16 %v8575_v14 }
 0x2cd   :  { %6367 = vrot.lane.b32.xlu0 %v6366_v30, %s6471_s12  ;;  %v6093_v5 = vpop.permute.xlu1 %6092  ;;  %v4565_v18 = vpack.c.bf16 %v4546_v36, %v4545_v9  ;;  %v6084_v2 = vunpack.i.l.bf16 %v8575_v14  ;;  %v4240_v59 = vsel %vm1607_vm7, %v4238_v39, %v7144_v54  ;;  %v3970_v51 = vsel %vm1338_vm5, %v3967_v35, %v3969_v33 }
 0x2ce   :  { %v3972_v28 = vsel %vm1338_vm5, %v3969_v33, %v3971_v60  ;;  %v6341_v27 = vpack.i.bf16 %v4240_v59, %v4239_v22  ;;  %v6090_v61 = vunpack.i.h.bf16 %v8610_v44  ;;  %v6089_v17 = vunpack.i.l.bf16 %v8610_v44 }
 0x2cf   :  { %5592 = vmatprep.mubr.msk.bf16.mxu1 %vm4608_vm13, %v4565_v18  ;;  %v4072_v54 = vsel %vm1441_vm6, %v4069_v24, %v4071_v3  ;;  %v4074_v35 = vsel %vm1441_vm6, %v4071_v3, %v4073_v10  ;;  %v6095_v63 = vunpack.i.h.bf16 %v6093_v5  ;;  %v6094_v39 = vunpack.i.l.bf16 %v6093_v5 }
 0x2d0   :  { %6337 = vrot.lane.b32.xlu1 %v6336_v6, %s6477_s24  ;;  %v4232_v13 = vrot.slane %v8439_v34, 5  ;;  %v4423_v30 = vsel %vm1872_vm10, %v8546_v38, %v6049_v53  ;;  %v4444_v44 = vsel %vm1914_vm12, %v4424_v12, %v6085_v32  ;;  %v6391_v6 = vpack.i.bf16 %v3972_v28, %v3970_v51  ;;  %v8692_v53 = vpop.permute.xlu0 %6132 }
 0x2d1   :  { %6382 = vrot.lane.b32.xlu0 %v6381_v4, %s6473_s16  ;;  %v6098_v14 = vpop.permute.xlu1 %6097  ;;  %v4443_v22 = vsel %vm1914_vm12, %v4423_v30, %v6084_v2  ;;  %v4230_v24 = vrot.slane %v8430_v55, 5  ;;  %v4464_v20 = vsel %vm1956_vm14, %v4444_v44, %v6090_v61  ;;  %v6346_v3 = vpack.i.bf16 %v4072_v54, %v8608_v0  ;;  %v6440_v44 = vld [vmem:[%s9062_s3 + $0x20] ss:$0 sps:$4 sm:$0xff]  }
 0x2d2   :  { %v6100_v33 = vunpack.i.h.bf16 %v6098_v14  ;;  %v6099_v43 = vunpack.i.l.bf16 %v6098_v14  ;;  %v4463_v56 = vsel %vm1956_vm14, %v4443_v22, %v6089_v17  ;;  %v6401_v38 = vpack.i.bf16 %v4074_v35, %v4072_v54 }
 0x2d3   :  { %v4484_v9 = vsel %vm4481_vm1, %v4463_v56, %v6094_v39  ;;  %v4485_v36 = vsel %vm4481_vm1, %v4464_v20, %v6095_v63  ;;  %v4233_v12 = vsel %vm1607_vm7, %v4230_v24, %v4232_v13  ;;  %v8700_v4 = vsel %vm1441_vm6, %v4073_v10, %v4075_v48 }
 0x2d4   :  { %6342 = vrot.lane.b32.xlu1 %v6341_v27, %s6478_s25  ;;  %v3703_v32 = vrot.slane %v8439_v34, 1  ;;  %v4234_v18 = vrot.slane %v8515_v37, 5  ;;  %v4505_v59 = vsel %vm4502_vm8, %v4484_v9, %v6099_v43  ;;  %v4506_v51 = vsel %vm4502_vm8, %v4485_v36, %v6100_v33  ;;  %v8719_v30 = vpop.permute.xlu0 %6137 }
 0x2d5   :  { %6392 = vrot.lane.b32.xlu0 %v6391_v6, %s6475_s20  ;;  %v6103_v5 = vpop.permute.xlu1 %6102  ;;  %v4231_v28 = vsel %vm1607_vm7, %v4228_v7, %v4230_v24  ;;  %v3701_v48 = vrot.slane %v8430_v55, 1  ;;  %v6115_v61 = vunpack.i.h.bf16 %v8625_v8  ;;  %v6114_v17 = vunpack.i.l.bf16 %v8625_v8 }
 0x2d6   :  { %v6105_v0 = vunpack.i.h.bf16 %v6103_v5  ;;  %v6104_v2 = vunpack.i.l.bf16 %v6103_v5  ;;  %v6351_v54 = vpack.i.bf16 %v4233_v12, %v4231_v28  ;;  %v6411_v14 = vpack.i.bf16 %v8700_v4, %v4074_v35 }
 0x2d7   :  { %v3704_v63 = vsel %vm1068_vm3, %v3701_v48, %v3703_v32  ;;  %v4235_v39 = vsel %vm1607_vm7, %v4232_v13, %v4234_v18  ;;  %v3705_v7 = vrot.slane %v8515_v37, 1  ;;  %v4640_v6 = vsel %vm1441_vm6, %v6440_v44, 0 }
 0x2d8   :  { %6347 = vrot.lane.b32.xlu1 %v6346_v3, %s6477_s24  ;;  %v4526_v10 = vsel %vm4523_vm9, %v4505_v59, %v6104_v2  ;;  %v4527_v27 = vsel %vm4523_vm9, %v4506_v51, %v6105_v0  ;;  %v4237_v8 = vsel %vm1607_vm7, %v4234_v18, %v4236_v11  ;;  %v4334_v35 = vrot.slane %v8515_v37, 6  ;;  %5591 = vmatpush3.bf16.msra.mxu1 %v4640_v6  ;;  %v6143_v12 = vpop.permute.xlu0 %6142 }
 0x2d9   :  { %6402 = vrot.lane.b32.xlu0 %v6401_v38, %s6476_s23  ;;  %v4547_v13 = vsel %vm4544_vm11, %v4526_v10, %v6114_v17  ;;  %v4548_v22 = vsel %vm4544_vm11, %v4527_v27, %v6115_v61  ;;  %v3702_v24 = vsel %vm1068_vm3, %v3699_v26, %v3701_v48  ;;  %v3707_v33 = vrot.slane %v8489_v21, 1  ;;  %v6108_v43 = vpop.permute.xlu1 %6107 }
 0x2da   :  { %v4566_v56 = vpack.c.bf16 %v4548_v22, %v4547_v13  ;;  %v6356_v20 = vpack.i.bf16 %v3704_v63, %v3702_v24  ;;  %v4336_v11 = vrot.slane %v8489_v21, 6  ;;  %v6416_v3 = vpack.i.bf16 %v4237_v8, %v4235_v39 }
 0x2db   :  { %v3706_v38 = vsel %vm1068_vm3, %v3703_v32, %v3705_v7  ;;  %v3708_v5 = vsel %vm1068_vm3, %v3705_v7, %v3707_v33  ;;  %v4335_v26 = vsel %vm1060_vm2, %v4332_v62, %v4334_v35  ;;  %v6109_v36 = vunpack.i.l.bf16 %v6108_v43 }
 0x2dc   :  { %6352 = vrot.lane.b32.xlu1 %v6351_v54, %s6478_s25  ;;  %5593 = vmatmul.mubr.msk.bf16.vlgmr.msra.gmra.mrb[0].mxu1 %vm4608_vm13, %v4566_v56  ;;  %v4337_v9 = vsel %vm1060_vm2, %v4334_v35, %v4336_v11  ;;  %v6110_v18 = vunpack.i.h.bf16 %v6108_v43  ;;  %v3807_v32 = vrot.slane %v8489_v21, 2  ;;  %v6371_v0 = vpack.i.bf16 %v3708_v5, %v3706_v38  ;;  %v6148_v10 = vpop.permute.xlu0 %6147 }
 0x2dd   :  { %6412 = vrot.lane.b32.xlu0 %v6411_v14, %s6477_s24  ;;  %v6421_v2 = vpack.i.bf16 %v4337_v9, %v4335_v26  ;;  %v4405_v62 = vsel %vm54_vm0, %v7766_v1, %v6109_v36  ;;  %v8757_v51 = vpop.permute.xlu1 %6122  ;;  %v6119_v28 = vunpack.i.l.bf16 %v8659_v58  ;;  %v6120_v27 = vunpack.i.h.bf16 %v8659_v58 }
 0x2de   :  { %v3808_v59 = vsel %vm1170_vm4, %v3805_v23, %v3807_v32  ;;  %v4406_v48 = vsel %vm54_vm0, %v7864_v31, %v6110_v18  ;;  %v3873_v17 = vrot.slane %v8485_v42, 2  ;;  %v6134_v1 = vunpack.i.l.bf16 %v8692_v53 }
 0x2df   :  { %v6376_v61 = vpack.i.bf16 %v3808_v59, %v8639_v47  ;;  %v4425_v23 = vsel %vm1872_vm10, %v4405_v62, %v6119_v28  ;;  %v4426_v54 = vsel %vm1872_vm10, %v4406_v48, %v6120_v27  ;;  %v6135_v14 = vunpack.i.h.bf16 %v8692_v53 }
 0x2e0   :  { %6357 = vrot.lane.b32.xlu1 %v6356_v20, %s6469_s17  ;;  %v3874_v63 = vsel %vm1170_vm4, %v3807_v32, %v3873_v17  ;;  %v3973_v31 = vrot.slane %v8489_v21, 3  ;;  %v4445_v58 = vsel %vm1914_vm12, %v4425_v23, %v6134_v1  ;;  %v6139_v7 = vunpack.i.l.bf16 %v8719_v30 }
 0x2e1   :  { %6417 = vrot.lane.b32.xlu0 %v6416_v3, %s6478_s25  ;;  %v6386_v39 = vpack.i.bf16 %v3874_v63, %v3808_v59  ;;  %v6128_v47 = vpop.permute.xlu1 %6127  ;;  %v4446_v44 = vsel %vm1914_vm12, %v4426_v54, %v6135_v14  ;;  %v3975_v8 = vrot.slane %v8485_v42, 3  ;;  %v6153_v35 = vpop.permute.xlu0 %6152  ;;  %v6140_v53 = vunpack.i.h.bf16 %v8719_v30 }
 0x2e2   :  { %v3974_v6 = vsel %vm1338_vm5, %v3971_v60, %v3973_v31  ;;  %v6149_v13 = vunpack.i.l.bf16 %v6148_v10  ;;  %v4465_v22 = vsel %vm1956_vm14, %v4445_v58, %v6139_v7  ;;  %v6144_v33 = vunpack.i.l.bf16 %v6143_v12 }
 0x2e3   :  { %v3976_v24 = vsel %vm1338_vm5, %v3973_v31, %v3975_v8  ;;  %v6150_v43 = vunpack.i.h.bf16 %v6148_v10  ;;  %v4466_v56 = vsel %vm1956_vm14, %v4446_v44, %v6140_v53  ;;  %v6145_v3 = vunpack.i.h.bf16 %v6143_v12 }
 0x2e4   :  { %6372 = vrot.lane.b32.xlu1 %v6371_v0, %s6469_s17  ;;  %v6396_v20 = vpack.i.bf16 %v3976_v24, %v3974_v6  ;;  %v6155_v38 = vunpack.i.h.bf16 %v6153_v35  ;;  %v6154_v60 = vunpack.i.l.bf16 %v6153_v35  ;;  %v4486_v5 = vsel %vm4481_vm1, %v4465_v22, %v6144_v33 }
 0x2e5   :  { %6422 = vrot.lane.b32.xlu0 %v6421_v2, %s6479_s26  ;;  %v4487_v26 = vsel %vm4481_vm1, %v4466_v56, %v6145_v3  ;;  %v4507_v9 = vsel %vm4502_vm8, %v4486_v5, %v6149_v13  ;;  %v4338_v18 = vrot.slane %v8485_v42, 6  ;;  %v6406_v0 = vpack.i.bf16 %v8617_v50, %v8700_v4 }
 0x2e6   :  { %v6163_v30 = vpop.permute.xlu1 %6162  ;;  %v4508_v32 = vsel %vm4502_vm8, %v4487_v26, %v6150_v43  ;;  %v4528_v59 = vsel %vm4523_vm9, %v4507_v9, %v6154_v60  ;;  %v6124_v23 = vunpack.i.l.bf16 %v8757_v51  ;;  %v6130_v17 = vunpack.i.h.bf16 %v6128_v47 }
 0x2e7   :  { %v4529_v62 = vsel %vm4523_vm9, %v4508_v32, %v6155_v38  ;;  %v4339_v28 = vsel %vm1060_vm2, %v4336_v11, %v4338_v18  ;;  %v4340_v50 = vsel %vm1060_vm2, %v4338_v18, %v7158_v45  ;;  %v6125_v11 = vunpack.i.h.bf16 %v8757_v51 }
 0x2e8   :  { %6377 = vrot.lane.b32.xlu1 %v6376_v61, %s6471_s12  ;;  %v6426_v4 = vpack.i.bf16 %v4340_v50, %v4339_v28  ;;  %v6129_v1 = vunpack.i.l.bf16 %v6128_v47  ;;  %v6165_v14 = vunpack.i.h.bf16 %v6163_v30  ;;  %v6164_v63 = vunpack.i.l.bf16 %v6163_v30 }
 0x2e9   :  { %v4407_v7 = vsel %vm54_vm0, %v7872_v46, %v6124_v23 }
 0x2ea   :  { %v4427_v8 = vsel %vm1872_vm10, %v4407_v7, %v6129_v1 }
 0x2eb   :  { %v4447_v13 = vsel %vm1914_vm12, %v4427_v8, %v6164_v63 }
 0x2ec   :  { %6387 = vrot.lane.b32.xlu1 %v6386_v39, %s6473_s16  ;;  %v4408_v39 = vsel %vm54_vm0, %v7889_v49, %v6125_v11 }
 0x2ed   :  { %v4428_v51 = vsel %vm1872_vm10, %v4408_v39, %v6130_v17 }
 0x2ee   :  { %v4448_v22 = vsel %vm1914_vm12, %v4428_v51, %v6165_v14 }
 0x2f0   :  { %6397 = vrot.lane.b32.xlu1 %v6396_v20, %s6475_s20 }
 0x2f1   :  { %v6158_v36 = vpop.permute.xlu0 %6157 }
 0x2f2   :  { %v6160_v12 = vunpack.i.h.bf16 %v6158_v36  ;;  %v6159_v2 = vunpack.i.l.bf16 %v6158_v36 }
 0x2f4   :  { %6407 = vrot.lane.b32.xlu1 %v6406_v0, %s6476_s23  ;;  %v4549_v48 = vsel %vm4544_vm11, %v4528_v59, %v6159_v2  ;;  %v4550_v42 = vsel %vm4544_vm11, %v4529_v62, %v6160_v12 }
 0x2f5   :  { %v4567_v10 = vpack.c.bf16 %v4550_v42, %v4549_v48 }
 0x2f6   :  { %v6168_v27 = vpop.permute.xlu1 %6167 }
 0x2f7   :  { %5596 = vmatprep.mubr.msk.bf16.mxu1 %vm4608_vm13, %v4567_v10  ;;  %v6170_v31 = vunpack.i.h.bf16 %v6168_v27  ;;  %v6169_v58 = vunpack.i.l.bf16 %v6168_v27 }
 0x2f8   :  { %6427 = vrot.lane.b32.xlu1 %v6426_v4, %s6479_s26  ;;  %v6193_v61 = vpop.permute.xlu0 %6192 }
 0x2f9   :  { %v4467_v24 = vsel %vm1956_vm14, %v4447_v13, %v6169_v58  ;;  %v4468_v49 = vsel %vm1956_vm14, %v4448_v22, %v6170_v31  ;;  %v6195_v3 = vunpack.i.h.bf16 %v6193_v61  ;;  %v6194_v38 = vunpack.i.l.bf16 %v6193_v61 }
 0x2fa   :  { %v6173_v21 = vpop.permute.xlu1 %6172 }
 0x2fb   :  { %v6175_v44 = vunpack.i.h.bf16 %v6173_v21  ;;  %v6174_v6 = vunpack.i.l.bf16 %v6173_v21 }
 0x2fc   :  { %v6198_v54 = vpop.permute.xlu0 %6197 }
 0x2fd   :  { %v4488_v46 = vsel %vm4481_vm1, %v4467_v24, %v6174_v6  ;;  %v4489_v43 = vsel %vm4481_vm1, %v4468_v49, %v6175_v44  ;;  %v6200_v59 = vunpack.i.h.bf16 %v6198_v54  ;;  %v6199_v62 = vunpack.i.l.bf16 %v6198_v54 }
 0x2fe   :  { %v6178_v45 = vpop.permute.xlu1 %6177 }
 0x2ff   :  { %v6180_v35 = vunpack.i.h.bf16 %v6178_v45  ;;  %v6179_v47 = vunpack.i.l.bf16 %v6178_v45 }
 0x300   :  { %v6203_v53 = vpop.permute.xlu0 %6202 }
 0x301   :  { %v4509_v60 = vsel %vm4502_vm8, %v4488_v46, %v6179_v47  ;;  %v4510_v5 = vsel %vm4502_vm8, %v4489_v43, %v6180_v35  ;;  %v6205_v10 = vunpack.i.h.bf16 %v6203_v53  ;;  %v6204_v50 = vunpack.i.l.bf16 %v6203_v53 }
 0x302   :  { %v6183_v33 = vpop.permute.xlu1 %6182 }
 0x303   :  { %v6185_v56 = vunpack.i.h.bf16 %v6183_v33  ;;  %v6184_v20 = vunpack.i.l.bf16 %v6183_v33 }
 0x304   :  { %v6208_v30 = vpop.permute.xlu0 %6207 }
 0x305   :  { %v4530_v26 = vsel %vm4523_vm9, %v4509_v60, %v6184_v20  ;;  %v4531_v9 = vsel %vm4523_vm9, %v4510_v5, %v6185_v56  ;;  %v6210_v17 = vunpack.i.h.bf16 %v6208_v30  ;;  %v6209_v1 = vunpack.i.l.bf16 %v6208_v30 }
 0x306   :  { %v6188_v36 = vpop.permute.xlu1 %6187  ;;  %v4551_v18 = vsel %vm4544_vm11, %v4530_v26, %v6194_v38  ;;  %v4552_v32 = vsel %vm4544_vm11, %v4531_v9, %v6195_v3 }
 0x307   :  { %v6190_v0 = vunpack.i.h.bf16 %v6188_v36  ;;  %v6189_v12 = vunpack.i.l.bf16 %v6188_v36  ;;  %v4568_v2 = vpack.c.bf16 %v4552_v32, %v4551_v18 }
 0x308   :  { %v6213_v28 = vpop.permute.xlu0 %6212 }
 0x309   :  { %v4410_v48 = vsel %vm54_vm0, %v8113_v16, %v6190_v0  ;;  %v4409_v42 = vsel %vm54_vm0, %v7982_v52, %v6189_v12  ;;  %5597 = vmatmul.mubr.msk.bf16.gmra.mrb[4].mxu1 %vm4608_vm13, %v4568_v2  ;;  %v6215_v14 = vunpack.i.h.bf16 %v6213_v28  ;;  %v6214_v63 = vunpack.i.l.bf16 %v6213_v28 }
 0x30a   :  { %v4429_v4 = vsel %vm1872_vm10, %v4409_v42, %v6199_v62  ;;  %v4430_v27 = vsel %vm1872_vm10, %v4410_v48, %v6200_v59  ;;  %v6233_v61 = vpop.permute.xlu1 %6232 }
 0x30b   :  { %v4449_v21 = vsel %vm1914_vm12, %v4429_v4, %v6204_v50  ;;  %v4450_v11 = vsel %vm1914_vm12, %v4430_v27, %v6205_v10  ;;  %v6235_v3 = vunpack.i.h.bf16 %v6233_v61  ;;  %v6234_v38 = vunpack.i.l.bf16 %v6233_v61 }
 0x30c   :  { %v6218_v23 = vpop.permute.xlu0 %6217  ;;  %v4469_v54 = vsel %vm1956_vm14, %v4449_v21, %v6209_v1  ;;  %v4470_v52 = vsel %vm1956_vm14, %v4450_v11, %v6210_v17 }
 0x30d   :  { %v6220_v58 = vunpack.i.h.bf16 %v6218_v23  ;;  %v6219_v45 = vunpack.i.l.bf16 %v6218_v23  ;;  %v4490_v39 = vsel %vm4481_vm1, %v4469_v54, %v6214_v63  ;;  %v4491_v7 = vsel %vm4481_vm1, %v4470_v52, %v6215_v14 }
 0x30e   :  { %v6238_v16 = vpop.permute.xlu1 %6237  ;;  %v4412_v0 = vsel %vm54_vm0, %v8290_v19, %v6235_v3  ;;  %v4411_v12 = vsel %vm54_vm0, 0.0, %v6234_v38 }
 0x30f   :  { %v4511_v35 = vsel %vm4502_vm8, %v4490_v39, %v6219_v45  ;;  %v4512_v47 = vsel %vm4502_vm8, %v4491_v7, %v6220_v58  ;;  %v6240_v5 = vunpack.i.h.bf16 %v6238_v16  ;;  %v6239_v30 = vunpack.i.l.bf16 %v6238_v16 }
 0x310   :  { %v6223_v31 = vpop.permute.xlu0 %6222 }
 0x311   :  { %v6225_v44 = vunpack.i.h.bf16 %v6223_v31  ;;  %v6224_v6 = vunpack.i.l.bf16 %v6223_v31  ;;  %v4431_v28 = vsel %vm1872_vm10, %v4411_v12, %v6239_v30  ;;  %v4432_v48 = vsel %vm1872_vm10, %v4412_v0, %v6240_v5 }
 0x312   :  { %v6243_v8 = vpop.permute.xlu1 %6242 }
 0x313   :  { %v4532_v22 = vsel %vm4523_vm9, %v4511_v35, %v6224_v6  ;;  %v4533_v24 = vsel %vm4523_vm9, %v4512_v47, %v6225_v44  ;;  %v6245_v26 = vunpack.i.h.bf16 %v6243_v8  ;;  %v6244_v9 = vunpack.i.l.bf16 %v6243_v8 }
 0x314   :  { %v6228_v51 = vpop.permute.xlu0 %6227 }
 0x315   :  { %v6230_v53 = vunpack.i.h.bf16 %v6228_v51  ;;  %v6229_v13 = vunpack.i.l.bf16 %v6228_v51  ;;  %v4451_v50 = vsel %vm1914_vm12, %v4431_v28, %v6244_v9  ;;  %v4452_v4 = vsel %vm1914_vm12, %v4432_v48, %v6245_v26 }
 0x316   :  { %v6248_v43 = vpop.permute.xlu1 %6247 }
 0x317   :  { %v4553_v49 = vsel %vm4544_vm11, %v4532_v22, %v6229_v13  ;;  %v4554_v33 = vsel %vm4544_vm11, %v4533_v24, %v6230_v53  ;;  %v6250_v36 = vunpack.i.h.bf16 %v6248_v43  ;;  %v6249_v18 = vunpack.i.l.bf16 %v6248_v43 }
 0x318   :  { %v4569_v46 = vpack.c.bf16 %v4554_v33, %v4553_v49 }
 0x319   :  { %v6273_v56 = vpop.permute.xlu0 %6272  ;;  %v4471_v27 = vsel %vm1956_vm14, %v4451_v50, %v6249_v18  ;;  %v4472_v61 = vsel %vm1956_vm14, %v4452_v4, %v6250_v36 }
 0x31a   :  { %5600 = vmatprep.mubr.msk.bf16.mxu1 %vm4608_vm13, %v4569_v46  ;;  %v6275_v16 = vunpack.i.h.bf16 %v6273_v56  ;;  %v6274_v54 = vunpack.i.l.bf16 %v6273_v56 }
 0x31e   :  { %v6253_v20 = vpop.permute.xlu1 %6252 }
 0x31f   :  { %v6278_v60 = vpop.permute.xlu0 %6277  ;;  %v6255_v2 = vunpack.i.h.bf16 %v6253_v20  ;;  %v6254_v59 = vunpack.i.l.bf16 %v6253_v20 }
 0x320   :  { %v6280_v51 = vunpack.i.h.bf16 %v6278_v60  ;;  %v6279_v35 = vunpack.i.l.bf16 %v6278_v60 }
 0x321   :  { %v4492_v21 = vsel %vm4481_vm1, %v4471_v27, %v6254_v59  ;;  %v4493_v11 = vsel %vm4481_vm1, %v4472_v61, %v6255_v2 }
 0x322   :  { %v6258_v32 = vpop.permute.xlu1 %6257 }
 0x323   :  { %v6293_v62 = vpop.permute.xlu0 %6292  ;;  %v6260_v42 = vunpack.i.h.bf16 %v6258_v32  ;;  %v6259_v10 = vunpack.i.l.bf16 %v6258_v32 }
 0x324   :  { %v6295_v47 = vunpack.i.h.bf16 %v6293_v62  ;;  %v6294_v53 = vunpack.i.l.bf16 %v6293_v62 }
 0x325   :  { %v4513_v52 = vsel %vm4502_vm8, %v4492_v21, %v6259_v10  ;;  %v4514_v14 = vsel %vm4502_vm8, %v4493_v11, %v6260_v42 }
 0x326   :  { %v6263_v19 = vpop.permute.xlu1 %6262 }
 0x327   :  { %v6265_v23 = vunpack.i.h.bf16 %v6263_v19  ;;  %v6264_v17 = vunpack.i.l.bf16 %v6263_v19  ;;  %v6298_v1 = vpop.permute.xlu0 %6297 }
 0x328   :  { %v6300_v20 = vunpack.i.h.bf16 %v6298_v1  ;;  %v6299_v3 = vunpack.i.l.bf16 %v6298_v1 }
 0x329   :  { %v4534_v63 = vsel %vm4523_vm9, %v4513_v52, %v6264_v17  ;;  %v4535_v31 = vsel %vm4523_vm9, %v4514_v14, %v6265_v23 }
 0x32a   :  { %v6268_v58 = vpop.permute.xlu1 %6267  ;;  %v4555_v45 = vsel %vm4544_vm11, %v4534_v63, %v6274_v54  ;;  %v4556_v39 = vsel %vm4544_vm11, %v4535_v31, %v6275_v16 }
 0x32b   :  { %v6270_v7 = vunpack.i.h.bf16 %v6268_v58  ;;  %v6269_v44 = vunpack.i.l.bf16 %v6268_v58  ;;  %v6303_v6 = vpop.permute.xlu0 %6302  ;;  %v4570_v8 = vpack.c.bf16 %v4556_v39, %v4555_v45 }
 0x32c   :  { %v6304_v5 = vunpack.i.l.bf16 %v6303_v6 }
 0x32d   :  { %v4414_v13 = vsel %vm54_vm0, %v8206_v40, %v6270_v7  ;;  %v4413_v22 = vsel %vm54_vm0, %v8176_v15, %v6269_v44  ;;  %5601 = vmatmul.mubr.msk.bf16.gmra.mrb[8].mxu1 %vm4608_vm13, %v4570_v8  ;;  %v6305_v15 = vunpack.i.h.bf16 %v6303_v6 }
 0x32e   :  { %v4433_v24 = vsel %vm1872_vm10, %v4413_v22, %v6279_v35  ;;  %v4434_v49 = vsel %vm1872_vm10, %v4414_v13, %v6280_v51  ;;  %v6283_v33 = vpop.permute.xlu1 %6282 }
 0x32f   :  { %v4453_v46 = vsel %vm1914_vm12, %v4433_v24, %v6294_v53  ;;  %v4454_v43 = vsel %vm1914_vm12, %v4434_v49, %v6295_v47  ;;  %v6308_v56 = vpop.permute.xlu0 %6307  ;;  %v6285_v16 = vunpack.i.h.bf16 %v6283_v33  ;;  %v6284_v54 = vunpack.i.l.bf16 %v6283_v33 }
 0x330   :  { %v4473_v38 = vsel %vm1956_vm14, %v4453_v46, %v6299_v3  ;;  %v4474_v40 = vsel %vm1956_vm14, %v4454_v43, %v6300_v20  ;;  %v6310_v26 = vunpack.i.h.bf16 %v6308_v56  ;;  %v6309_v9 = vunpack.i.l.bf16 %v6308_v56 }
 0x331   :  { %v4494_v36 = vsel %vm4481_vm1, %v4473_v38, %v6304_v5  ;;  %v4495_v18 = vsel %vm4481_vm1, %v4474_v40, %v6305_v15  ;;  %v4416_v44 = vsel %vm54_vm0, %v8391_v57, %v6285_v16  ;;  %v4415_v6 = vsel %vm54_vm0, %v8356_v41, %v6284_v54 }
 0x332   :  { %v6288_v60 = vpop.permute.xlu1 %6287  ;;  %v4515_v59 = vsel %vm4502_vm8, %v4494_v36, %v6309_v9  ;;  %v4516_v62 = vsel %vm4502_vm8, %v4495_v18, %v6310_v26 }
 0x333   :  { %v6313_v30 = vpop.permute.xlu0 %6312  ;;  %v6290_v14 = vunpack.i.h.bf16 %v6288_v60  ;;  %v6289_v63 = vunpack.i.l.bf16 %v6288_v60 }
 0x334   :  { %v6315_v32 = vunpack.i.h.bf16 %v6313_v30  ;;  %v6314_v0 = vunpack.i.l.bf16 %v6313_v30 }
 0x335   :  { %v4435_v47 = vsel %vm1872_vm10, %v4415_v6, %v6289_v63  ;;  %v4436_v53 = vsel %vm1872_vm10, %v4416_v44, %v6290_v14 }
 0x336   :  { %v6323_v12 = vpop.permute.xlu1 %6322  ;;  %v4536_v42 = vsel %vm4523_vm9, %v4515_v59, %v6314_v0  ;;  %v4537_v10 = vsel %vm4523_vm9, %v4516_v62, %v6315_v32 }
 0x337   :  { %v6318_v2 = vpop.permute.xlu0 %6317  ;;  %v6325_v31 = vunpack.i.h.bf16 %v6323_v12  ;;  %v6324_v58 = vunpack.i.l.bf16 %v6323_v12 }
 0x338   :  { %v6320_v28 = vunpack.i.h.bf16 %v6318_v2  ;;  %v6319_v48 = vunpack.i.l.bf16 %v6318_v2 }
 0x339   :  { %v4455_v24 = vsel %vm1914_vm12, %v4435_v47, %v6324_v58  ;;  %v4456_v49 = vsel %vm1914_vm12, %v4436_v53, %v6325_v31 }
 0x33a   :  { %v4557_v50 = vsel %vm4544_vm11, %v4536_v42, %v6319_v48  ;;  %v4558_v4 = vsel %vm4544_vm11, %v4537_v10, %v6320_v28  ;;  %v6328_v27 = vpop.permute.xlu1 %6327 }
 0x33b   :  { %v4571_v61 = vpack.c.bf16 %v4558_v4, %v4557_v50  ;;  %v6363_v19 = vpop.permute.xlu0 %6362  ;;  %v6330_v45 = vunpack.i.h.bf16 %v6328_v27  ;;  %v6329_v39 = vunpack.i.l.bf16 %v6328_v27 }
 0x33c   :  { %v6365_v38 = vunpack.i.h.bf16 %v6363_v19  ;;  %v6364_v40 = vunpack.i.l.bf16 %v6363_v19 }
 0x33d   :  { %5604 = vmatprep.mubr.msk.bf16.mxu1 %vm4608_vm13, %v4571_v61  ;;  %v4475_v33 = vsel %vm1956_vm14, %v4455_v24, %v6329_v39  ;;  %v4476_v57 = vsel %vm1956_vm14, %v4456_v49, %v6330_v45 }
 0x33e   :  { %v6333_v21 = vpop.permute.xlu1 %6332 }
 0x33f   :  { %v6368_v11 = vpop.permute.xlu0 %6367  ;;  %v6335_v8 = vunpack.i.h.bf16 %v6333_v21  ;;  %v6334_v51 = vunpack.i.l.bf16 %v6333_v21 }
 0x340   :  { %v6370_v2 = vunpack.i.h.bf16 %v6368_v11  ;;  %v6369_v59 = vunpack.i.l.bf16 %v6368_v11 }
 0x341   :  { %v4496_v41 = vsel %vm4481_vm1, %v4475_v33, %v6334_v51  ;;  %v4497_v43 = vsel %vm4481_vm1, %v4476_v57, %v6335_v8 }
 0x342   :  { %v8882_v23 = vpop.permute.xlu1 %6337 }
 0x343   :  { %v6383_v17 = vpop.permute.xlu0 %6382 }
 0x344   :  { %v6385_v62 = vunpack.i.h.bf16 %v6383_v17  ;;  %v6384_v28 = vunpack.i.l.bf16 %v6383_v17 }
 0x346   :  { %v8884_v1 = vpop.permute.xlu1 %6342 }
 0x347   :  { %v6393_v52 = vpop.permute.xlu0 %6392 }
 0x348   :  { %v6395_v10 = vunpack.i.h.bf16 %v6393_v52  ;;  %v6394_v50 = vunpack.i.l.bf16 %v6393_v52 }
 0x34a   :  { %v6348_v7 = vpop.permute.xlu1 %6347 }
 0x34b   :  { %v6403_v35 = vpop.permute.xlu0 %6402  ;;  %v6350_v13 = vunpack.i.h.bf16 %v6348_v7  ;;  %v6349_v22 = vunpack.i.l.bf16 %v6348_v7 }
 0x34c   :  { %v6405_v19 = vunpack.i.h.bf16 %v6403_v35  ;;  %v6404_v21 = vunpack.i.l.bf16 %v6403_v35 }
 0x34d   :  { %v4517_v60 = vsel %vm4502_vm8, %v4496_v41, %v6349_v22  ;;  %v4518_v15 = vsel %vm4502_vm8, %v4497_v43, %v6350_v13 }
 0x34e   :  { %v6353_v46 = vpop.permute.xlu1 %6352 }
 0x34f   :  { %v6355_v56 = vunpack.i.h.bf16 %v6353_v46  ;;  %v6354_v20 = vunpack.i.l.bf16 %v6353_v46  ;;  %v6413_v3 = vpop.permute.xlu0 %6412 }
 0x350   :  { %v6414_v54 = vunpack.i.l.bf16 %v6413_v3 }
 0x351   :  { %v4538_v5 = vsel %vm4523_vm9, %v4517_v60, %v6354_v20  ;;  %v4539_v30 = vsel %vm4523_vm9, %v4518_v15, %v6355_v56 }
 0x352   :  { %v6358_v26 = vpop.permute.xlu1 %6357  ;;  %v4559_v9 = vsel %vm4544_vm11, %v4538_v5, %v6364_v40  ;;  %v4560_v36 = vsel %vm4544_vm11, %v4539_v30, %v6365_v38 }
 0x353   :  { %v6360_v18 = vunpack.i.h.bf16 %v6358_v26  ;;  %v6359_v32 = vunpack.i.l.bf16 %v6358_v26  ;;  %v6418_v0 = vpop.permute.xlu0 %6417  ;;  %v4572_v12 = vpack.c.bf16 %v4560_v36, %v4559_v9  ;;  %v6340_v9 = vunpack.i.h.bf16 %v8882_v23 }
 0x354   :  { %v6420_v63 = vunpack.i.h.bf16 %v6418_v0  ;;  %v6419_v52 = vunpack.i.l.bf16 %v6418_v0  ;;  %v6339_v36 = vunpack.i.l.bf16 %v8882_v23 }
 0x355   :  { %v4418_v48 = vsel %vm54_vm0, %v8430_v55, %v6360_v18  ;;  %v4417_v42 = vsel %vm54_vm0, %v8221_v25, %v6359_v32  ;;  %5605 = vmatmul.mubr.msk.bf16.gmra.mrb[12].mxu1 %vm4608_vm13, %v4572_v12  ;;  %v6415_v55 = vunpack.i.h.bf16 %v6413_v3  ;;  %v6344_v32 = vunpack.i.l.bf16 %v8884_v1 }
 0x356   :  { %v4437_v4 = vsel %vm1872_vm10, %v4417_v42, %v6369_v59  ;;  %v4438_v27 = vsel %vm1872_vm10, %v4418_v48, %v6370_v2  ;;  %v6373_v61 = vpop.permute.xlu1 %6372 }
 0x357   :  { %v4457_v11 = vsel %vm1914_vm12, %v4437_v4, %v6384_v28  ;;  %v4458_v17 = vsel %vm1914_vm12, %v4438_v27, %v6385_v62  ;;  %v6423_v16 = vpop.permute.xlu0 %6422  ;;  %v6375_v22 = vunpack.i.h.bf16 %v6373_v61  ;;  %v6374_v24 = vunpack.i.l.bf16 %v6373_v61  ;;  %v8950_v4 = vld [vmem:[%s9063_s4] ss:$0 sm:$0xff]  ;;  %s6480_s4 = smov [#allocation2]  }
 0x358   :  { %v4477_v25 = vsel %vm1956_vm14, %v4457_v11, %v6394_v50  ;;  %v4478_v14 = vsel %vm1956_vm14, %v4458_v17, %v6395_v10  ;;  %v6425_v7 = vunpack.i.h.bf16 %v6423_v16  ;;  %v6424_v44 = vunpack.i.l.bf16 %v6423_v16  ;;  %s5487_s15 = sshll.u32 %s6480_s4, 4  ;;  %s5488_s15 = int_to_ptr.vmem [resolvable:$true] %s5487_s15 }
 0x359   :  { %v4498_v31 = vsel %vm4481_vm1, %v4477_v25, %v6404_v21  ;;  %v4499_v58 = vsel %vm4481_vm1, %v4478_v14, %v6405_v19  ;;  %v4420_v20 = vsel %vm54_vm0, %v8515_v37, %v6375_v22  ;;  %v4419_v3 = vsel %vm54_vm0, %v8439_v34, %v6374_v24  ;;  %s6441_s16 = scalar_lea.vmem %s5488_s15, 256  ;;  %p6446_p1 = scmp.lt.s32.totalorder %s5488_s15, %s5488_s15 }
 0x35a   :  { %v4519_v45 = vsel %vm4502_vm8, %v4498_v31, %v6414_v54  ;;  %v4520_v39 = vsel %vm4502_vm8, %v4499_v58, %v6415_v55  ;;  %v6378_v6 = vpop.permute.xlu1 %6377  ;;  %v6345_v34 = vunpack.i.h.bf16 %v8884_v1  ;;  %p6442_p0 = scmp.ne.s32.totalorder %s5488_s15, %s6441_s16  ;;  %p6447_p2 = scmp.lt.s32.totalorder %s6441_s16, %s6441_s16 }
 0x35b   :  { %v4540_v8 = vsel %vm4523_vm9, %v4519_v45, %v6419_v52  ;;  %v4541_v51 = vsel %vm4523_vm9, %v4520_v39, %v6420_v63  ;;  %v6380_v49 = vunpack.i.h.bf16 %v6378_v6  ;;  %v6379_v33 = vunpack.i.l.bf16 %v6378_v6 }
 0x35c   :  { %v4561_v35 = vsel %vm4544_vm11, %v4540_v8, %v6424_v44  ;;  %v4562_v47 = vsel %vm4544_vm11, %v4541_v51, %v6425_v7  ;;  %p6448_p3 = por %p6447_p2, %p6446_p1 }
 0x35d   :  { %v4573_v53 = vpack.c.bf16 %v4562_v47, %v4561_v35  ;;  %v4439_v38 = vsel %vm1872_vm10, %v4419_v3, %v6379_v33  ;;  %v4440_v40 = vsel %vm1872_vm10, %v4420_v20, %v6380_v49 }
 0x35e   :  { %v6388_v13 = vpop.permute.xlu1 %6387  ;;  %p6449_p4 = pnand %p6448_p3, %p6442_p0 }
 0x35f   :  { %5608 = vmatprep.mubr.msk.bf16.mxu1 %vm4608_vm13, %v4573_v53  ;;  %v6390_v46 = vunpack.i.h.bf16 %v6388_v13  ;;  %v6389_v41 = vunpack.i.l.bf16 %v6388_v13 }
 0x361   :  { %v4459_v15 = vsel %vm1914_vm12, %v4439_v38, %v6389_v41  ;;  %v4460_v5 = vsel %vm1914_vm12, %v4440_v40, %v6390_v46 }
 0x362   :  { %v6398_v57 = vpop.permute.xlu1 %6397 }
 0x363   :  { %v6400_v43 = vunpack.i.h.bf16 %v6398_v57  ;;  %v6399_v56 = vunpack.i.l.bf16 %v6398_v57 }
 0x365   :  { %v4479_v37 = vsel %vm1956_vm14, %v4459_v15, %v6399_v56  ;;  %v4480_v18 = vsel %vm1956_vm14, %v4460_v5, %v6400_v43 }
 0x366   :  { %v6408_v60 = vpop.permute.xlu1 %6407 }
 0x367   :  { %v6410_v30 = vunpack.i.h.bf16 %v6408_v60  ;;  %v6409_v26 = vunpack.i.l.bf16 %v6408_v60 }
 0x369   :  { %v4500_v0 = vsel %vm4481_vm1, %v4479_v37, %v6409_v26  ;;  %v4501_v12 = vsel %vm4481_vm1, %v4480_v18, %v6410_v30 }
 0x36a   :  { %v4521_v2 = vsel %vm4502_vm8, %v4500_v0, %v6339_v36  ;;  %v4522_v59 = vsel %vm4502_vm8, %v4501_v12, %v6340_v9  ;;  %v6428_v62 = vpop.permute.xlu1 %6427 }
 0x36b   :  { %v6430_v28 = vunpack.i.h.bf16 %v6428_v62  ;;  %v6429_v48 = vunpack.i.l.bf16 %v6428_v62  ;;  %v4542_v23 = vsel %vm4523_vm9, %v4521_v2, %v6344_v32  ;;  %v4543_v42 = vsel %vm4523_vm9, %v4522_v59, %v6345_v34 }
 0x36d   :  { %v4563_v10 = vsel %vm4544_vm11, %v4542_v23, %v6429_v48  ;;  %v4564_v50 = vsel %vm4544_vm11, %v4543_v42, %v6430_v28 }
 0x36e   :  { %v4574_v1 = vpack.c.bf16 %v4564_v50, %v4563_v10 }
 0x370   :  { %5609 = vmatmul.mubr.msk.bf16.gmra.mrb[16].mxu1 %vm4608_vm13, %v4574_v1 }
 0x3af   :  { %v5594_v27 = vpop.f32.mrb[0].mxu1 }
 0x3b0   :  { %v4685_v61 = vadd.f32 %v5594_v27, %v8950_v4  ;;  %v4676_v19 = vpop.f32.mrb[1].mxu1 }
 0x3b1   :  { %v4677_v21 = vadd.f32 %v8950_v4, %v4676_v19  ;;  %v5595_v11 = vpop.f32.mrb[2].mxu1 }
 0x3b2   :  { %v4757_v17 = vmax.f32 %v4685_v61, 0.0  ;;  %v4688_v16 = vadd.f32 %v5595_v11, %v8950_v4  ;;  %v4679_v55 = vpop.f32.mrb[3].mxu1 }
 0x3b3   :  { %v4755_v54 = vmax.f32 %v4677_v21, 0.0  ;;  %v4680_v25 = vadd.f32 %v8950_v4, %v4679_v55 }
 0x3b4   :  { %v4829_v14 = vcombine.high %v4757_v17, %v4757_v17  ;;  %v4758_v63 = vmax.f32 %v4688_v16, 0.0  ;;  %v4836_v33 = vrot.slane %v4757_v17, %v6706_v29 }
 0x3b5   :  { %v4795_v52 = vcombine.high %v4755_v54, %v4755_v54  ;;  %v4802_v31 = vrot.slane %v4755_v54, %v6706_v29  ;;  %v4756_v58 = vmax.f32 %v4680_v25, 0.0 }
 0x3b6   :  { %v4843_v45 = vrot.slane %v4829_v14, %v6706_v29  ;;  %v4852_v39 = vrot.slane %v4758_v63, %v6706_v29  ;;  %v4845_v26 = vcombine.high %v4758_v63, %v4758_v63 }
 0x3b7   :  { %v4809_v7 = vrot.slane %v4795_v52, %v6706_v29  ;;  %v4810_v44 = vcombine.high %v4802_v31, %v4802_v31  ;;  %v4812_v6 = vcombine.high %v4756_v58, %v4756_v58  ;;  %v4819_v8 = vrot.slane %v4756_v58, %v6706_v29 }
 0x3b8   :  { %v4844_v51 = vcombine.high %v4843_v45, %v4843_v45  ;;  %v4860_v35 = vcombine.high %v4852_v39, %v4852_v39  ;;  %v4859_v18 = vrot.slane %v4845_v26, %v6706_v29 }
 0x3b9   :  { %v4811_v47 = vcombine.high %v4809_v7, %v4809_v7  ;;  %v5127_v53 = vcombine.low %v4802_v31, %v4810_v44  ;;  %v4826_v13 = vrot.slane %v4812_v6, %v6706_v29  ;;  %v4827_v22 = vcombine.high %v4819_v8, %v4819_v8 }
 0x3ba   :  { %v5161_v24 = vcombine.low %v4843_v45, %v4844_v51  ;;  %v5162_v49 = vcombine.low %v4852_v39, %v4860_v35  ;;  %v4861_v42 = vcombine.high %v4859_v18, %v4859_v18 }
 0x3bb   :  { %v5128_v57 = vcombine.low %v4809_v7, %v4811_v47  ;;  %v4828_v46 = vcombine.high %v4826_v13, %v4826_v13  ;;  %v5144_v41 = vcombine.low %v4827_v22, %v4826_v13  ;;  %v5135_v20 = vrot.slane %v5127_v53, %v6706_v29 }
 0x3bc   :  { %v5169_v43 = vrot.slane %v5161_v24, %v6706_v29  ;;  %v5176_v56 = vrot.slane %v5162_v49, %v6706_v29 }
 0x3bd   :  { %v5142_v3 = vrot.slane %v5128_v57, %v6706_v29  ;;  %v5145_v38 = vcombine.low %v4828_v46, %v4836_v33  ;;  %v5152_v15 = vrot.slane %v5144_v41, %v6706_v29 }
 0x3be   :  { %v5177_v40 = vcombine.low %v5169_v43, %v5176_v56 }
 0x3bf   :  { %v5143_v60 = vcombine.low %v5135_v20, %v5142_v3  ;;  %v5159_v5 = vrot.slane %v5145_v38, %v6706_v29 }
 0x3c1   :  { %5271 = vxpose.xlu0.b32.start [1/8] (short) (narrow) %v5143_v60, 8  ;;  %v5160_v30 = vcombine.low %v5152_v15, %v5159_v5 }
 0x3c5   :  { %5272 = vxpose.xlu0.b32.cont [2/8] (short) (narrow) %v5160_v30, 8 }
 0x3c9   :  { %5273 = vxpose.xlu0.b32.cont [3/8] (short) (narrow) %v5177_v40, 8 }
 0x3dc   :  { %v5598_v9 = vpop.f32.mrb[4].mxu1 }
 0x3dd   :  { %v4701_v36 = vadd.f32 %v5598_v9, %v8950_v4  ;;  %v4692_v37 = vpop.f32.mrb[5].mxu1 }
 0x3de   :  { %v4693_v34 = vadd.f32 %v8950_v4, %v4692_v37  ;;  %v5599_v32 = vpop.f32.mrb[6].mxu1 }
 0x3df   :  { %v4761_v0 = vmax.f32 %v4701_v36, 0.0  ;;  %v4704_v12 = vadd.f32 %v5599_v32, %v8950_v4  ;;  %v4695_v2 = vpop.f32.mrb[7].mxu1 }
 0x3e0   :  { %v4759_v59 = vmax.f32 %v4693_v34, 0.0  ;;  %v4696_v62 = vadd.f32 %v8950_v4, %v4695_v2 }
 0x3e1   :  { %v4895_v28 = vcombine.high %v4761_v0, %v4761_v0  ;;  %v4902_v48 = vrot.slane %v4761_v0, %v6706_v29  ;;  %v4762_v23 = vmax.f32 %v4704_v12, 0.0 }
 0x3e2   :  { %v4862_v10 = vcombine.high %v4759_v59, %v4759_v59  ;;  %v4869_v50 = vrot.slane %v4759_v59, %v6706_v29  ;;  %v4760_v1 = vmax.f32 %v4696_v62, 0.0 }
 0x3e3   :  { %v4909_v27 = vrot.slane %v4895_v28, %v6706_v29  ;;  %v4910_v61 = vcombine.high %v4902_v48, %v4902_v48  ;;  %v4919_v54 = vrot.slane %v4762_v23, %v6706_v29  ;;  %v4912_v22 = vcombine.high %v4762_v23, %v4762_v23 }
 0x3e4   :  { %v4876_v19 = vrot.slane %v4862_v10, %v6706_v29  ;;  %v4877_v21 = vcombine.high %v4869_v50, %v4869_v50  ;;  %v5178_v11 = vcombine.low %v4861_v42, %v4869_v50  ;;  %v4878_v17 = vcombine.high %v4760_v1, %v4760_v1 }
 0x3e5   :  { %v5212_v16 = vcombine.low %v4910_v61, %v4909_v27  ;;  %v4911_v55 = vcombine.high %v4909_v27, %v4909_v27  ;;  %v4885_v25 = vrot.slane %v4760_v1, %v6706_v29  ;;  %v4926_v24 = vrot.slane %v4912_v22, %v6706_v29 }
 0x3e6   :  { %v5179_v14 = vcombine.low %v4877_v21, %v4876_v19  ;;  %v4892_v63 = vrot.slane %v4878_v17, %v6706_v29  ;;  %v5186_v45 = vrot.slane %v5178_v11, %v6706_v29 }
 0x3e7   :  { %v5213_v52 = vcombine.low %v4911_v55, %v4919_v54  ;;  %v4893_v31 = vcombine.high %v4885_v25, %v4885_v25  ;;  %v5220_v44 = vrot.slane %v5212_v16, %v6706_v29  ;;  %v4927_v43 = vcombine.high %v4926_v24, %v4926_v24 }
 0x3e8   :  { %v4894_v58 = vcombine.high %v4892_v63, %v4892_v63  ;;  %v5193_v39 = vrot.slane %v5179_v14, %v6706_v29 }
 0x3e9   :  { %v5195_v7 = vcombine.low %v4885_v25, %v4893_v31  ;;  %v5227_v6 = vrot.slane %v5213_v52, %v6706_v29  ;;  %v5229_v26 = vcombine.low %v4926_v24, %v4927_v43 }
 0x3ea   :  { %v5196_v8 = vcombine.low %v4892_v63, %v4894_v58  ;;  %v5194_v51 = vcombine.low %v5186_v45, %v5193_v39 }
 0x3eb   :  { %v5228_v35 = vcombine.low %v5220_v44, %v5227_v6  ;;  %v5203_v47 = vrot.slane %v5195_v7, %v6706_v29  ;;  %v5237_v10 = vrot.slane %v5229_v26, %v6706_v29 }
 0x3ec   :  { %5274 = vxpose.xlu0.b32.cont [4/8] (short) (narrow) %v5194_v51, 8  ;;  %v5210_v53 = vrot.slane %v5196_v8, %v6706_v29 }
 0x3ee   :  { %v5211_v13 = vcombine.low %v5203_v47, %v5210_v53 }
 0x3f0   :  { %5275 = vxpose.xlu0.b32.cont [5/8] (short) (narrow) %v5211_v13, 8 }
 0x3f4   :  { %5276 = vxpose.xlu0.b32.cont [6/8] (short) (narrow) %v5228_v35, 8 }
 0x400   :  { %v5602_v49 = vpop.f32.mrb[8].mxu1 }
 0x401   :  { %v4717_v33 = vadd.f32 %v5602_v49, %v8950_v4  ;;  %v4708_v57 = vpop.f32.mrb[9].mxu1 }
 0x402   :  { %v4709_v46 = vadd.f32 %v8950_v4, %v4708_v57  ;;  %v5603_v41 = vpop.f32.mrb[10].mxu1 }
 0x403   :  { %v4765_v56 = vmax.f32 %v4717_v33, 0.0  ;;  %v4711_v20 = vpop.f32.mrb[11].mxu1  ;;  %v4720_v16 = vadd.f32 %v5603_v41, %v8950_v4 }
 0x404   :  { %v4763_v3 = vmax.f32 %v4709_v46, 0.0  ;;  %v4712_v38 = vadd.f32 %v8950_v4, %v4711_v20 }
 0x405   :  { %v4961_v40 = vcombine.high %v4765_v56, %v4765_v56  ;;  %v4968_v60 = vrot.slane %v4765_v56, %v6706_v29  ;;  %v4766_v55 = vmax.f32 %v4720_v16, 0.0 }
 0x406   :  { %v4928_v15 = vcombine.high %v4763_v3, %v4763_v3  ;;  %v4935_v5 = vrot.slane %v4763_v3, %v6706_v29  ;;  %v4764_v30 = vmax.f32 %v4712_v38, 0.0 }
 0x407   :  { %v4975_v9 = vrot.slane %v4961_v40, %v6706_v29  ;;  %v4976_v36 = vcombine.high %v4968_v60, %v4968_v60  ;;  %v4978_v54 = vcombine.high %v4766_v55, %v4766_v55  ;;  %v4985_v25 = vrot.slane %v4766_v55, %v6706_v29 }
 0x408   :  { %v4942_v37 = vrot.slane %v4928_v15, %v6706_v29  ;;  %v4943_v18 = vcombine.high %v4935_v5, %v4935_v5  ;;  %v4945_v34 = vcombine.high %v4764_v30, %v4764_v30  ;;  %v4952_v32 = vrot.slane %v4764_v30, %v6706_v29 }
 0x409   :  { %v4977_v0 = vcombine.high %v4975_v9, %v4975_v9  ;;  %v5304_v12 = vcombine.low %v4968_v60, %v4976_v36  ;;  %v4992_v63 = vrot.slane %v4978_v54, %v6706_v29  ;;  %v4993_v52 = vcombine.high %v4985_v25, %v4985_v25 }
 0x40a   :  { %v4944_v2 = vcombine.high %v4942_v37, %v4942_v37  ;;  %v5230_v59 = vcombine.low %v4935_v5, %v4943_v18  ;;  %v4959_v62 = vrot.slane %v4945_v34, %v6706_v29  ;;  %v4960_v28 = vcombine.high %v4952_v32, %v4952_v32 }
 0x40b   :  { %v5305_v48 = vcombine.low %v4975_v9, %v4977_v0  ;;  %v5312_v1 = vrot.slane %v5304_v12, %v6706_v29  ;;  %v5321_v35 = vcombine.low %v4993_v52, %v4992_v63  ;;  %v4994_v22 = vcombine.high %v4992_v63, %v4992_v63 }
 0x40c   :  { %v5246_v23 = vcombine.low %v4944_v2, %v4952_v32  ;;  %v5247_v42 = vcombine.low %v4960_v28, %v4959_v62  ;;  %v5244_v50 = vrot.slane %v5230_v59, %v6706_v29 }
 0x40d   :  { %v5319_v27 = vrot.slane %v5305_v48, %v6706_v29  ;;  %v5329_v60 = vrot.slane %v5321_v35, %v6706_v29 }
 0x40e   :  { %v5245_v61 = vcombine.low %v5237_v10, %v5244_v50  ;;  %v5254_v19 = vrot.slane %v5246_v23, %v6706_v29  ;;  %v5261_v21 = vrot.slane %v5247_v42, %v6706_v29 }
 0x40f   :  { %v5320_v11 = vcombine.low %v5312_v1, %v5319_v27 }
 0x410   :  { %5277 = vxpose.xlu0.b32.cont [7/8] (short) (narrow) %v5245_v61, 8  ;;  %v5262_v17 = vcombine.low %v5254_v19, %v5261_v21 }
 0x411   :  { %5448 = vxpose.xlu1.b32.start [1/8] (short) (narrow) %v5320_v11, 8 }
 0x414   :  { %5278 = vxpose.xlu0.b32.end [8/8] (short) (narrow) %v5262_v17, 8 }
 0x428   :  { %v5606_v14 = vpop.f32.mrb[12].mxu1 }
 0x429   :  { %v4733_v31 = vadd.f32 %v5606_v14, %v8950_v4  ;;  %v4724_v58 = vpop.f32.mrb[13].mxu1 }
 0x42a   :  { %v4725_v45 = vadd.f32 %v8950_v4, %v4724_v58  ;;  %v5607_v39 = vpop.f32.mrb[14].mxu1 }
 0x42b   :  { %v4769_v7 = vmax.f32 %v4733_v31, 0.0  ;;  %v4736_v44 = vadd.f32 %v5607_v39, %v8950_v4  ;;  %v4727_v6 = vpop.f32.mrb[15].mxu1 }
 0x42c   :  { %v4767_v8 = vmax.f32 %v4725_v45, 0.0  ;;  %v4728_v51 = vadd.f32 %v8950_v4, %v4727_v6 }
 0x42d   :  { %v5028_v47 = vcombine.high %v4769_v7, %v4769_v7  ;;  %v5035_v53 = vrot.slane %v4769_v7, %v6706_v29  ;;  %v4770_v13 = vmax.f32 %v4736_v44, 0.0 }
 0x42e   :  { %v4995_v24 = vcombine.high %v4767_v8, %v4767_v8  ;;  %v5002_v49 = vrot.slane %v4767_v8, %v6706_v29  ;;  %v4768_v33 = vmax.f32 %v4728_v51, 0.0 }
 0x42f   :  { %v5042_v57 = vrot.slane %v5028_v47, %v6706_v29  ;;  %v5043_v46 = vcombine.high %v5035_v53, %v5035_v53  ;;  %v5044_v41 = vcombine.high %v4770_v13, %v4770_v13  ;;  %v5051_v38 = vrot.slane %v4770_v13, %v6706_v29 }
 0x430   :  { %v5009_v43 = vrot.slane %v4995_v24, %v6706_v29  ;;  %v5322_v56 = vcombine.low %v4994_v22, %v5002_v49  ;;  %v5011_v20 = vcombine.high %v4768_v33, %v4768_v33  ;;  %v5018_v3 = vrot.slane %v4768_v33, %v6706_v29 }
 0x431   :  { %v5058_v40 = vrot.slane %v5044_v41, %v6706_v29  ;;  %v5356_v9 = vcombine.low %v5043_v46, %v5042_v57  ;;  %v5059_v0 = vcombine.high %v5051_v38, %v5051_v38 }
 0x432   :  { %v5010_v15 = vcombine.high %v5009_v43, %v5009_v43  ;;  %v5025_v5 = vrot.slane %v5011_v20, %v6706_v29  ;;  %v5026_v30 = vcombine.high %v5018_v3, %v5018_v3  ;;  %v5336_v26 = vrot.slane %v5322_v56, %v6706_v29 }
 0x433   :  { %v5060_v36 = vcombine.high %v5058_v40, %v5058_v40  ;;  %v5370_v23 = vrot.slane %v5356_v9, %v6706_v29  ;;  %v5372_v42 = vcombine.low %v5051_v38, %v5059_v0 }
 0x434   :  { %v5338_v37 = vcombine.low %v5009_v43, %v5010_v15  ;;  %v5027_v18 = vcombine.high %v5025_v5, %v5025_v5  ;;  %v5339_v34 = vcombine.low %v5018_v3, %v5026_v30  ;;  %v5337_v32 = vcombine.low %v5329_v60, %v5336_v26 }
 0x435   :  { %v5373_v62 = vcombine.low %v5058_v40, %v5060_v36  ;;  %v5380_v1 = vrot.slane %v5372_v42, %v6706_v29 }
 0x436   :  { %v5355_v12 = vcombine.low %v5027_v18, %v5035_v53  ;;  %5449 = vxpose.xlu1.b32.cont [2/8] (short) (narrow) %v5337_v32, 8  ;;  %v5346_v2 = vrot.slane %v5338_v37, %v6706_v29  ;;  %v5353_v59 = vrot.slane %v5339_v34, %v6706_v29 }
 0x437   :  { %v5387_v50 = vrot.slane %v5373_v62, %v6706_v29 }
 0x438   :  { %v5354_v28 = vcombine.low %v5346_v2, %v5353_v59  ;;  %v5363_v48 = vrot.slane %v5355_v12, %v6706_v29 }
 0x439   :  { %v5388_v27 = vcombine.low %v5380_v1, %v5387_v50 }
 0x43a   :  { %5450 = vxpose.xlu1.b32.cont [3/8] (short) (narrow) %v5354_v28, 8  ;;  %v5371_v10 = vcombine.low %v5363_v48, %v5370_v23 }
 0x43e   :  { %5451 = vxpose.xlu1.b32.cont [4/8] (short) (narrow) %v5371_v10, 8 }
 0x442   :  { %5452 = vxpose.xlu1.b32.cont [5/8] (short) (narrow) %v5388_v27, 8 }
 0x443   :  { %v5610_v61 = vpop.f32.mrb[16].mxu1 }
 0x444   :  { %v4749_v19 = vadd.f32 %v5610_v61, %v8950_v4  ;;  %v4740_v21 = vpop.f32.mrb[17].mxu1 }
 0x445   :  { %v4741_v11 = vadd.f32 %v8950_v4, %v4740_v21  ;;  %v5611_v17 = vpop.f32.mrb[18].mxu1 }
 0x446   :  { %v4773_v16 = vmax.f32 %v4749_v19, 0.0  ;;  %v4752_v55 = vadd.f32 %v5611_v17, %v8950_v4  ;;  %v4743_v54 = vpop.f32.mrb[19].mxu1 }
 0x447   :  { %v4771_v25 = vmax.f32 %v4741_v11, 0.0  ;;  %v4744_v14 = vadd.f32 %v8950_v4, %v4743_v54 }
 0x448   :  { %v5094_v63 = vcombine.high %v4773_v16, %v4773_v16  ;;  %v5101_v52 = vrot.slane %v4773_v16, %v6706_v29  ;;  %v4774_v31 = vmax.f32 %v4752_v55, 0.0 }
 0x449   :  { %v5061_v58 = vcombine.high %v4771_v25, %v4771_v25  ;;  %v5068_v45 = vrot.slane %v4771_v25, %v6706_v29  ;;  %v4772_v39 = vmax.f32 %v4744_v14, 0.0 }
 0x44a   :  { %v5108_v7 = vrot.slane %v5094_v63, %v6706_v29  ;;  %v5111_v44 = vcombine.high %v4774_v31, %v4774_v31  ;;  %v5118_v6 = vrot.slane %v4774_v31, %v6706_v29  ;;  %v5109_v8 = vcombine.high %v5101_v52, %v5101_v52 }
 0x44b   :  { %v5075_v51 = vrot.slane %v5061_v58, %v6706_v29  ;;  %v5076_v35 = vcombine.high %v5068_v45, %v5068_v45  ;;  %v5078_v47 = vcombine.high %v4772_v39, %v4772_v39  ;;  %v5085_v49 = vrot.slane %v4772_v39, %v6706_v29 }
 0x44c   :  { %v5110_v53 = vcombine.high %v5108_v7, %v5108_v7  ;;  %v5125_v4 = vrot.slane %v5111_v44, %v6706_v29  ;;  %v5126_v13 = vcombine.high %v5118_v6, %v5118_v6  ;;  %v5407_v41 = vcombine.low %v5101_v52, %v5109_v8 }
 0x44d   :  { %v5389_v22 = vcombine.low %v5076_v35, %v5075_v51  ;;  %v5077_v24 = vcombine.high %v5075_v51, %v5075_v51  ;;  %v5092_v33 = vrot.slane %v5078_v47, %v6706_v29 }
 0x44e   :  { %v5423_v57 = vcombine.low %v5110_v53, %v5118_v6  ;;  %v5424_v46 = vcombine.low %v5126_v13, %v5125_v4  ;;  %v5421_v26 = vrot.slane %v5407_v41, %v6706_v29 }
 0x44f   :  { %v5093_v43 = vcombine.high %v5092_v33, %v5092_v33  ;;  %v5390_v56 = vcombine.low %v5077_v24, %v5085_v49  ;;  %v5397_v40 = vrot.slane %v5389_v22, %v6706_v29 }
 0x450   :  { %v5431_v20 = vrot.slane %v5423_v57, %v6706_v29  ;;  %v5438_v3 = vrot.slane %v5424_v46, %v6706_v29 }
 0x451   :  { %v5406_v38 = vcombine.low %v5092_v33, %v5093_v43  ;;  %v5404_v60 = vrot.slane %v5390_v56, %v6706_v29 }
 0x452   :  { %v5439_v15 = vcombine.low %v5431_v20, %v5438_v3 }
 0x453   :  { %v5405_v5 = vcombine.low %v5397_v40, %v5404_v60  ;;  %v5414_v30 = vrot.slane %v5406_v38, %v6706_v29 }
 0x455   :  { %5453 = vxpose.xlu1.b32.cont [6/8] (short) (narrow) %v5405_v5, 8  ;;  %v5422_v9 = vcombine.low %v5414_v30, %v5421_v26 }
 0x459   :  { %5454 = vxpose.xlu1.b32.cont [7/8] (short) (narrow) %v5422_v9, 8 }
 0x45d   :  { %5455 = vxpose.xlu1.b32.end [8/8] (short) (narrow) %v5439_v15, 8 }
 0x478   :  { %v5287_v36 = vpop.trf.xlu0 }
 0x479   :  { %5303 = vst.msk [vmem:[#allocation2] sm:$0xff] %vm4544_vm11, %v5287_v36 }
 0x4c1   :  { %v5464_v37 = vpop.trf.xlu1 }
 0x4c2   :  { %5481 = vst.msk [vmem:[#allocation2 + $0x8] sm:$0xff] %vm4544_vm11, %v5464_v37 }
 0x4c3   :  { %6452 = shalt.err (!%p6449_p4)
}
 0x4c4   :  { %s6453_s1 = scalar_lea.hbm %s9064_s5, 256 }
 0x4c5   :  { %p6454_p5 = scmp.ne.s32.totalorder %s9064_s5, %s6453_s1  ;;  %p6457_p6 = scmp.lt.u32.totalorder %s6453_s1, %s9064_s5 }
 0x4c7   :  { %p6459_p7 = pnand %p6457_p6, %p6454_p5 }
 0x4c9   :  { %6462 = shalt.err (!%p6459_p7)
}
 0x4ca   :  { %s6481_s24 = smov 128  }
 0x4cb   :  { %5493 = dma.vmem_to_hbm [thread:$0]  %s5488_s15, 256, %s9064_s5, [#allocation3], %s6481_s24, %s6481_s24, %s6469_s17  }
 0x4cc   :  { %6463 = dma.done.wait [#allocation3], 256  }
 0x4cd   :  { %6464 = vsyncadd [#allocation3], 4294967040 }
 0x4ce   :  { %5497 = vsyncpa [#allocation3], 1 }

</bundles_post_ra>
